<compile_context>
chip_gen: v5e
topology: v5e:2x2
jax: 0.10.0
libtpu: 0.0.40
codegen_flags: <defaults>
</compile_context>

<pallas_src>
import functools

import jax
import jax.numpy as jnp
from jax.experimental import pallas as pl
from jax.experimental.pallas import tpu as pltpu

# ----- small, self-consistent ModelArgs-style configuration -----
DIM = 256                 # model dim
MOE_INTER_DIM = 128       # per-expert hidden dim
N_ROUTED_EXPERTS = 8      # E
N_ACTIVATED_EXPERTS = 2   # top-k
ROUTE_SCALE = 1.0         # gate.route_scale
BATCH = 2
SEQLEN = 16
TOKEN_TILE = 16           # tokens per grid step (T = 32 -> 2 parallel blocks)


# ---------------------------------------------------------------------------
# Fused MoE kernel: gate + top-k routing + dense expert FFNs + weighted sum.
# Grid = (num_token_blocks,); each step handles TOKEN_TILE tokens.
# ---------------------------------------------------------------------------
def _moe_kernel(x_ref, wg_ref, w1_ref, w3_ref, w2_ref, o_ref, *, topk):
    x = x_ref[...]                                  # (TT, D) f32
    xb = x.astype(jnp.bfloat16)                     # bf16 MXU operand

    def dot_t(a, b, out_dtype=jnp.float32):
        # a @ b.T without materializing the transpose (weights in torch layout)
        return jax.lax.dot_general(a, b, (((1,), (1,)), ((), ())),
                                   preferred_element_type=out_dtype)

    # ---- gate: scores -> softmax (f32) -> top-k dense routing weights ------
    scores = dot_t(x, wg_ref[...])                  # (TT, E) f32
    m = jnp.max(scores, axis=-1, keepdims=True)
    p = jnp.exp(scores - m)
    denom = jnp.sum(p, axis=-1, keepdims=True)
    probs = p * pl.reciprocal(denom, approx=True)   # per-token scale only;
                                                    # does not change ranking
    E = probs.shape[-1]
    lane = jax.lax.broadcasted_iota(jnp.int32, probs.shape, 1)
    remaining = probs
    w_dense = jnp.zeros_like(probs)                 # routing weight per expert
    for _ in range(topk):                           # small static k
        mx = jnp.max(remaining, axis=-1, keepdims=True)
        # lowest-index argmax (matches lax.top_k / torch.topk tie behavior)
        idx = jnp.min(jnp.where(remaining == mx, lane, E),
                      axis=-1, keepdims=True)
        sel = lane == idx
        w_dense = jnp.where(sel, probs, w_dense)
        remaining = jnp.where(sel, -1.0, remaining)
    w_dense = w_dense * ROUTE_SCALE

    # ---- experts: dense compute, weighted accumulate (bf16 MXU, f32 acc) ---
    acc = jnp.zeros(o_ref.shape, jnp.float32)       # (TT, D)
    for e in range(E):                              # weights resident in VMEM
        h1 = dot_t(xb, w1_ref[e])                   # (TT, I) f32
        h3 = dot_t(xb, w3_ref[e])                   # (TT, I) f32
        sig = pl.reciprocal(1.0 + jnp.exp(-h1), approx=True)
        g = (h1 * sig) * h3                         # silu(h1) * h3, f32
        ye = dot_t(g.astype(jnp.bfloat16), w2_ref[e])   # (TT, D) f32
        acc = acc + w_dense[:, e:e + 1] * ye
    o_ref[...] = acc.astype(o_ref.dtype)


def moe_forward(x, params):
    """x: (B, S, D) f32; params in torch layouts:
       gate_w (E, D), w1 (E, I, D), w3 (E, I, D), w2 (E, D, I)."""
    B, S, D = x.shape
    T = B * S
    x2d = x.reshape(T, D)
    E, I, _ = params["w1"].shape
    TT = TOKEN_TILE
    assert T % TT == 0 and TT % 8 == 0 and D % 128 == 0

    # bf16 at the pallas_call boundary for the MXU operands (gate stays f32).
    w1 = params["w1"].astype(jnp.bfloat16)
    w3 = params["w3"].astype(jnp.bfloat16)
    w2 = params["w2"].astype(jnp.bfloat16)

    kernel = functools.partial(_moe_kernel, topk=N_ACTIVATED_EXPERTS)
    out = pl.pallas_call(
        kernel,
        out_shape=jax.ShapeDtypeStruct((T, D), jnp.float32),
        grid=(T // TT,),
        in_specs=[
            pl.BlockSpec((TT, D), lambda t: (t, 0)),       # x tokens
            pl.BlockSpec((E, D), lambda t: (0, 0)),        # gate weight
            pl.BlockSpec((E, I, D), lambda t: (0, 0, 0)),  # w1 (whole, once)
            pl.BlockSpec((E, I, D), lambda t: (0, 0, 0)),  # w3
            pl.BlockSpec((E, D, I), lambda t: (0, 0, 0)),  # w2
        ],
        out_specs=pl.BlockSpec((TT, D), lambda t: (t, 0)),  # lane-dense (D=256)
        compiler_params=pltpu.CompilerParams(
            dimension_semantics=("parallel",)),
    )(x2d, params["gate_w"], w1, w3, w2)
    return out.reshape(B, S, D)


# ---------------------------------------------------------------------------
# Pure-JAX reference (mirrors the torch MoE forward, all f32)
# ---------------------------------------------------------------------------
def moe_reference(x, params):
    B, S, D = x.shape
    xt = x.reshape(B * S, D)
    scores = xt @ params["gate_w"].T
    probs = jax.nn.softmax(scores.astype(jnp.float32), axis=-1)
    weights, indices = jax.lax.top_k(probs, N_ACTIVATED_EXPERTS)   # (T, k)
    weights = weights * ROUTE_SCALE
    # ConditionalFeedForward.forward_for_long_seq_len
    x1 = jax.nn.silu(jnp.einsum("ti,eoi->teo", xt, params["w1"]))
    x3 = jnp.einsum("ti,eoi->teo", xt, params["w3"])
    expert_outs = jnp.einsum("teo,eio->tei", x1 * x3, params["w2"])  # (T,E,D)
    gathered = jnp.take_along_axis(expert_outs, indices[:, :, None], axis=1)
    out = jnp.einsum("tai,ta->ti", gathered, weights)
    return out.reshape(B, S, D)


def make_params(key):
    ks = jax.random.split(key, 4)
    sc = 0.02
    return {
        "gate_w": jax.random.normal(
            ks[0], (N_ROUTED_EXPERTS, DIM), jnp.float32) * sc,
        "w1": jax.random.normal(
            ks[1], (N_ROUTED_EXPERTS, MOE_INTER_DIM, DIM), jnp.float32) * sc,
        "w3": jax.random.normal(
            ks[2], (N_ROUTED_EXPERTS, MOE_INTER_DIM, DIM), jnp.float32) * sc,
        "w2": jax.random.normal(
            ks[3], (N_ROUTED_EXPERTS, DIM, MOE_INTER_DIM), jnp.float32) * sc,
    }


if __name__ == "__main__":
    key = jax.random.PRNGKey(0)
    k_params, k_x = jax.random.split(key)
    params = make_params(k_params)
    x = jax.random.normal(k_x, (BATCH, SEQLEN, DIM), jnp.float32)

    out = jax.block_until_ready(moe_forward(x, params))
    ref = moe_reference(x, params)

    assert out.shape == (BATCH, SEQLEN, DIM), out.shape
    max_err = float(jnp.max(jnp.abs(out - ref)))
    if not bool(jnp.allclose(out, ref, atol=2e-2, rtol=2e-2)):
        raise AssertionError(f"Pallas MoE mismatch vs reference, max abs err {max_err}")
    print("KERNEL_OK")
</pallas_src>

<mosaic_0001>
module attributes {stable_mosaic.version = 11 : i64} {
  func.func @_moe_kernel(%arg0: i32, %arg1: memref<16x256xf32, #tpu.memory_space<vmem>>, %arg2: memref<8x256xf32, #tpu.memory_space<vmem>>, %arg3: memref<8x128x256xbf16, #tpu.memory_space<vmem>>, %arg4: memref<8x128x256xbf16, #tpu.memory_space<vmem>>, %arg5: memref<8x256x128xbf16, #tpu.memory_space<vmem>>, %arg6: memref<16x256xf32, #tpu.memory_space<vmem>>) attributes {dimension_semantics = [#tpu.dimension_semantics<parallel>], iteration_bounds = array<i64: 2>, scalar_prefetch = 0 : i64, scratch_operands = 0 : i64, tpu.core_type = #tpu.core_type<tc>, window_params = [{transform_indices = @transform_0, window_bounds = array<i64: 16, 256>}, {pipeline_mode = #tpu.pipeline_mode<synchronous>, transform_indices = @transform_1, window_bounds = array<i64: 8, 256>}, {pipeline_mode = #tpu.pipeline_mode<synchronous>, transform_indices = @transform_2, window_bounds = array<i64: 8, 128, 256>}, {pipeline_mode = #tpu.pipeline_mode<synchronous>, transform_indices = @transform_3, window_bounds = array<i64: 8, 128, 256>}, {pipeline_mode = #tpu.pipeline_mode<synchronous>, transform_indices = @transform_4, window_bounds = array<i64: 8, 256, 128>}, {transform_indices = @transform_5, window_bounds = array<i64: 16, 256>}]} {
    %c0 = arith.constant 0 : index
    %c0_0 = arith.constant 0 : index
    %0 = vector.load %arg1[%c0, %c0_0] : memref<16x256xf32, #tpu.memory_space<vmem>>, vector<16x256xf32>
    %1 = arith.truncf %0 : vector<16x256xf32> to vector<16x256xbf16>
    %c0_1 = arith.constant 0 : index
    %c0_2 = arith.constant 0 : index
    %2 = vector.load %arg2[%c0_1, %c0_2] : memref<8x256xf32, #tpu.memory_space<vmem>>, vector<8x256xf32>
    %cst = arith.constant dense<0.000000e+00> : vector<16x8xf32>
    %3 = tpu.matmul %0, %2, %cst {dimension_numbers = #tpu.dot_dimension_numbers<[1], [1], [0], [0], [0, 0, 1, 0], [], []>} : vector<16x256xf32>, vector<8x256xf32>, vector<16x8xf32> -> vector<16x8xf32>
    %cst_3 = arith.constant dense<0xFF800000> : vector<16xf32>
    %4 = vector.multi_reduction <maximumf>, %3, %cst_3 [1] : vector<16x8xf32> to vector<16xf32>
    %5 = vector.shape_cast %4 : vector<16xf32> to vector<16x1xf32>
    %6 = vector.broadcast %5 : vector<16x1xf32> to vector<16x8xf32>
    %7 = arith.subf %3, %6 : vector<16x8xf32>
    %8 = math.exp %7 : vector<16x8xf32>
    %cst_4 = arith.constant dense<0.000000e+00> : vector<16xf32>
    %9 = vector.multi_reduction <add>, %8, %cst_4 [1] : vector<16x8xf32> to vector<16xf32>
    %10 = vector.shape_cast %9 : vector<16xf32> to vector<16x1xf32>
    %11 = tpu.reciprocal %10 {approx = true} : vector<16x1xf32> -> vector<16x1xf32>
    %12 = vector.broadcast %11 : vector<16x1xf32> to vector<16x8xf32>
    %13 = arith.mulf %8, %12 : vector<16x8xf32>
    %14 = tpu.iota {dimensions = array<i32: 1>} : vector<16x8xi32>
    %cst_5 = arith.constant 0.000000e+00 : f32
    %15 = vector.broadcast %cst_5 : f32 to vector<16x8xf32>
    %cst_6 = arith.constant dense<0xFF800000> : vector<16xf32>
    %16 = vector.multi_reduction <maximumf>, %13, %cst_6 [1] : vector<16x8xf32> to vector<16xf32>
    %17 = vector.shape_cast %16 : vector<16xf32> to vector<16x1xf32>
    %18 = vector.broadcast %17 : vector<16x1xf32> to vector<16x8xf32>
    %19 = arith.cmpf oeq, %13, %18 : vector<16x8xf32>
    %c8_i32 = arith.constant 8 : i32
    %20 = vector.broadcast %c8_i32 : i32 to vector<16x8xi32>
    %21 = arith.select %19, %14, %20 : vector<16x8xi1>, vector<16x8xi32>
    %cst_7 = arith.constant dense<2147483647> : vector<16xi32>
    %22 = vector.multi_reduction <minsi>, %21, %cst_7 [1] : vector<16x8xi32> to vector<16xi32>
    %23 = vector.shape_cast %22 : vector<16xi32> to vector<16x1xi32>
    %24 = vector.broadcast %23 : vector<16x1xi32> to vector<16x8xi32>
    %25 = arith.cmpi eq, %14, %24 : vector<16x8xi32>
    %26 = arith.select %25, %13, %15 : vector<16x8xi1>, vector<16x8xf32>
    %cst_8 = arith.constant -1.000000e+00 : f32
    %27 = vector.broadcast %cst_8 : f32 to vector<16x8xf32>
    %28 = arith.select %25, %27, %13 : vector<16x8xi1>, vector<16x8xf32>
    %cst_9 = arith.constant dense<0xFF800000> : vector<16xf32>
    %29 = vector.multi_reduction <maximumf>, %28, %cst_9 [1] : vector<16x8xf32> to vector<16xf32>
    %30 = vector.shape_cast %29 : vector<16xf32> to vector<16x1xf32>
    %31 = vector.broadcast %30 : vector<16x1xf32> to vector<16x8xf32>
    %32 = arith.cmpf oeq, %28, %31 : vector<16x8xf32>
    %c8_i32_10 = arith.constant 8 : i32
    %33 = vector.broadcast %c8_i32_10 : i32 to vector<16x8xi32>
    %34 = arith.select %32, %14, %33 : vector<16x8xi1>, vector<16x8xi32>
    %cst_11 = arith.constant dense<2147483647> : vector<16xi32>
    %35 = vector.multi_reduction <minsi>, %34, %cst_11 [1] : vector<16x8xi32> to vector<16xi32>
    %36 = vector.shape_cast %35 : vector<16xi32> to vector<16x1xi32>
    %37 = vector.broadcast %36 : vector<16x1xi32> to vector<16x8xi32>
    %38 = arith.cmpi eq, %14, %37 : vector<16x8xi32>
    %39 = arith.select %38, %13, %26 : vector<16x8xi1>, vector<16x8xf32>
    %cst_12 = arith.constant 1.000000e+00 : f32
    %40 = vector.broadcast %cst_12 : f32 to vector<16x8xf32>
    %41 = arith.mulf %39, %40 : vector<16x8xf32>
    %cst_13 = arith.constant 0.000000e+00 : f32
    %42 = vector.broadcast %cst_13 : f32 to vector<16x256xf32>
    %c0_14 = arith.constant 0 : index
    %c0_15 = arith.constant 0 : index
    %c0_16 = arith.constant 0 : index
    %43 = vector.load %arg3[%c0_14, %c0_15, %c0_16] : memref<8x128x256xbf16, #tpu.memory_space<vmem>>, vector<1x128x256xbf16>
    %44 = vector.shape_cast %43 : vector<1x128x256xbf16> to vector<128x256xbf16>
    %cst_17 = arith.constant dense<0.000000e+00> : vector<16x128xf32>
    %45 = tpu.matmul %1, %44, %cst_17 {dimension_numbers = #tpu.dot_dimension_numbers<[1], [1], [0], [0], [0, 0, 1, 0], [], []>} : vector<16x256xbf16>, vector<128x256xbf16>, vector<16x128xf32> -> vector<16x128xf32>
    %c0_18 = arith.constant 0 : index
    %c0_19 = arith.constant 0 : index
    %c0_20 = arith.constant 0 : index
    %46 = vector.load %arg4[%c0_18, %c0_19, %c0_20] : memref<8x128x256xbf16, #tpu.memory_space<vmem>>, vector<1x128x256xbf16>
    %47 = vector.shape_cast %46 : vector<1x128x256xbf16> to vector<128x256xbf16>
    %cst_21 = arith.constant dense<0.000000e+00> : vector<16x128xf32>
    %48 = tpu.matmul %1, %47, %cst_21 {dimension_numbers = #tpu.dot_dimension_numbers<[1], [1], [0], [0], [0, 0, 1, 0], [], []>} : vector<16x256xbf16>, vector<128x256xbf16>, vector<16x128xf32> -> vector<16x128xf32>
    %cst_22 = arith.constant 0.000000e+00 : f32
    %49 = vector.broadcast %cst_22 : f32 to vector<16x128xf32>
    %50 = arith.subf %49, %45 : vector<16x128xf32>
    %51 = math.exp %50 : vector<16x128xf32>
    %cst_23 = arith.constant 1.000000e+00 : f32
    %52 = vector.broadcast %cst_23 : f32 to vector<16x128xf32>
    %53 = arith.addf %52, %51 : vector<16x128xf32>
    %54 = tpu.reciprocal %53 {approx = true} : vector<16x128xf32> -> vector<16x128xf32>
    %55 = arith.mulf %45, %54 : vector<16x128xf32>
    %56 = arith.mulf %55, %48 : vector<16x128xf32>
    %57 = arith.truncf %56 : vector<16x128xf32> to vector<16x128xbf16>
    %c0_24 = arith.constant 0 : index
    %c0_25 = arith.constant 0 : index
    %c0_26 = arith.constant 0 : index
    %58 = vector.load %arg5[%c0_24, %c0_25, %c0_26] : memref<8x256x128xbf16, #tpu.memory_space<vmem>>, vector<1x256x128xbf16>
    %59 = vector.shape_cast %58 : vector<1x256x128xbf16> to vector<256x128xbf16>
    %cst_27 = arith.constant dense<0.000000e+00> : vector<16x256xf32>
    %60 = tpu.matmul %57, %59, %cst_27 {dimension_numbers = #tpu.dot_dimension_numbers<[1], [1], [0], [0], [0, 0, 1, 0], [], []>} : vector<16x128xbf16>, vector<256x128xbf16>, vector<16x256xf32> -> vector<16x256xf32>
    %61 = vector.extract_strided_slice %41 {offsets = [0, 0], sizes = [16, 1], strides = [1, 1]} : vector<16x8xf32> to vector<16x1xf32>
    %62 = vector.broadcast %61 : vector<16x1xf32> to vector<16x256xf32>
    %63 = arith.mulf %62, %60 : vector<16x256xf32>
    %64 = arith.addf %42, %63 : vector<16x256xf32>
    %c1 = arith.constant 1 : index
    %c0_28 = arith.constant 0 : index
    %c0_29 = arith.constant 0 : index
    %65 = vector.load %arg3[%c1, %c0_28, %c0_29] : memref<8x128x256xbf16, #tpu.memory_space<vmem>>, vector<1x128x256xbf16>
    %66 = vector.shape_cast %65 : vector<1x128x256xbf16> to vector<128x256xbf16>
    %cst_30 = arith.constant dense<0.000000e+00> : vector<16x128xf32>
    %67 = tpu.matmul %1, %66, %cst_30 {dimension_numbers = #tpu.dot_dimension_numbers<[1], [1], [0], [0], [0, 0, 1, 0], [], []>} : vector<16x256xbf16>, vector<128x256xbf16>, vector<16x128xf32> -> vector<16x128xf32>
    %c1_31 = arith.constant 1 : index
    %c0_32 = arith.constant 0 : index
    %c0_33 = arith.constant 0 : index
    %68 = vector.load %arg4[%c1_31, %c0_32, %c0_33] : memref<8x128x256xbf16, #tpu.memory_space<vmem>>, vector<1x128x256xbf16>
    %69 = vector.shape_cast %68 : vector<1x128x256xbf16> to vector<128x256xbf16>
    %cst_34 = arith.constant dense<0.000000e+00> : vector<16x128xf32>
    %70 = tpu.matmul %1, %69, %cst_34 {dimension_numbers = #tpu.dot_dimension_numbers<[1], [1], [0], [0], [0, 0, 1, 0], [], []>} : vector<16x256xbf16>, vector<128x256xbf16>, vector<16x128xf32> -> vector<16x128xf32>
    %cst_35 = arith.constant 0.000000e+00 : f32
    %71 = vector.broadcast %cst_35 : f32 to vector<16x128xf32>
    %72 = arith.subf %71, %67 : vector<16x128xf32>
    %73 = math.exp %72 : vector<16x128xf32>
    %cst_36 = arith.constant 1.000000e+00 : f32
    %74 = vector.broadcast %cst_36 : f32 to vector<16x128xf32>
    %75 = arith.addf %74, %73 : vector<16x128xf32>
    %76 = tpu.reciprocal %75 {approx = true} : vector<16x128xf32> -> vector<16x128xf32>
    %77 = arith.mulf %67, %76 : vector<16x128xf32>
    %78 = arith.mulf %77, %70 : vector<16x128xf32>
    %79 = arith.truncf %78 : vector<16x128xf32> to vector<16x128xbf16>
    %c1_37 = arith.constant 1 : index
    %c0_38 = arith.constant 0 : index
    %c0_39 = arith.constant 0 : index
    %80 = vector.load %arg5[%c1_37, %c0_38, %c0_39] : memref<8x256x128xbf16, #tpu.memory_space<vmem>>, vector<1x256x128xbf16>
    %81 = vector.shape_cast %80 : vector<1x256x128xbf16> to vector<256x128xbf16>
    %cst_40 = arith.constant dense<0.000000e+00> : vector<16x256xf32>
    %82 = tpu.matmul %79, %81, %cst_40 {dimension_numbers = #tpu.dot_dimension_numbers<[1], [1], [0], [0], [0, 0, 1, 0], [], []>} : vector<16x128xbf16>, vector<256x128xbf16>, vector<16x256xf32> -> vector<16x256xf32>
    %83 = vector.extract_strided_slice %41 {offsets = [0, 1], sizes = [16, 1], strides = [1, 1]} : vector<16x8xf32> to vector<16x1xf32>
    %84 = vector.broadcast %83 : vector<16x1xf32> to vector<16x256xf32>
    %85 = arith.mulf %84, %82 : vector<16x256xf32>
    %86 = arith.addf %64, %85 : vector<16x256xf32>
    %c2 = arith.constant 2 : index
    %c0_41 = arith.constant 0 : index
    %c0_42 = arith.constant 0 : index
    %87 = vector.load %arg3[%c2, %c0_41, %c0_42] : memref<8x128x256xbf16, #tpu.memory_space<vmem>>, vector<1x128x256xbf16>
    %88 = vector.shape_cast %87 : vector<1x128x256xbf16> to vector<128x256xbf16>
    %cst_43 = arith.constant dense<0.000000e+00> : vector<16x128xf32>
    %89 = tpu.matmul %1, %88, %cst_43 {dimension_numbers = #tpu.dot_dimension_numbers<[1], [1], [0], [0], [0, 0, 1, 0], [], []>} : vector<16x256xbf16>, vector<128x256xbf16>, vector<16x128xf32> -> vector<16x128xf32>
    %c2_44 = arith.constant 2 : index
    %c0_45 = arith.constant 0 : index
    %c0_46 = arith.constant 0 : index
    %90 = vector.load %arg4[%c2_44, %c0_45, %c0_46] : memref<8x128x256xbf16, #tpu.memory_space<vmem>>, vector<1x128x256xbf16>
    %91 = vector.shape_cast %90 : vector<1x128x256xbf16> to vector<128x256xbf16>
    %cst_47 = arith.constant dense<0.000000e+00> : vector<16x128xf32>
    %92 = tpu.matmul %1, %91, %cst_47 {dimension_numbers = #tpu.dot_dimension_numbers<[1], [1], [0], [0], [0, 0, 1, 0], [], []>} : vector<16x256xbf16>, vector<128x256xbf16>, vector<16x128xf32> -> vector<16x128xf32>
    %cst_48 = arith.constant 0.000000e+00 : f32
    %93 = vector.broadcast %cst_48 : f32 to vector<16x128xf32>
    %94 = arith.subf %93, %89 : vector<16x128xf32>
    %95 = math.exp %94 : vector<16x128xf32>
    %cst_49 = arith.constant 1.000000e+00 : f32
    %96 = vector.broadcast %cst_49 : f32 to vector<16x128xf32>
    %97 = arith.addf %96, %95 : vector<16x128xf32>
    %98 = tpu.reciprocal %97 {approx = true} : vector<16x128xf32> -> vector<16x128xf32>
    %99 = arith.mulf %89, %98 : vector<16x128xf32>
    %100 = arith.mulf %99, %92 : vector<16x128xf32>
    %101 = arith.truncf %100 : vector<16x128xf32> to vector<16x128xbf16>
    %c2_50 = arith.constant 2 : index
    %c0_51 = arith.constant 0 : index
    %c0_52 = arith.constant 0 : index
    %102 = vector.load %arg5[%c2_50, %c0_51, %c0_52] : memref<8x256x128xbf16, #tpu.memory_space<vmem>>, vector<1x256x128xbf16>
    %103 = vector.shape_cast %102 : vector<1x256x128xbf16> to vector<256x128xbf16>
    %cst_53 = arith.constant dense<0.000000e+00> : vector<16x256xf32>
    %104 = tpu.matmul %101, %103, %cst_53 {dimension_numbers = #tpu.dot_dimension_numbers<[1], [1], [0], [0], [0, 0, 1, 0], [], []>} : vector<16x128xbf16>, vector<256x128xbf16>, vector<16x256xf32> -> vector<16x256xf32>
    %105 = vector.extract_strided_slice %41 {offsets = [0, 2], sizes = [16, 1], strides = [1, 1]} : vector<16x8xf32> to vector<16x1xf32>
    %106 = vector.broadcast %105 : vector<16x1xf32> to vector<16x256xf32>
    %107 = arith.mulf %106, %104 : vector<16x256xf32>
    %108 = arith.addf %86, %107 : vector<16x256xf32>
    %c3 = arith.constant 3 : index
    %c0_54 = arith.constant 0 : index
    %c0_55 = arith.constant 0 : index
    %109 = vector.load %arg3[%c3, %c0_54, %c0_55] : memref<8x128x256xbf16, #tpu.memory_space<vmem>>, vector<1x128x256xbf16>
    %110 = vector.shape_cast %109 : vector<1x128x256xbf16> to vector<128x256xbf16>
    %cst_56 = arith.constant dense<0.000000e+00> : vector<16x128xf32>
    %111 = tpu.matmul %1, %110, %cst_56 {dimension_numbers = #tpu.dot_dimension_numbers<[1], [1], [0], [0], [0, 0, 1, 0], [], []>} : vector<16x256xbf16>, vector<128x256xbf16>, vector<16x128xf32> -> vector<16x128xf32>
    %c3_57 = arith.constant 3 : index
    %c0_58 = arith.constant 0 : index
    %c0_59 = arith.constant 0 : index
    %112 = vector.load %arg4[%c3_57, %c0_58, %c0_59] : memref<8x128x256xbf16, #tpu.memory_space<vmem>>, vector<1x128x256xbf16>
    %113 = vector.shape_cast %112 : vector<1x128x256xbf16> to vector<128x256xbf16>
    %cst_60 = arith.constant dense<0.000000e+00> : vector<16x128xf32>
    %114 = tpu.matmul %1, %113, %cst_60 {dimension_numbers = #tpu.dot_dimension_numbers<[1], [1], [0], [0], [0, 0, 1, 0], [], []>} : vector<16x256xbf16>, vector<128x256xbf16>, vector<16x128xf32> -> vector<16x128xf32>
    %cst_61 = arith.constant 0.000000e+00 : f32
    %115 = vector.broadcast %cst_61 : f32 to vector<16x128xf32>
    %116 = arith.subf %115, %111 : vector<16x128xf32>
    %117 = math.exp %116 : vector<16x128xf32>
    %cst_62 = arith.constant 1.000000e+00 : f32
    %118 = vector.broadcast %cst_62 : f32 to vector<16x128xf32>
    %119 = arith.addf %118, %117 : vector<16x128xf32>
    %120 = tpu.reciprocal %119 {approx = true} : vector<16x128xf32> -> vector<16x128xf32>
    %121 = arith.mulf %111, %120 : vector<16x128xf32>
    %122 = arith.mulf %121, %114 : vector<16x128xf32>
    %123 = arith.truncf %122 : vector<16x128xf32> to vector<16x128xbf16>
    %c3_63 = arith.constant 3 : index
    %c0_64 = arith.constant 0 : index
    %c0_65 = arith.constant 0 : index
    %124 = vector.load %arg5[%c3_63, %c0_64, %c0_65] : memref<8x256x128xbf16, #tpu.memory_space<vmem>>, vector<1x256x128xbf16>
    %125 = vector.shape_cast %124 : vector<1x256x128xbf16> to vector<256x128xbf16>
    %cst_66 = arith.constant dense<0.000000e+00> : vector<16x256xf32>
    %126 = tpu.matmul %123, %125, %cst_66 {dimension_numbers = #tpu.dot_dimension_numbers<[1], [1], [0], [0], [0, 0, 1, 0], [], []>} : vector<16x128xbf16>, vector<256x128xbf16>, vector<16x256xf32> -> vector<16x256xf32>
    %127 = vector.extract_strided_slice %41 {offsets = [0, 3], sizes = [16, 1], strides = [1, 1]} : vector<16x8xf32> to vector<16x1xf32>
    %128 = vector.broadcast %127 : vector<16x1xf32> to vector<16x256xf32>
    %129 = arith.mulf %128, %126 : vector<16x256xf32>
    %130 = arith.addf %108, %129 : vector<16x256xf32>
    %c4 = arith.constant 4 : index
    %c0_67 = arith.constant 0 : index
    %c0_68 = arith.constant 0 : index
    %131 = vector.load %arg3[%c4, %c0_67, %c0_68] : memref<8x128x256xbf16, #tpu.memory_space<vmem>>, vector<1x128x256xbf16>
    %132 = vector.shape_cast %131 : vector<1x128x256xbf16> to vector<128x256xbf16>
    %cst_69 = arith.constant dense<0.000000e+00> : vector<16x128xf32>
    %133 = tpu.matmul %1, %132, %cst_69 {dimension_numbers = #tpu.dot_dimension_numbers<[1], [1], [0], [0], [0, 0, 1, 0], [], []>} : vector<16x256xbf16>, vector<128x256xbf16>, vector<16x128xf32> -> vector<16x128xf32>
    %c4_70 = arith.constant 4 : index
    %c0_71 = arith.constant 0 : index
    %c0_72 = arith.constant 0 : index
    %134 = vector.load %arg4[%c4_70, %c0_71, %c0_72] : memref<8x128x256xbf16, #tpu.memory_space<vmem>>, vector<1x128x256xbf16>
    %135 = vector.shape_cast %134 : vector<1x128x256xbf16> to vector<128x256xbf16>
    %cst_73 = arith.constant dense<0.000000e+00> : vector<16x128xf32>
    %136 = tpu.matmul %1, %135, %cst_73 {dimension_numbers = #tpu.dot_dimension_numbers<[1], [1], [0], [0], [0, 0, 1, 0], [], []>} : vector<16x256xbf16>, vector<128x256xbf16>, vector<16x128xf32> -> vector<16x128xf32>
    %cst_74 = arith.constant 0.000000e+00 : f32
    %137 = vector.broadcast %cst_74 : f32 to vector<16x128xf32>
    %138 = arith.subf %137, %133 : vector<16x128xf32>
    %139 = math.exp %138 : vector<16x128xf32>
    %cst_75 = arith.constant 1.000000e+00 : f32
    %140 = vector.broadcast %cst_75 : f32 to vector<16x128xf32>
    %141 = arith.addf %140, %139 : vector<16x128xf32>
    %142 = tpu.reciprocal %141 {approx = true} : vector<16x128xf32> -> vector<16x128xf32>
    %143 = arith.mulf %133, %142 : vector<16x128xf32>
    %144 = arith.mulf %143, %136 : vector<16x128xf32>
    %145 = arith.truncf %144 : vector<16x128xf32> to vector<16x128xbf16>
    %c4_76 = arith.constant 4 : index
    %c0_77 = arith.constant 0 : index
    %c0_78 = arith.constant 0 : index
    %146 = vector.load %arg5[%c4_76, %c0_77, %c0_78] : memref<8x256x128xbf16, #tpu.memory_space<vmem>>, vector<1x256x128xbf16>
    %147 = vector.shape_cast %146 : vector<1x256x128xbf16> to vector<256x128xbf16>
    %cst_79 = arith.constant dense<0.000000e+00> : vector<16x256xf32>
    %148 = tpu.matmul %145, %147, %cst_79 {dimension_numbers = #tpu.dot_dimension_numbers<[1], [1], [0], [0], [0, 0, 1, 0], [], []>} : vector<16x128xbf16>, vector<256x128xbf16>, vector<16x256xf32> -> vector<16x256xf32>
    %149 = vector.extract_strided_slice %41 {offsets = [0, 4], sizes = [16, 1], strides = [1, 1]} : vector<16x8xf32> to vector<16x1xf32>
    %150 = vector.broadcast %149 : vector<16x1xf32> to vector<16x256xf32>
    %151 = arith.mulf %150, %148 : vector<16x256xf32>
    %152 = arith.addf %130, %151 : vector<16x256xf32>
    %c5 = arith.constant 5 : index
    %c0_80 = arith.constant 0 : index
    %c0_81 = arith.constant 0 : index
    %153 = vector.load %arg3[%c5, %c0_80, %c0_81] : memref<8x128x256xbf16, #tpu.memory_space<vmem>>, vector<1x128x256xbf16>
    %154 = vector.shape_cast %153 : vector<1x128x256xbf16> to vector<128x256xbf16>
    %cst_82 = arith.constant dense<0.000000e+00> : vector<16x128xf32>
    %155 = tpu.matmul %1, %154, %cst_82 {dimension_numbers = #tpu.dot_dimension_numbers<[1], [1], [0], [0], [0, 0, 1, 0], [], []>} : vector<16x256xbf16>, vector<128x256xbf16>, vector<16x128xf32> -> vector<16x128xf32>
    %c5_83 = arith.constant 5 : index
    %c0_84 = arith.constant 0 : index
    %c0_85 = arith.constant 0 : index
    %156 = vector.load %arg4[%c5_83, %c0_84, %c0_85] : memref<8x128x256xbf16, #tpu.memory_space<vmem>>, vector<1x128x256xbf16>
    %157 = vector.shape_cast %156 : vector<1x128x256xbf16> to vector<128x256xbf16>
    %cst_86 = arith.constant dense<0.000000e+00> : vector<16x128xf32>
    %158 = tpu.matmul %1, %157, %cst_86 {dimension_numbers = #tpu.dot_dimension_numbers<[1], [1], [0], [0], [0, 0, 1, 0], [], []>} : vector<16x256xbf16>, vector<128x256xbf16>, vector<16x128xf32> -> vector<16x128xf32>
    %cst_87 = arith.constant 0.000000e+00 : f32
    %159 = vector.broadcast %cst_87 : f32 to vector<16x128xf32>
    %160 = arith.subf %159, %155 : vector<16x128xf32>
    %161 = math.exp %160 : vector<16x128xf32>
    %cst_88 = arith.constant 1.000000e+00 : f32
    %162 = vector.broadcast %cst_88 : f32 to vector<16x128xf32>
    %163 = arith.addf %162, %161 : vector<16x128xf32>
    %164 = tpu.reciprocal %163 {approx = true} : vector<16x128xf32> -> vector<16x128xf32>
    %165 = arith.mulf %155, %164 : vector<16x128xf32>
    %166 = arith.mulf %165, %158 : vector<16x128xf32>
    %167 = arith.truncf %166 : vector<16x128xf32> to vector<16x128xbf16>
    %c5_89 = arith.constant 5 : index
    %c0_90 = arith.constant 0 : index
    %c0_91 = arith.constant 0 : index
    %168 = vector.load %arg5[%c5_89, %c0_90, %c0_91] : memref<8x256x128xbf16, #tpu.memory_space<vmem>>, vector<1x256x128xbf16>
    %169 = vector.shape_cast %168 : vector<1x256x128xbf16> to vector<256x128xbf16>
    %cst_92 = arith.constant dense<0.000000e+00> : vector<16x256xf32>
    %170 = tpu.matmul %167, %169, %cst_92 {dimension_numbers = #tpu.dot_dimension_numbers<[1], [1], [0], [0], [0, 0, 1, 0], [], []>} : vector<16x128xbf16>, vector<256x128xbf16>, vector<16x256xf32> -> vector<16x256xf32>
    %171 = vector.extract_strided_slice %41 {offsets = [0, 5], sizes = [16, 1], strides = [1, 1]} : vector<16x8xf32> to vector<16x1xf32>
    %172 = vector.broadcast %171 : vector<16x1xf32> to vector<16x256xf32>
    %173 = arith.mulf %172, %170 : vector<16x256xf32>
    %174 = arith.addf %152, %173 : vector<16x256xf32>
    %c6 = arith.constant 6 : index
    %c0_93 = arith.constant 0 : index
    %c0_94 = arith.constant 0 : index
    %175 = vector.load %arg3[%c6, %c0_93, %c0_94] : memref<8x128x256xbf16, #tpu.memory_space<vmem>>, vector<1x128x256xbf16>
    %176 = vector.shape_cast %175 : vector<1x128x256xbf16> to vector<128x256xbf16>
    %cst_95 = arith.constant dense<0.000000e+00> : vector<16x128xf32>
    %177 = tpu.matmul %1, %176, %cst_95 {dimension_numbers = #tpu.dot_dimension_numbers<[1], [1], [0], [0], [0, 0, 1, 0], [], []>} : vector<16x256xbf16>, vector<128x256xbf16>, vector<16x128xf32> -> vector<16x128xf32>
    %c6_96 = arith.constant 6 : index
    %c0_97 = arith.constant 0 : index
    %c0_98 = arith.constant 0 : index
    %178 = vector.load %arg4[%c6_96, %c0_97, %c0_98] : memref<8x128x256xbf16, #tpu.memory_space<vmem>>, vector<1x128x256xbf16>
    %179 = vector.shape_cast %178 : vector<1x128x256xbf16> to vector<128x256xbf16>
    %cst_99 = arith.constant dense<0.000000e+00> : vector<16x128xf32>
    %180 = tpu.matmul %1, %179, %cst_99 {dimension_numbers = #tpu.dot_dimension_numbers<[1], [1], [0], [0], [0, 0, 1, 0], [], []>} : vector<16x256xbf16>, vector<128x256xbf16>, vector<16x128xf32> -> vector<16x128xf32>
    %cst_100 = arith.constant 0.000000e+00 : f32
    %181 = vector.broadcast %cst_100 : f32 to vector<16x128xf32>
    %182 = arith.subf %181, %177 : vector<16x128xf32>
    %183 = math.exp %182 : vector<16x128xf32>
    %cst_101 = arith.constant 1.000000e+00 : f32
    %184 = vector.broadcast %cst_101 : f32 to vector<16x128xf32>
    %185 = arith.addf %184, %183 : vector<16x128xf32>
    %186 = tpu.reciprocal %185 {approx = true} : vector<16x128xf32> -> vector<16x128xf32>
    %187 = arith.mulf %177, %186 : vector<16x128xf32>
    %188 = arith.mulf %187, %180 : vector<16x128xf32>
    %189 = arith.truncf %188 : vector<16x128xf32> to vector<16x128xbf16>
    %c6_102 = arith.constant 6 : index
    %c0_103 = arith.constant 0 : index
    %c0_104 = arith.constant 0 : index
    %190 = vector.load %arg5[%c6_102, %c0_103, %c0_104] : memref<8x256x128xbf16, #tpu.memory_space<vmem>>, vector<1x256x128xbf16>
    %191 = vector.shape_cast %190 : vector<1x256x128xbf16> to vector<256x128xbf16>
    %cst_105 = arith.constant dense<0.000000e+00> : vector<16x256xf32>
    %192 = tpu.matmul %189, %191, %cst_105 {dimension_numbers = #tpu.dot_dimension_numbers<[1], [1], [0], [0], [0, 0, 1, 0], [], []>} : vector<16x128xbf16>, vector<256x128xbf16>, vector<16x256xf32> -> vector<16x256xf32>
    %193 = vector.extract_strided_slice %41 {offsets = [0, 6], sizes = [16, 1], strides = [1, 1]} : vector<16x8xf32> to vector<16x1xf32>
    %194 = vector.broadcast %193 : vector<16x1xf32> to vector<16x256xf32>
    %195 = arith.mulf %194, %192 : vector<16x256xf32>
    %196 = arith.addf %174, %195 : vector<16x256xf32>
    %c7 = arith.constant 7 : index
    %c0_106 = arith.constant 0 : index
    %c0_107 = arith.constant 0 : index
    %197 = vector.load %arg3[%c7, %c0_106, %c0_107] : memref<8x128x256xbf16, #tpu.memory_space<vmem>>, vector<1x128x256xbf16>
    %198 = vector.shape_cast %197 : vector<1x128x256xbf16> to vector<128x256xbf16>
    %cst_108 = arith.constant dense<0.000000e+00> : vector<16x128xf32>
    %199 = tpu.matmul %1, %198, %cst_108 {dimension_numbers = #tpu.dot_dimension_numbers<[1], [1], [0], [0], [0, 0, 1, 0], [], []>} : vector<16x256xbf16>, vector<128x256xbf16>, vector<16x128xf32> -> vector<16x128xf32>
    %c7_109 = arith.constant 7 : index
    %c0_110 = arith.constant 0 : index
    %c0_111 = arith.constant 0 : index
    %200 = vector.load %arg4[%c7_109, %c0_110, %c0_111] : memref<8x128x256xbf16, #tpu.memory_space<vmem>>, vector<1x128x256xbf16>
    %201 = vector.shape_cast %200 : vector<1x128x256xbf16> to vector<128x256xbf16>
    %cst_112 = arith.constant dense<0.000000e+00> : vector<16x128xf32>
    %202 = tpu.matmul %1, %201, %cst_112 {dimension_numbers = #tpu.dot_dimension_numbers<[1], [1], [0], [0], [0, 0, 1, 0], [], []>} : vector<16x256xbf16>, vector<128x256xbf16>, vector<16x128xf32> -> vector<16x128xf32>
    %cst_113 = arith.constant 0.000000e+00 : f32
    %203 = vector.broadcast %cst_113 : f32 to vector<16x128xf32>
    %204 = arith.subf %203, %199 : vector<16x128xf32>
    %205 = math.exp %204 : vector<16x128xf32>
    %cst_114 = arith.constant 1.000000e+00 : f32
    %206 = vector.broadcast %cst_114 : f32 to vector<16x128xf32>
    %207 = arith.addf %206, %205 : vector<16x128xf32>
    %208 = tpu.reciprocal %207 {approx = true} : vector<16x128xf32> -> vector<16x128xf32>
    %209 = arith.mulf %199, %208 : vector<16x128xf32>
    %210 = arith.mulf %209, %202 : vector<16x128xf32>
    %211 = arith.truncf %210 : vector<16x128xf32> to vector<16x128xbf16>
    %c7_115 = arith.constant 7 : index
    %c0_116 = arith.constant 0 : index
    %c0_117 = arith.constant 0 : index
    %212 = vector.load %arg5[%c7_115, %c0_116, %c0_117] : memref<8x256x128xbf16, #tpu.memory_space<vmem>>, vector<1x256x128xbf16>
    %213 = vector.shape_cast %212 : vector<1x256x128xbf16> to vector<256x128xbf16>
    %cst_118 = arith.constant dense<0.000000e+00> : vector<16x256xf32>
    %214 = tpu.matmul %211, %213, %cst_118 {dimension_numbers = #tpu.dot_dimension_numbers<[1], [1], [0], [0], [0, 0, 1, 0], [], []>} : vector<16x128xbf16>, vector<256x128xbf16>, vector<16x256xf32> -> vector<16x256xf32>
    %215 = vector.extract_strided_slice %41 {offsets = [0, 7], sizes = [16, 1], strides = [1, 1]} : vector<16x8xf32> to vector<16x1xf32>
    %216 = vector.broadcast %215 : vector<16x1xf32> to vector<16x256xf32>
    %217 = arith.mulf %216, %214 : vector<16x256xf32>
    %218 = arith.addf %196, %217 : vector<16x256xf32>
    %c0_119 = arith.constant 0 : index
    %c0_120 = arith.constant 0 : index
    %219 = vector.load %arg6[%c0_119, %c0_120] : memref<16x256xf32, #tpu.memory_space<vmem>>, vector<16x256xf32>
    tpu.vector_store %arg6[%c0_119, %c0_120], %218 {strides = array<i32>} : memref<16x256xf32, #tpu.memory_space<vmem>>, vector<16x256xf32>,
    return
  }
  func.func @transform_0(%arg0: i32) -> (i32, i32) {
    %c0_i32 = arith.constant 0 : i32
    %c0_i32_0 = arith.constant 0 : i32
    return %arg0, %c0_i32 : i32, i32
  }
  func.func @transform_1(%arg0: i32) -> (i32, i32) {
    %c0_i32 = arith.constant 0 : i32
    %c0_i32_0 = arith.constant 0 : i32
    %c0_i32_1 = arith.constant 0 : i32
    return %c0_i32, %c0_i32_0 : i32, i32
  }
  func.func @transform_2(%arg0: i32) -> (i32, i32, i32) {
    %c0_i32 = arith.constant 0 : i32
    %c0_i32_0 = arith.constant 0 : i32
    %c0_i32_1 = arith.constant 0 : i32
    %c0_i32_2 = arith.constant 0 : i32
    return %c0_i32, %c0_i32_0, %c0_i32_1 : i32, i32, i32
  }
  func.func @transform_3(%arg0: i32) -> (i32, i32, i32) {
    %c0_i32 = arith.constant 0 : i32
    %c0_i32_0 = arith.constant 0 : i32
    %c0_i32_1 = arith.constant 0 : i32
    %c0_i32_2 = arith.constant 0 : i32
    return %c0_i32, %c0_i32_0, %c0_i32_1 : i32, i32, i32
  }
  func.func @transform_4(%arg0: i32) -> (i32, i32, i32) {
    %c0_i32 = arith.constant 0 : i32
    %c0_i32_0 = arith.constant 0 : i32
    %c0_i32_1 = arith.constant 0 : i32
    %c0_i32_2 = arith.constant 0 : i32
    return %c0_i32, %c0_i32_0, %c0_i32_1 : i32, i32, i32
  }
  func.func @transform_5(%arg0: i32) -> (i32, i32) {
    %c0_i32 = arith.constant 0 : i32
    %c0_i32_0 = arith.constant 0 : i32
    return %arg0, %c0_i32 : i32, i32
  }
}

</mosaic_0001>

<bundles_post_ra>
// kernel: tpu_custom_call.1
= control target key start
LH: loop header
LB: loop body
LE: loop exit
PB: predicated region body
PF: predicated region fallthrough
CT: control target
= control target key end

     0   :  { %10 = vsyncpa [#allocation3], 0  ;;  %s6984_s0 = inlined_call_operand.hbm [shape: f32[32,256], index: 0, kind: input, shape index: {}]   ;;  %s6985_s1 = inlined_call_operand.hbm [shape: f32[8,256], index: 1, kind: input, shape index: {}]   ;;  %s6986_s2 = inlined_call_operand.hbm [shape: bf16[8,128,256], index: 2, kind: input, shape index: {}]   ;;  %s6987_s3 = inlined_call_operand.hbm [shape: bf16[8,128,256], index: 3, kind: input, shape index: {}]   ;;  %s6988_s4 = inlined_call_operand.hbm [shape: bf16[8,256,128], index: 4, kind: input, shape index: {}]   ;;  %s6989_s5 = inlined_call_operand.hbm [shape: f32[32,256], index: 5, kind: output, shape index: {}]  }
   0x1   :  { %12 = vsyncpa [#allocation3 + $0x1], 0 }
   0x2   :  { %13 = vsyncpa [#allocation6], 0 }
   0x3   :  { %14 = vsyncpa [#allocation9], 0 }
   0x4   :  { %15 = vsyncpa [#allocation4], 0 }
   0x5   :  { %17 = vsyncpa [#allocation4 + $0x1], 0  ;;  %s6531_s18 = smov 0   ;;  %s6533_s19 = smov 0  }
   0x6   :  { %s6535_s20 = smov 0   ;;  %s6537_s21 = smov 0  }
   0x7 LB: > { %s6552_s22 = sadd.s32 4294967295, %s6479_s21   ;;  %s4116_s23 = sadd.s32 4294967294, %s6479_s21   ;;  %s6479_s21 = sphi %s6537_s21, %s7000_s21   ;;  %s6475_s20 = sphi %s6535_s20, %s6999_s20   ;;  %s6471_s19 = sphi %s6533_s19, %s6998_s19   ;;  %s6467_s18 = sphi %s6531_s18, %s6997_s18  }
   0x8   : > { %p43_p0 = scmp.ne.s32.totalorder %s6471_s19, %s6467_s18  ;;  %p44_p1 = scmp.eq.s32.totalorder %s6552_s22, 0 }
   0x9   : > { %p151_p2 = scmp.eq.s32.totalorder %s6552_s22, 1  ;;  %p157_p3 = scmp.eq.s32.totalorder %s4116_s23, 1 }
   0xa   : > { %p6561_p4 = por %p44_p1, %p43_p0  ;;  %p4117_p5 = scmp.ge.s32.totalorder %s6479_s21, 1 }
   0xb   : > { %p6566_p6 = por %p157_p3, %p43_p0  ;;  %p164_p7 = scmp.lt.s32.totalorder %s6479_s21, 3 }
   0xc   : > { %s176_s28 = sshll.u32 %s6985_s1, 4  ;;  %s6481_s30 = smov [#allocation5]   ;;  %s177_s28 = int_to_ptr.hbm [resolvable:$true] %s176_s28 }
   0xd   : > { %p6574_p8 = pnand %p4117_p5, %p164_p7  ;;  %s178_s6 = sshll.u32 %s6481_s30, 4  ;;  %s179_s6 = int_to_ptr.vmem [resolvable:$true] %s178_s6 }
   0xe   : > { %s201_s10 = sshll.u32 %s6987_s3, 4  ;;  %s6482_s11 = smov [#allocation8]   ;;  %s202_s10 = int_to_ptr.hbm [resolvable:$true] %s201_s10 }
   0xf   : > { %p6084_p10 = pneg %p6574_p8  ;;  %s203_s12 = sshll.u32 %s6482_s11, 4  ;;  %s204_s12 = int_to_ptr.vmem [resolvable:$true] %s203_s12 }
  0x10   : > { %s187_s15 = sshll.u32 %s6986_s2, 4  ;;  %s6483_s16 = smov 128   ;;  %s188_s15 = int_to_ptr.hbm [resolvable:$true] %s187_s15 }
  0x11   : > { %p6583_p11 = pnand %p6084_p10, %p44_p1  ;;  %s6484_s17 = smov 8  }
  0x12   : > { %s215_s27 = sshll.u32 %s6988_s4, 4  ;;  %s6487_s9 = smov 64   ;;  %s216_s27 = int_to_ptr.hbm [resolvable:$true] %s215_s27 }
  0x13   : > { %6087 = dma.hbm_to_vmem [thread:$0]  (!%p6583_p11), %s177_s28, 256, %s179_s6, [#allocation6]  }
  0x14   : > { %6093 = dma.hbm_to_vmem [thread:$0]  (!%p6583_p11), %s202_s10, 16384, %s204_s12, [#allocation9], %s6483_s16, %s6483_s16, %s6484_s17  }
  0x15   : > { %s6485_s28 = smov [#allocation7]   ;;  %s6486_s6 = smov [#allocation10]  }
  0x16   : > { %s189_s30 = sshll.u32 %s6485_s28, 4  ;;  %s217_s8 = sshll.u32 %s6486_s6, 4  ;;  %s190_s30 = int_to_ptr.vmem [resolvable:$true] %s189_s30  ;;  %s218_s8 = int_to_ptr.vmem [resolvable:$true] %s217_s8 }
  0x17   : > { %6090 = dma.hbm_to_vmem [thread:$0]  (!%p6583_p11), %s188_s15, 16384, %s190_s30, [#allocation6], %s6483_s16, %s6483_s16, %s6484_s17  }
  0x18   : > { %s6488_s10 = smov 4   ;;  %s6605_s11 = sadd.s32 1, %s6479_s21  }
  0x19   : > { %6096 = dma.hbm_to_vmem [thread:$0]  (!%p6583_p11), %s216_s27, 16384, %s218_s8, [#allocation9], %s6487_s9, %s6487_s9, %s6488_s10  }
  0x1a   : > { %s27_s12 = ssub.s32 %s6479_s21, %s6605_s11  ;;  %s30_s13 = sadd.s32 1, %s6475_s20 }
  0x1b   : > { %p28_p12 = scmp.eq.s32.totalorder %s27_s12, 0  ;;  %p37_p13 = scmp.ne.s32.totalorder %s6475_s20, %s6471_s19 }
  0x1c   : > { %p38_p0 = scmp.eq.s32.totalorder %s6479_s21, 0  ;;  %p6109_p7 = scmp.lt.s32.totalorder %s6479_s21, 2 }
  0x1d   : > { %s6614_s14 = scalar_select %p28_p12, %s6475_s20, %s30_s13  }
  0x1e   : > { %p39_p3 = por %p38_p0, %p37_p13  ;;  %p6618_p5 = por %p151_p2, %p37_p13 }
  0x1f   : > { %s231_s16 = sand.u32 1, %s6475_s20   ;;  %s5677_s17 = sshll.u32 %s6479_s21, 5 }
  0x20   : > { %s4123_s7 = sshll.u32 %s231_s16, 5  ;;  %s241_s27 = scalar_lea.hbm %s6984_s0, %s5677_s17 }
  0x21   : > { %s235_s28 = scalar_lea.vmem [#allocation2], %s4123_s7  ;;  %s242_s6 = sshll.u32 %s241_s27, 4  ;;  %s243_s6 = int_to_ptr.hbm [resolvable:$true] %s242_s6 }
  0x22   : > { %s244_s30 = sshll.u32 %s235_s28, 4  ;;  %p6628_p10 = pnand %p6109_p7, %p39_p3  ;;  %s245_s30 = int_to_ptr.vmem [resolvable:$true] %s244_s30 }
  0x23   : > { %s232_s9 = scalar_lea.sflag [#allocation3], %s231_s16  ;;  %s6375_s10 = sshra.s32 %s243_s6, 4  ;;  %s6376_s10 = int_to_ptr.hbm [resolvable:$true] %s6375_s10 }
  0x24   : > { %s6377_s12 = scalar_lea.hbm %s6376_s10, 32  ;;  %p6379_p11 = pneg %p6628_p10 }
  0x25   : > { %p6378_p2 = scmp.ne.s32.totalorder %s6376_s10, %s6377_s12  ;;  %s6382_s17 = scalar_lea.hbm %s6984_s0, 64 }
  0x26   : > { %p6383_p0 = scmp.lt.s32.totalorder %s6376_s10, %s6984_s0  ;;  %p6384_p3 = scmp.lt.s32.totalorder %s6382_s17, %s6377_s12 }
  0x27   : > { %p6380_p12 = pnand %p6379_p11, %p6378_p2 }
  0x28   : > { %p6385_p7 = por %p6384_p3, %p6383_p0 }
  0x29   : > { %p6381_p13 = pneg %p6380_p12 }
  0x2b   : > { %p6386_p9 = pnand %p6385_p7, %p6381_p13 }
  0x2d   : > { %6389 = shalt.err (!%p6386_p9)
}
  0x2e   : > { %s6489_s16 = smov 256   ;;  %s6490_s27 = smov 16  }
  0x2f   : > { %6100 = dma.hbm_to_vmem [thread:$0]  (!%p6628_p10), %s243_s6, 512, %s245_s30, %s232_s9, %s6489_s16, %s6489_s16, %s6490_s27  }
  0x30   : > { %256 = sbr.rel (%p6574_p8) target bundleno = 1553 (0x611), region = 40  ;;  %s6645_s28 = sand.u32 (!%p6574_p8), 1, %s6471_s19  }
  0x31   : > { %s4128_s10 = sshll.u32 (!%p6574_p8), %s6645_s28, 5  ;;  %s259_s12 = scalar_lea.sflag (!%p6574_p8), [#allocation3], %s6645_s28 }
  0x32   : > { %s6651_s13 = scalar_lea.vmem (!%p6574_p8), [#allocation2], %s4128_s10 }
  0x35   : > { %6450 = dma.done.wait (%p6561_p4), %s259_s12, 512  }
  0x36   : > { %6452 = vsyncadd (%p6561_p4), %s259_s12, 4294966784 }
  0x37   : > { %6454 = dma.done.wait (%p44_p1), [#allocation6], 16640  }
  0x38   : > { %6456 = vsyncadd (%p44_p1), [#allocation6], 4294950656 }
  0x39   : > { %6458 = dma.done.wait (%p44_p1), [#allocation9], 32768  }
  0x3a   : > { %6460 = vsyncadd (%p44_p1), [#allocation9], 4294934528  ;;  %v318_v0 = vld [vmem:[#allocation5] sm:$0xff]  ;;  %v319_v1 = vld [vmem:[#allocation5 + $0x8] sm:$0xff]  ;;  %vm366_vm0 = vcmask 64512   ;;  %s6063_s24 = sshll.u32 %s6552_s22, 5 }
  0x3b   : > { %v4192_v2 = vld [vmem:[#allocation7 + $0x70] sm:$0xf]  ;;  %335 = vmatpush.xpose.msra.mxu0 %v318_v0  ;;  %358 = vmatpush.xpose.msra.mxu1 %v319_v1  ;;  %v5693_v3 = vld [vmem:[#allocation7 + $0x74] sm:$0xf0]  ;;  %v5692_v4 = vld [vmem:[#allocation7 + $0x74] sm:$0xf]  ;;  %s4001_s8 = scalar_lea.hbm %s6989_s5, %s6063_s24 }
  0x3c   : > { %v4194_v5 = vld [vmem:[#allocation7 + $0x78] sm:$0xf0]  ;;  %v4193_v6 = vor.u32 %v5693_v3, %v4192_v2  ;;  %v6666_v8 = vld [vmem:[%s6651_s13] sm:$0xff]  ;;  %v4184_v10 = vld [vmem:[#allocation7 + $0x60] sm:$0xf]  ;;  %s309_s29 = scalar_lea.vmem [#allocation11], %s4128_s10 }
  0x3d   : > { %v4197_v7 = vor.u32 %v5692_v4, %v4194_v5  ;;  %v6669_v9 = vld [vmem:[%s6651_s13 + $0x8] sm:$0xff]  ;;  %v5691_v11 = vld [vmem:[#allocation7 + $0x64] sm:$0xf0]  ;;  %v5690_v12 = vld [vmem:[#allocation7 + $0x64] sm:$0xf]  ;;  %s4002_s22 = sshll.u32 %s309_s29, 4  ;;  %s4003_s22 = int_to_ptr.vmem [resolvable:$true] %s4002_s22 }
  0x3e   : > { %577 = vmatpush.bf16.xpose.msra.mxu2 %v4193_v6  ;;  %336 = vmatmul.f32.vlgmr.msra.gmra.mxu0 %v6666_v8  ;;  %v4186_v13 = vld [vmem:[#allocation7 + $0x68] sm:$0xf0]  ;;  %v4256_v14 = vld [vmem:[#allocation8 + $0x70] sm:$0xf]  ;;  %v5709_v15 = vld [vmem:[#allocation8 + $0x74] sm:$0xf0]  ;;  %v4185_v19 = vor.u32 %v5691_v11, %v4184_v10 }
  0x3f   : > { %591 = vmatpush.bf16.xpose.msra.mxu3 %v4197_v7  ;;  %359 = vmatmul.f32.vlgmr.msra.gmra.mxu1 %v6669_v9  ;;  %v5708_v16 = vld [vmem:[#allocation8 + $0x74] sm:$0xf]  ;;  %v4257_v17 = vor.u32 %v5709_v15, %v4256_v14  ;;  %v4258_v18 = vld [vmem:[#allocation8 + $0x78] sm:$0xf0]  ;;  %v4189_v20 = vor.u32 %v5690_v12, %v4186_v13  ;;  %v6674_v22 = vld [vmem:[%s6651_s13 + $0x10] sm:$0xff]  ;;  %s4004_s9 = sshll.u32 %s4001_s8, 4  ;;  %s4005_s9 = int_to_ptr.hbm [resolvable:$true] %s4004_s9 }
  0x40   : > { %v4261_v21 = vor.u32 %v5708_v16, %v4258_v18  ;;  %v6677_v23 = vld [vmem:[%s6651_s13 + $0x18] sm:$0xff]  ;;  %v4248_v24 = vld [vmem:[#allocation8 + $0x60] sm:$0xf]  ;;  %v5706_v26 = vld [vmem:[#allocation8 + $0x64] sm:$0xf]  ;;  %s3989_s7 = scalar_lea.sflag [#allocation4], %s6645_s28 }
  0x41   : > { %701 = vmatpush.bf16.xpose.msrb.mxu0 %v4257_v17  ;;  %v5707_v25 = vld [vmem:[#allocation8 + $0x64] sm:$0xf0]  ;;  %v4250_v27 = vld [vmem:[#allocation8 + $0x68] sm:$0xf0]  ;;  %v4176_v28 = vld [vmem:[#allocation7 + $0x50] sm:$0xf] }
  0x42   : > { %715 = vmatpush.bf16.xpose.msrb.mxu1 %v4261_v21  ;;  %v5689_v29 = vld [vmem:[#allocation7 + $0x54] sm:$0xf0]  ;;  %v5688_v30 = vld [vmem:[#allocation7 + $0x54] sm:$0xf]  ;;  %v4178_v31 = vld [vmem:[#allocation7 + $0x58] sm:$0xf0]  ;;  %v4249_v32 = vor.u32 %v5707_v25, %v4248_v24  ;;  %v4253_v33 = vor.u32 %v5706_v26, %v4250_v27 }
  0x43   : > { %v4177_v34 = vor.u32 %v5689_v29, %v4176_v28  ;;  %v4181_v35 = vor.u32 %v5688_v30, %v4178_v31  ;;  %v4240_v36 = vld [vmem:[#allocation8 + $0x50] sm:$0xf]  ;;  %v5705_v37 = vld [vmem:[#allocation8 + $0x54] sm:$0xf0]  ;;  %v5704_v38 = vld [vmem:[#allocation8 + $0x54] sm:$0xf] }
  0x44   : > { %v4242_v39 = vld [vmem:[#allocation8 + $0x58] sm:$0xf0]  ;;  %v4168_v40 = vld [vmem:[#allocation7 + $0x40] sm:$0xf]  ;;  %v5687_v41 = vld [vmem:[#allocation7 + $0x44] sm:$0xf0]  ;;  %v4241_v44 = vor.u32 %v5705_v37, %v4240_v36 }
  0x45   : > { %v5686_v42 = vld [vmem:[#allocation7 + $0x44] sm:$0xf]  ;;  %v4170_v43 = vld [vmem:[#allocation7 + $0x48] sm:$0xf0]  ;;  %v4245_v45 = vor.u32 %v5704_v38, %v4242_v39  ;;  %v4169_v46 = vor.u32 %v5687_v41, %v4168_v40  ;;  %v4232_v48 = vld [vmem:[#allocation8 + $0x40] sm:$0xf] }
  0x46   : > { %578 = vmatpush.bf16.xpose.msra.mxu2 %v4185_v19  ;;  %339 = vmatmul.f32.gmra.mxu0 %v6674_v22  ;;  %v4173_v47 = vor.u32 %v5686_v42, %v4170_v43  ;;  %v5703_v49 = vld [vmem:[#allocation8 + $0x44] sm:$0xf0]  ;;  %v5702_v50 = vld [vmem:[#allocation8 + $0x44] sm:$0xf]  ;;  %v4234_v51 = vld [vmem:[#allocation8 + $0x48] sm:$0xf0]  ;;  %v6683_v42 = vpack.c.bf16 %v6674_v22, %v6666_v8  ;;  %v6687_v43 = vpack.c.bf16 %v6677_v23, %v6669_v9 }
  0x47   : > { %592 = vmatpush.bf16.xpose.msra.mxu3 %v4189_v20  ;;  %362 = vmatmul.f32.gmra.mxu1 %v6677_v23  ;;  %v4160_v52 = vld [vmem:[#allocation7 + $0x30] sm:$0xf]  ;;  %v5685_v53 = vld [vmem:[#allocation7 + $0x34] sm:$0xf0]  ;;  %v5684_v54 = vld [vmem:[#allocation7 + $0x34] sm:$0xf]  ;;  %v4233_v56 = vor.u32 %v5703_v49, %v4232_v48  ;;  %v4237_v57 = vor.u32 %v5702_v50, %v4234_v51 }
  0x48   : > { %v4162_v55 = vld [vmem:[#allocation7 + $0x38] sm:$0xf0]  ;;  %v4161_v58 = vor.u32 %v5685_v53, %v4160_v52  ;;  %v4224_v60 = vld [vmem:[#allocation8 + $0x30] sm:$0xf]  ;;  %v5701_v61 = vld [vmem:[#allocation8 + $0x34] sm:$0xf0] }
  0x49   : > { %702 = vmatpush.bf16.xpose.msrb.mxu0 %v4249_v32  ;;  %v4165_v59 = vor.u32 %v5684_v54, %v4162_v55  ;;  %v5700_v62 = vld [vmem:[#allocation8 + $0x34] sm:$0xf]  ;;  %v4226_v63 = vld [vmem:[#allocation8 + $0x38] sm:$0xf0]  ;;  %v4152_v0 = vld [vmem:[#allocation7 + $0x20] sm:$0xf]  ;;  %v4225_v4 = vor.u32 %v5701_v61, %v4224_v60 }
  0x4a   : > { %716 = vmatpush.bf16.xpose.msrb.mxu1 %v4253_v33  ;;  %v5683_v1 = vld [vmem:[#allocation7 + $0x24] sm:$0xf0]  ;;  %v5682_v2 = vld [vmem:[#allocation7 + $0x24] sm:$0xf]  ;;  %v4154_v3 = vld [vmem:[#allocation7 + $0x28] sm:$0xf0]  ;;  %v4229_v5 = vor.u32 %v5700_v62, %v4226_v63 }
  0x4b   : > { %v4153_v6 = vor.u32 %v5683_v1, %v4152_v0  ;;  %v4157_v7 = vor.u32 %v5682_v2, %v4154_v3  ;;  %v4216_v10 = vld [vmem:[#allocation8 + $0x20] sm:$0xf]  ;;  %v5699_v11 = vld [vmem:[#allocation8 + $0x24] sm:$0xf0]  ;;  %v5698_v12 = vld [vmem:[#allocation8 + $0x24] sm:$0xf] }
  0x4c   : > { %v4218_v13 = vld [vmem:[#allocation8 + $0x28] sm:$0xf0]  ;;  %v4144_v14 = vld [vmem:[#allocation7 + $0x10] sm:$0xf]  ;;  %v5681_v15 = vld [vmem:[#allocation7 + $0x14] sm:$0xf0]  ;;  %v4217_v18 = vor.u32 %v5699_v11, %v4216_v10 }
  0x4d   : > { %v5680_v16 = vld [vmem:[#allocation7 + $0x14] sm:$0xf]  ;;  %v4146_v17 = vld [vmem:[#allocation7 + $0x18] sm:$0xf0]  ;;  %v4221_v19 = vor.u32 %v5698_v12, %v4218_v13  ;;  %v4145_v20 = vor.u32 %v5681_v15, %v4144_v14  ;;  %v4208_v24 = vld [vmem:[#allocation8 + $0x10] sm:$0xf] }
  0x4e   : > { %579 = vmatpush.bf16.xpose.msra.mxu2 %v4177_v34  ;;  %v4149_v21 = vor.u32 %v5680_v16, %v4146_v17  ;;  %v5697_v25 = vld [vmem:[#allocation8 + $0x14] sm:$0xf0]  ;;  %v5696_v26 = vld [vmem:[#allocation8 + $0x14] sm:$0xf]  ;;  %v4210_v27 = vld [vmem:[#allocation8 + $0x18] sm:$0xf0] }
  0x4f   : > { %593 = vmatpush.bf16.xpose.msra.mxu3 %v4181_v35  ;;  %v4136_v28 = vld [vmem:[#allocation7] sm:$0xf]  ;;  %v5679_v29 = vld [vmem:[#allocation7 + $0x4] sm:$0xf0]  ;;  %v5678_v30 = vld [vmem:[#allocation7 + $0x4] sm:$0xf]  ;;  %v4209_v32 = vor.u32 %v5697_v25, %v4208_v24  ;;  %v4213_v33 = vor.u32 %v5696_v26, %v4210_v27 }
  0x50   : > { %v4138_v31 = vld [vmem:[#allocation7 + $0x8] sm:$0xf0]  ;;  %v4137_v34 = vor.u32 %v5679_v29, %v4136_v28  ;;  %v4200_v36 = vld [vmem:[#allocation8] sm:$0xf]  ;;  %v5695_v37 = vld [vmem:[#allocation8 + $0x4] sm:$0xf0] }
  0x51   : > { %703 = vmatpush.bf16.xpose.msrb.mxu0 %v4241_v44  ;;  %v4141_v35 = vor.u32 %v5678_v30, %v4138_v31  ;;  %v5694_v38 = vld [vmem:[#allocation8 + $0x4] sm:$0xf]  ;;  %v4202_v39 = vld [vmem:[#allocation8 + $0x8] sm:$0xf0]  ;;  %v4201_v40 = vor.u32 %v5695_v37, %v4200_v36  ;;  %v5717_v44 = vld [vmem:[#allocation10 + $0x38] sm:$0xff]  ;;  %s6419_s17 = sshra.s32 %s4005_s9, 4  ;;  %s6420_s17 = int_to_ptr.hbm [resolvable:$true] %s6419_s17 }
  0x52   : > { %717 = vmatpush.bf16.xpose.msrb.mxu1 %v4245_v45  ;;  %v4205_v41 = vor.u32 %v5694_v38, %v4202_v39  ;;  %v5725_v45 = vld [vmem:[#allocation10 + $0x78] sm:$0xff]  ;;  %v5716_v8 = vld [vmem:[#allocation10 + $0x30] sm:$0xff]  ;;  %v5715_v50 = vld [vmem:[#allocation10 + $0x28] sm:$0xff]  ;;  %s6421_s23 = scalar_lea.hbm %s6420_s17, 32  ;;  %s6425_s27 = scalar_lea.hbm %s6989_s5, 64 }
  0x53   : > { %v5724_v22 = vld [vmem:[#allocation10 + $0x70] sm:$0xff]  ;;  %v5741_v23 = vld [vmem:[#allocation7 + $0xf4] sm:$0xf0]  ;;  %v4386_v48 = vld [vmem:[#allocation7 + $0xf8] sm:$0xf0]  ;;  %p6422_p1 = scmp.ne.s32.totalorder %s6420_s17, %s6421_s23  ;;  %p6426_p9 = scmp.lt.s32.totalorder %s6420_s17, %s6989_s5 }
  0x54   : > { %v4384_v9 = vld [vmem:[#allocation7 + $0xf0] sm:$0xf]  ;;  %v5723_v51 = vld [vmem:[#allocation10 + $0x68] sm:$0xff]  ;;  %v4376_v52 = vld [vmem:[#allocation7 + $0xe0] sm:$0xf]  ;;  %p6427_p10 = scmp.lt.s32.totalorder %s6425_s27, %s6421_s23 }
  0x55   : > { %v5739_v53 = vld [vmem:[#allocation7 + $0xe4] sm:$0xf0]  ;;  %v5738_v54 = vld [vmem:[#allocation7 + $0xe4] sm:$0xf]  ;;  %v4378_v55 = vld [vmem:[#allocation7 + $0xe8] sm:$0xf0]  ;;  %p6423_p4 = pnand %p6422_p1, %p6618_p5 }
  0x56   : > { %580 = vmatpush.bf16.xpose.msra.mxu2 %v4169_v46  ;;  %v5740_v46 = vld [vmem:[#allocation7 + $0xf4] sm:$0xf]  ;;  %v4368_v60 = vld [vmem:[#allocation7 + $0xd0] sm:$0xf]  ;;  %v5737_v61 = vld [vmem:[#allocation7 + $0xd4] sm:$0xf0]  ;;  %p6428_p2 = por %p6427_p10, %p6426_p9 }
  0x57   : > { %594 = vmatpush.bf16.xpose.msra.mxu3 %v4173_v47  ;;  %v4385_v47 = vor.u32 %v5741_v23, %v4384_v9  ;;  %v4389_v49 = vor.u32 %v5740_v46, %v4386_v48  ;;  %v5736_v62 = vld [vmem:[#allocation7 + $0xd4] sm:$0xf]  ;;  %v4370_v63 = vld [vmem:[#allocation7 + $0xd8] sm:$0xf0]  ;;  %v4369_v0 = vor.u32 %v5737_v61, %v4368_v60  ;;  %v5734_v10 = vld [vmem:[#allocation7 + $0xc4] sm:$0xf]  ;;  %p6424_p8 = pneg %p6423_p4 }
  0x58   : > { %v4373_v1 = vor.u32 %v5736_v62, %v4370_v63  ;;  %v5713_v2 = vld [vmem:[#allocation10 + $0x18] sm:$0xff]  ;;  %v4362_v11 = vld [vmem:[#allocation7 + $0xc8] sm:$0xf0]  ;;  %v5712_v16 = vld [vmem:[#allocation10 + $0x10] sm:$0xff] }
  0x59   : > { %704 = vmatpush.bf16.xpose.msrb.mxu0 %v4233_v56  ;;  %v4377_v56 = vor.u32 %v5739_v53, %v4376_v52  ;;  %v5721_v3 = vld [vmem:[#allocation10 + $0x58] sm:$0xff]  ;;  %v4365_v15 = vor.u32 %v5734_v10, %v4362_v11  ;;  %v5720_v17 = vld [vmem:[#allocation10 + $0x50] sm:$0xff]  ;;  %v5711_v30 = vld [vmem:[#allocation10 + $0x8] sm:$0xff]  ;;  %p6429_p11 = pnand %p6428_p2, %p6424_p8 }
  0x5a   : > { %718 = vmatpush.bf16.xpose.msrb.mxu1 %v4237_v57  ;;  %v4381_v57 = vor.u32 %v5738_v54, %v4378_v55  ;;  %v5732_v24 = vld [vmem:[#allocation7 + $0xb4] sm:$0xf]  ;;  %v4354_v25 = vld [vmem:[#allocation7 + $0xb8] sm:$0xf0]  ;;  %v5719_v31 = vld [vmem:[#allocation10 + $0x48] sm:$0xff] }
  0x5b   : > { %v4357_v29 = vor.u32 %v5732_v24, %v4354_v25  ;;  %v4448_v37 = vld [vmem:[#allocation8 + $0xf0] sm:$0xf]  ;;  %v5757_v39 = vld [vmem:[#allocation8 + $0xf4] sm:$0xf0]  ;;  %v5728_v46 = vld [vmem:[#allocation7 + $0x94] sm:$0xf] }
  0x5c   : > { %v4336_v9 = vld [vmem:[#allocation7 + $0x90] sm:$0xf]  ;;  %v5729_v23 = vld [vmem:[#allocation7 + $0x94] sm:$0xf0]  ;;  %v5754_v52 = vld [vmem:[#allocation8 + $0xe4] sm:$0xf] }
  0x5d   : > { %v4337_v48 = vor.u32 %v5729_v23, %v4336_v9  ;;  %v4442_v53 = vld [vmem:[#allocation8 + $0xe8] sm:$0xf0]  ;;  %v4432_v62 = vld [vmem:[#allocation8 + $0xd0] sm:$0xf]  ;;  %v5753_v63 = vld [vmem:[#allocation8 + $0xd4] sm:$0xf0] }
  0x5e   : > { %581 = vmatpush.bf16.xpose.msra.mxu2 %v4161_v58  ;;  %v5714_v58 = vld [vmem:[#allocation10 + $0x20] sm:$0xff]  ;;  %v4445_v55 = vor.u32 %v5754_v52, %v4442_v53  ;;  %v4330_v60 = vld [vmem:[#allocation7 + $0x88] sm:$0xf0] }
  0x5f   : > { %595 = vmatpush.bf16.xpose.msra.mxu3 %v4165_v59  ;;  %v5722_v59 = vld [vmem:[#allocation10 + $0x60] sm:$0xff]  ;;  %v4426_v10 = vld [vmem:[#allocation8 + $0xc8] sm:$0xf0] }
  0x60   : > { %v4410_v25 = vld [vmem:[#allocation8 + $0xa8] sm:$0xf0] }
  0x61   : > { %705 = vmatpush.bf16.xpose.msrb.mxu0 %v4225_v4  ;;  %v4360_v4 = vld [vmem:[#allocation7 + $0xc0] sm:$0xf] }
  0x62   : > { %719 = vmatpush.bf16.xpose.msrb.mxu1 %v4229_v5  ;;  %v5735_v5 = vld [vmem:[#allocation7 + $0xc4] sm:$0xf0] }
  0x63   : > { %v4361_v13 = vor.u32 %v5735_v5, %v4360_v4  ;;  %v4424_v4 = vld [vmem:[#allocation8 + $0xc0] sm:$0xf]  ;;  %v5751_v5 = vld [vmem:[#allocation8 + $0xc4] sm:$0xf0] }
  0x66   : > { %582 = vmatpush.bf16.xpose.msra.mxu2 %v4153_v6 }
  0x67   : > { %596 = vmatpush.bf16.xpose.msra.mxu3 %v4157_v7 }
  0x69   : > { %706 = vmatpush.bf16.xpose.msrb.mxu0 %v4217_v18  ;;  %v4352_v18 = vld [vmem:[#allocation7 + $0xb0] sm:$0xf] }
  0x6a   : > { %720 = vmatpush.bf16.xpose.msrb.mxu1 %v4221_v19  ;;  %v5733_v19 = vld [vmem:[#allocation7 + $0xb4] sm:$0xf0] }
  0x6b   : > { %v4353_v27 = vor.u32 %v5733_v19, %v4352_v18  ;;  %v4408_v19 = vld [vmem:[#allocation8 + $0xa0] sm:$0xf] }
  0x6e   : > { %583 = vmatpush.bf16.xpose.msra.mxu2 %v4145_v20 }
  0x6f   : > { %597 = vmatpush.bf16.xpose.msra.mxu3 %v4149_v21 }
  0x71   : > { %707 = vmatpush.bf16.xpose.msrb.mxu0 %v4209_v32  ;;  %v4344_v32 = vld [vmem:[#allocation7 + $0xa0] sm:$0xf] }
  0x72   : > { %721 = vmatpush.bf16.xpose.msrb.mxu1 %v4213_v33  ;;  %v5731_v33 = vld [vmem:[#allocation7 + $0xa4] sm:$0xf0] }
  0x73   : > { %v4345_v36 = vor.u32 %v5731_v33, %v4344_v32  ;;  %v4400_v32 = vld [vmem:[#allocation8 + $0x90] sm:$0xf]  ;;  %v5745_v33 = vld [vmem:[#allocation8 + $0x94] sm:$0xf0] }
  0x76   : > { %584 = vmatpush.bf16.xpose.msra.mxu2 %v4137_v34  ;;  %v5730_v34 = vld [vmem:[#allocation7 + $0xa4] sm:$0xf] }
  0x77   : > { %598 = vmatpush.bf16.xpose.msra.mxu3 %v4141_v35  ;;  %v4346_v35 = vld [vmem:[#allocation7 + $0xa8] sm:$0xf0] }
  0x78   : > { %v4349_v38 = vor.u32 %v5730_v34, %v4346_v35  ;;  %v4401_v34 = vor.u32 %v5745_v33, %v4400_v32  ;;  %v5744_v35 = vld [vmem:[#allocation8 + $0x94] sm:$0xf] }
  0x79   : > { %708 = vmatpush.bf16.xpose.msrb.mxu0 %v4201_v40  ;;  %v5756_v40 = vld [vmem:[#allocation8 + $0xf4] sm:$0xf] }
  0x7a   : > { %722 = vmatpush.bf16.xpose.msrb.mxu1 %v4205_v41  ;;  %v4450_v41 = vld [vmem:[#allocation8 + $0xf8] sm:$0xf0] }
  0x7d   : > { %585 = vmatmul.bf16.vlgmr.msra.gmra.mxu2 %v6683_v42 }
  0x7e   : > { %599 = vmatmul.bf16.vlgmr.msra.gmra.mxu3 %v6687_v43  ;;  %872 = vmatpush.bf16.xpose.msrb.mxu2 %v5717_v44  ;;  %v5710_v44 = vld [vmem:[#allocation10] sm:$0xff] }
  0x7f   : > { %886 = vmatpush.bf16.xpose.msrb.mxu3 %v5725_v45  ;;  %v5718_v45 = vld [vmem:[#allocation10 + $0x40] sm:$0xff] }
  0x80   : > { %709 = vmatmul.bf16.vlgmr.msrb.gmra.mxu0 %v6683_v42 }
  0x81   : > { %723 = vmatmul.bf16.vlgmr.msrb.gmra.mxu1 %v6687_v43  ;;  %1015 = vmatpush.bf16.xpose.msra.mxu0 %v4385_v47  ;;  %v4338_v47 = vld [vmem:[#allocation7 + $0x98] sm:$0xf0] }
  0x82   : > { %1029 = vmatpush.bf16.xpose.msra.mxu1 %v4389_v49  ;;  %v4440_v49 = vld [vmem:[#allocation8 + $0xe0] sm:$0xf] }
  0x86   : > { %873 = vmatpush.bf16.xpose.msrb.mxu2 %v5716_v8  ;;  %v4449_v8 = vor.u32 %v5757_v39, %v4448_v37  ;;  %v4392_v39 = vld [vmem:[#allocation8 + $0x80] sm:$0xf] }
  0x87   : > { %887 = vmatpush.bf16.xpose.msrb.mxu3 %v5724_v22  ;;  %v4453_v22 = vor.u32 %v5756_v40, %v4450_v41  ;;  %v5743_v40 = vld [vmem:[#allocation8 + $0x84] sm:$0xf0] }
  0x88   : > { %v4393_v9 = vor.u32 %v5743_v40, %v4392_v39 }
  0x89   : > { %1016 = vmatpush.bf16.xpose.msra.mxu0 %v4377_v56  ;;  %v4328_v56 = vld [vmem:[#allocation7 + $0x80] sm:$0xf] }
  0x8a   : > { %1030 = vmatpush.bf16.xpose.msra.mxu1 %v4381_v57  ;;  %v5727_v57 = vld [vmem:[#allocation7 + $0x84] sm:$0xf0] }
  0x8e   : > { %874 = vmatpush.bf16.xpose.msrb.mxu2 %v5715_v50  ;;  %v4341_v50 = vor.u32 %v5728_v46, %v4338_v47 }
  0x8f   : > { %888 = vmatpush.bf16.xpose.msrb.mxu3 %v5723_v51  ;;  %v5755_v51 = vld [vmem:[#allocation8 + $0xe4] sm:$0xf0] }
  0x90   : > { %v4441_v54 = vor.u32 %v5755_v51, %v4440_v49 }
  0x91   : > { %1017 = vmatpush.bf16.xpose.msra.mxu0 %v4369_v0  ;;  %v5752_v0 = vld [vmem:[#allocation8 + $0xd4] sm:$0xf] }
  0x92   : > { %1031 = vmatpush.bf16.xpose.msra.mxu1 %v4373_v1  ;;  %v4433_v1 = vor.u32 %v5753_v63, %v4432_v62 }
  0x96   : > { %875 = vmatpush.bf16.xpose.msrb.mxu2 %v5714_v58  ;;  %v5726_v58 = vld [vmem:[#allocation7 + $0x84] sm:$0xf] }
  0x97   : > { %889 = vmatpush.bf16.xpose.msrb.mxu3 %v5722_v59  ;;  %v4329_v59 = vor.u32 %v5727_v57, %v4328_v56  ;;  %v4333_v61 = vor.u32 %v5726_v58, %v4330_v60 }
  0x99   : > { %1018 = vmatpush.bf16.xpose.msra.mxu0 %v4361_v13  ;;  %v4416_v13 = vld [vmem:[#allocation8 + $0xb0] sm:$0xf] }
  0x9a   : > { %1032 = vmatpush.bf16.xpose.msra.mxu1 %v4365_v15  ;;  %v5748_v15 = vld [vmem:[#allocation8 + $0xb4] sm:$0xf] }
  0x9e   : > { %876 = vmatpush.bf16.xpose.msrb.mxu2 %v5713_v2  ;;  %v4434_v2 = vld [vmem:[#allocation8 + $0xd8] sm:$0xf0] }
  0x9f   : > { %890 = vmatpush.bf16.xpose.msrb.mxu3 %v5721_v3  ;;  %v4437_v3 = vor.u32 %v5752_v0, %v4434_v2  ;;  %v5773_v2 = vld [vmem:[#allocation10 + $0xf8] sm:$0xff] }
  0xa1   : > { %1019 = vmatpush.bf16.xpose.msra.mxu0 %v4353_v27 }
  0xa2   : > { %1033 = vmatpush.bf16.xpose.msra.mxu1 %v4357_v29 }
  0xa6   : > { %877 = vmatpush.bf16.xpose.msrb.mxu2 %v5712_v16 }
  0xa7   : > { %891 = vmatpush.bf16.xpose.msrb.mxu3 %v5720_v17  ;;  %v4418_v17 = vld [vmem:[#allocation8 + $0xb8] sm:$0xf0] }
  0xa8   : > { %v4421_v18 = vor.u32 %v5748_v15, %v4418_v17  ;;  %v4570_v15 = vld [vmem:[#allocation7 + $0x168] sm:$0xf0]  ;;  %v5772_v17 = vld [vmem:[#allocation10 + $0xf0] sm:$0xff] }
  0xa9   : > { %1020 = vmatpush.bf16.xpose.msra.mxu0 %v4345_v36  ;;  %v4402_v36 = vld [vmem:[#allocation8 + $0x98] sm:$0xf0] }
  0xaa   : > { %1034 = vmatpush.bf16.xpose.msra.mxu1 %v4349_v38  ;;  %v4405_v38 = vor.u32 %v5744_v35, %v4402_v36  ;;  %v4552_v35 = vld [vmem:[#allocation7 + $0x140] sm:$0xf]  ;;  %v5783_v36 = vld [vmem:[#allocation7 + $0x144] sm:$0xf0] }
  0xae   : > { %878 = vmatpush.bf16.xpose.msrb.mxu2 %v5711_v30 }
  0xaf   : > { %892 = vmatpush.bf16.xpose.msrb.mxu3 %v5719_v31 }
  0xb1   : > { %1021 = vmatpush.bf16.xpose.msra.mxu0 %v4337_v48 }
  0xb2   : > { %1035 = vmatpush.bf16.xpose.msra.mxu1 %v4341_v50 }
  0xb6   : > { %879 = vmatpush.bf16.xpose.msrb.mxu2 %v5710_v44 }
  0xb7   : > { %893 = vmatpush.bf16.xpose.msrb.mxu3 %v5718_v45  ;;  %v5742_v45 = vld [vmem:[#allocation8 + $0x84] sm:$0xf] }
  0xb9   : > { %1022 = vmatpush.bf16.xpose.msra.mxu0 %v4329_v59 }
  0xba   : > { %1036 = vmatpush.bf16.xpose.msra.mxu1 %v4333_v61 }
  0xbb   : > { %v337_v6 = vpop.f32.mrf.mxu0 }
  0xbc   : > { %v360_v7 = vpop.f32.mrf.mxu1 }
  0xbd   : > { %v6693_v12 = vadd.f32 %v360_v7, %v337_v6  ;;  %v5750_v6 = vld [vmem:[#allocation8 + $0xc4] sm:$0xf]  ;;  %v4425_v7 = vor.u32 %v5751_v5, %v4424_v4  ;;  %v5789_v4 = vld [vmem:[#allocation7 + $0x174] sm:$0xf0]  ;;  %v5788_v5 = vld [vmem:[#allocation7 + $0x174] sm:$0xf] }
  0xbe   : > { %1140 = vmatpush.bf16.xpose.msra.mxu2 %v4449_v8  ;;  %v4429_v11 = vor.u32 %v5750_v6, %v4426_v10  ;;  %v4394_v8 = vld [vmem:[#allocation8 + $0x88] sm:$0xf0]  ;;  %v4578_v6 = vld [vmem:[#allocation7 + $0x178] sm:$0xf0] }
  0xbf   : > { %v367_v14 = vsel %vm366_vm0, %v6693_v12, -inf  ;;  %1154 = vmatpush.bf16.xpose.msra.mxu3 %v4453_v22  ;;  %v4397_v46 = vor.u32 %v5742_v45, %v4394_v8  ;;  %v4581_v10 = vor.u32 %v5788_v5, %v4578_v6  ;;  %v4553_v8 = vor.u32 %v5783_v36, %v4552_v35  ;;  %v4520_v5 = vld [vmem:[#allocation7 + $0x100] sm:$0xf]  ;;  %v5775_v6 = vld [vmem:[#allocation7 + $0x104] sm:$0xf0] }
  0xc0   : > { %368 = vmax.xlane.f32.xlu0 %v367_v14  ;;  %1023 = vmatmul.bf16.vlgmr.msra.gmra.mxu0 %v6683_v42  ;;  %v5749_v14 = vld [vmem:[#allocation8 + $0xb4] sm:$0xf0]  ;;  %v4616_v36 = vld [vmem:[#allocation8 + $0x140] sm:$0xf] }
  0xc1   : > { %1037 = vmatmul.bf16.vlgmr.msra.gmra.mxu1 %v6687_v43  ;;  %v4417_v16 = vor.u32 %v5749_v14, %v4416_v13  ;;  %v5787_v13 = vld [vmem:[#allocation7 + $0x164] sm:$0xf0]  ;;  %v5786_v14 = vld [vmem:[#allocation7 + $0x164] sm:$0xf] }
  0xc2   : > { %1326 = vmatpush.bf16.xpose.msrb.mxu1 %v5773_v2  ;;  %v4530_v2 = vld [vmem:[#allocation7 + $0x118] sm:$0xf0] }
  0xc3   : > { %v340_v20 = vpop.f32.mrf.mxu0 }
  0xc4   : > { %v363_v21 = vpop.f32.mrf.mxu1 }
  0xc5   : > { %v6697_v26 = vadd.f32 %v363_v21, %v340_v20  ;;  %v5747_v20 = vld [vmem:[#allocation8 + $0xa4] sm:$0xf0]  ;;  %v5746_v21 = vld [vmem:[#allocation8 + $0xa4] sm:$0xf] }
  0xc6   : > { %1141 = vmatpush.bf16.xpose.msra.mxu2 %v4441_v54  ;;  %v4409_v24 = vor.u32 %v5747_v20, %v4408_v19  ;;  %v4413_v27 = vor.u32 %v5746_v21, %v4410_v25  ;;  %v4573_v19 = vor.u32 %v5786_v14, %v4570_v15  ;;  %v5785_v25 = vld [vmem:[#allocation7 + $0x154] sm:$0xf0]  ;;  %v5804_v14 = vld [vmem:[#allocation8 + $0x174] sm:$0xf]  ;;  %v4642_v15 = vld [vmem:[#allocation8 + $0x178] sm:$0xf0] }
  0xc7   : > { %v370_v28 = vsel %vm366_vm0, %v6697_v26, -inf  ;;  %1155 = vmatpush.bf16.xpose.msra.mxu3 %v4445_v55 }
  0xc8   : > { %371 = vmax.xlane.f32.xlu0 %v370_v28 }
  0xca   : > { %1327 = vmatpush.bf16.xpose.msrb.mxu1 %v5772_v17  ;;  %v5766_v17 = vld [vmem:[#allocation10 + $0xc0] sm:$0xff] }
  0xce   : > { %1142 = vmatpush.bf16.xpose.msra.mxu2 %v4433_v1  ;;  %v5765_v1 = vld [vmem:[#allocation10 + $0xb8] sm:$0xff] }
  0xcf   : > { %1156 = vmatpush.bf16.xpose.msra.mxu3 %v4437_v3  ;;  %v4576_v3 = vld [vmem:[#allocation7 + $0x170] sm:$0xf]  ;;  %1312 = vmatpush.bf16.xpose.msrb.mxu0 %v5765_v1  ;;  %v5776_v1 = vld [vmem:[#allocation7 + $0x114] sm:$0xf] }
  0xd6   : > { %1143 = vmatpush.bf16.xpose.msra.mxu2 %v4425_v7  ;;  %v4577_v7 = vor.u32 %v5789_v4, %v4576_v3  ;;  %v4533_v4 = vor.u32 %v5776_v1, %v4530_v2  ;;  %v4594_v2 = vld [vmem:[#allocation8 + $0x118] sm:$0xf0] }
  0xd7   : > { %1157 = vmatpush.bf16.xpose.msra.mxu3 %v4429_v11  ;;  %v4568_v11 = vld [vmem:[#allocation7 + $0x160] sm:$0xf] }
  0xde   : > { %1144 = vmatpush.bf16.xpose.msra.mxu2 %v4417_v16  ;;  %v5764_v16 = vld [vmem:[#allocation10 + $0xb0] sm:$0xff] }
  0xdf   : > { %1158 = vmatpush.bf16.xpose.msra.mxu3 %v4421_v18  ;;  %v4569_v18 = vor.u32 %v5787_v13, %v4568_v11  ;;  %1313 = vmatpush.bf16.xpose.msrb.mxu0 %v5764_v16  ;;  %v5805_v11 = vld [vmem:[#allocation8 + $0x174] sm:$0xf0]  ;;  %v4522_v13 = vld [vmem:[#allocation7 + $0x108] sm:$0xf0]  ;;  %v5758_v16 = vld [vmem:[#allocation10 + $0x80] sm:$0xff] }
  0xe6   : > { %1145 = vmatpush.bf16.xpose.msra.mxu2 %v4409_v24  ;;  %v4560_v24 = vld [vmem:[#allocation7 + $0x150] sm:$0xf] }
  0xe7   : > { %1159 = vmatpush.bf16.xpose.msra.mxu3 %v4413_v27  ;;  %v5784_v27 = vld [vmem:[#allocation7 + $0x154] sm:$0xf]  ;;  %v4561_v32 = vor.u32 %v5785_v25, %v4560_v24  ;;  %v4632_v24 = vld [vmem:[#allocation8 + $0x160] sm:$0xf]  ;;  %v5803_v25 = vld [vmem:[#allocation8 + $0x164] sm:$0xf0] }
  0xee   : > { %1146 = vmatpush.bf16.xpose.msra.mxu2 %v4401_v34 }
  0xef   : > { %1160 = vmatpush.bf16.xpose.msra.mxu3 %v4405_v38  ;;  %v4554_v38 = vld [vmem:[#allocation7 + $0x148] sm:$0xf0] }
  0xf6   : > { %1147 = vmatpush.bf16.xpose.msra.mxu2 %v4393_v9  ;;  %v5781_v9 = vld [vmem:[#allocation7 + $0x134] sm:$0xf0] }
  0xf7   : > { %1161 = vmatpush.bf16.xpose.msra.mxu3 %v4397_v46  ;;  %v4546_v46 = vld [vmem:[#allocation7 + $0x138] sm:$0xf0] }
  0xfd   : > { %v710_v50 = vpop.f32.mrf.mxu0 }
  0xfe   : > { %v724_v51 = vpop.f32.mrf.mxu1 }
  0xff   : > { %v725_v58 = vadd.f32 %v724_v51, %v710_v50 }
 0x100   : > { %v586_v28 = vpop.f32.mrf.mxu2 }
 0x101   : > { %v600_v29 = vpop.f32.mrf.mxu3 }
 0x102   : > { %v601_v30 = vadd.f32 %v600_v29, %v586_v28  ;;  %v4562_v28 = vld [vmem:[#allocation7 + $0x158] sm:$0xf0] }
 0x103   : > { %v4565_v33 = vor.u32 %v5784_v27, %v4562_v28  ;;  %v5802_v27 = vld [vmem:[#allocation8 + $0x164] sm:$0xf]  ;;  %v4634_v28 = vld [vmem:[#allocation8 + $0x168] sm:$0xf0] }
 0x104   : > { %v729_v31 = vsub.f32 0.0, %v601_v30 }
 0x105   : > { %v712_v55 = vpop.f32.mrf.mxu0 }
 0x106   : > { %v731_v37 = vmul.f32 1.442695, %v729_v31  ;;  %v726_v56 = vpop.f32.mrf.mxu1  ;;  %v5771_v31 = vld [vmem:[#allocation10 + $0xe8] sm:$0xff] }
 0x107   : > { %v727_v61 = vadd.f32 %v726_v56, %v712_v55  ;;  %1328 = vmatpush.bf16.xpose.msrb.mxu1 %v5771_v31  ;;  %v4536_v55 = vld [vmem:[#allocation7 + $0x120] sm:$0xf]  ;;  %v5779_v56 = vld [vmem:[#allocation7 + $0x124] sm:$0xf0]  ;;  %v4624_v31 = vld [vmem:[#allocation8 + $0x150] sm:$0xf] }
 0x108   : > { %6183 = vpow2.f32 %v731_v37  ;;  %v588_v41 = vpop.f32.mrf.mxu2  ;;  %v5782_v37 = vld [vmem:[#allocation7 + $0x144] sm:$0xf] }
 0x109   : > { %v602_v44 = vpop.f32.mrf.mxu3 }
 0x10a   : > { %v603_v22 = vadd.f32 %v602_v44, %v588_v41  ;;  %v5762_v41 = vld [vmem:[#allocation10 + $0xa0] sm:$0xff] }
 0x10b   : > { %v5770_v44 = vld [vmem:[#allocation10 + $0xe0] sm:$0xff] }
 0x10c   : > { %v730_v23 = vsub.f32 0.0, %v603_v22 }
 0x10e   : > { %v6184_v47 = vpop.eup %6183  ;;  %v733_v48 = vmul.f32 1.442695, %v730_v23  ;;  %v5780_v23 = vld [vmem:[#allocation7 + $0x134] sm:$0xf] }
 0x10f   : > { %v735_v49 = vadd.f32 1.0, %v6184_v47  ;;  %1329 = vmatpush.bf16.xpose.msrb.mxu1 %v5770_v44 }
 0x110   : > { %6185 = vpow2.f32 %v733_v48  ;;  %v5761_v48 = vld [vmem:[#allocation10 + $0x98] sm:$0xff] }
 0x111   : > { %6187 = vrcp.f32 %v735_v49  ;;  %v5769_v49 = vld [vmem:[#allocation10 + $0xd8] sm:$0xff] }
 0x116   : > { %v6186_v52 = vpop.eup %6185 }
 0x117   : > { %v736_v53 = vadd.f32 1.0, %v6186_v52  ;;  %v6188_v54 = vpop.eup %6187  ;;  %v4549_v52 = vor.u32 %v5780_v23, %v4546_v46  ;;  %1330 = vmatpush.bf16.xpose.msrb.mxu1 %v5769_v49  ;;  %v4610_v46 = vld [vmem:[#allocation8 + $0x138] sm:$0xf0] }
 0x118   : > { %v739_v57 = vmul.f32 %v6188_v54, %v601_v30  ;;  %v5763_v30 = vld [vmem:[#allocation10 + $0xa8] sm:$0xff]  ;;  %v5768_v54 = vld [vmem:[#allocation10 + $0xd0] sm:$0xff] }
 0x119   : > { %6189 = vrcp.f32 %v736_v53  ;;  %1314 = vmatpush.bf16.xpose.msrb.mxu0 %v5763_v30  ;;  %v5760_v53 = vld [vmem:[#allocation10 + $0x90] sm:$0xff]  ;;  %v4637_v30 = vor.u32 %v5802_v27, %v4634_v28  ;;  %v5821_v27 = vld [vmem:[#allocation10 + $0x178] sm:$0xff] }
 0x11a   : > { %v741_v62 = vmul.f32 %v739_v57, %v725_v58  ;;  %v5778_v57 = vld [vmem:[#allocation7 + $0x124] sm:$0xf]  ;;  %v4538_v58 = vld [vmem:[#allocation7 + $0x128] sm:$0xf0] }
 0x11f   : > { %v6190_v59 = vpop.eup %6189  ;;  %1331 = vmatpush.bf16.xpose.msrb.mxu1 %v5768_v54 }
 0x120   : > { %v740_v60 = vmul.f32 %v6190_v59, %v603_v22  ;;  %v4557_v22 = vor.u32 %v5782_v37, %v4554_v38  ;;  %v4537_v59 = vor.u32 %v5779_v56, %v4536_v55  ;;  %v5799_v37 = vld [vmem:[#allocation8 + $0x144] sm:$0xf0]  ;;  %v5798_v38 = vld [vmem:[#allocation8 + $0x144] sm:$0xf]  ;;  %v4602_v56 = vld [vmem:[#allocation8 + $0x128] sm:$0xf0] }
 0x121   : > { %1315 = vmatpush.bf16.xpose.msrb.mxu0 %v5762_v41  ;;  %v4618_v41 = vld [vmem:[#allocation8 + $0x148] sm:$0xf0] }
 0x122   : > { %v742_v63 = vmul.f32 %v740_v60, %v727_v61  ;;  %v4541_v60 = vor.u32 %v5778_v57, %v4538_v58  ;;  %v5759_v61 = vld [vmem:[#allocation10 + $0x88] sm:$0xff]  ;;  %v4621_v44 = vor.u32 %v5798_v38, %v4618_v41  ;;  %v4768_v41 = vld [vmem:[#allocation7 + $0x1f0] sm:$0xf] }
 0x124   : > { %v743_v0 = vpack.c.bf16 %v742_v63, %v741_v62  ;;  %v5767_v62 = vld [vmem:[#allocation10 + $0xc8] sm:$0xff]  ;;  %v4528_v63 = vld [vmem:[#allocation7 + $0x110] sm:$0xf] }
 0x126   : > { %880 = vmatmul.bf16.vlgmr.msrb.gmra.mxu2 %v743_v0  ;;  %894 = vmatmul.bf16.vlgmr.msrb.gmra.mxu3 %v743_v0  ;;  %v5777_v0 = vld [vmem:[#allocation7 + $0x114] sm:$0xf0] }
 0x127   : > { %1453 = vmatpush.bf16.xpose.msrb.mxu2 %v4577_v7  ;;  %1467 = vmatpush.bf16.xpose.msrb.mxu3 %v4581_v10  ;;  %v4529_v3 = vor.u32 %v5777_v0, %v4528_v63  ;;  %v5774_v7 = vld [vmem:[#allocation7 + $0x104] sm:$0xf]  ;;  %v4640_v10 = vld [vmem:[#allocation8 + $0x170] sm:$0xf]  ;;  %v5792_v63 = vld [vmem:[#allocation8 + $0x114] sm:$0xf] }
 0x128   : > { %1332 = vmatpush.bf16.xpose.msrb.mxu1 %v5767_v62  ;;  %v5793_v62 = vld [vmem:[#allocation8 + $0x114] sm:$0xf0] }
 0x129   : > { %1316 = vmatpush.bf16.xpose.msrb.mxu0 %v5761_v48 }
 0x12f   : > { %1454 = vmatpush.bf16.xpose.msrb.mxu2 %v4569_v18  ;;  %1468 = vmatpush.bf16.xpose.msrb.mxu3 %v4573_v19  ;;  %v4641_v18 = vor.u32 %v5805_v11, %v4640_v10  ;;  %v4645_v19 = vor.u32 %v5804_v14, %v4642_v15  ;;  %v5791_v10 = vld [vmem:[#allocation8 + $0x104] sm:$0xf0]  ;;  %v5790_v11 = vld [vmem:[#allocation8 + $0x104] sm:$0xf] }
 0x130   : > { %1333 = vmatpush.bf16.xpose.msrb.mxu1 %v5766_v17 }
 0x131   : > { %1317 = vmatpush.bf16.xpose.msrb.mxu0 %v5760_v53  ;;  %v5794_v53 = vld [vmem:[#allocation8 + $0x124] sm:$0xf] }
 0x132   : > { %v4605_v58 = vor.u32 %v5794_v53, %v4602_v56  ;;  %v5811_v53 = vld [vmem:[#allocation10 + $0x128] sm:$0xff] }
 0x133   : > { %v369_v20 = vpop.xlane.xlu0 %368  ;;  %v5835_v56 = vld [vmem:[#allocation7 + $0x1e4] sm:$0xf0] }
 0x134   : > { %v373_v21 = vsub.f32 %v6693_v12, %v369_v20  ;;  %v4521_v20 = vor.u32 %v5775_v6, %v4520_v5 }
 0x136   : > { %1148 = vmatmul.bf16.vlgmr.msra.gmra.mxu2 %v6683_v42  ;;  %1162 = vmatmul.bf16.vlgmr.msra.gmra.mxu3 %v6687_v43  ;;  %v375_v29 = vmul.f32 1.442695, %v373_v21  ;;  %v4525_v21 = vor.u32 %v5774_v7, %v4522_v13  ;;  %v4584_v7 = vld [vmem:[#allocation8 + $0x100] sm:$0xf]  ;;  %v4586_v13 = vld [vmem:[#allocation8 + $0x108] sm:$0xf0] }
 0x137   : > { %1455 = vmatpush.bf16.xpose.msrb.mxu2 %v4561_v32  ;;  %1469 = vmatpush.bf16.xpose.msrb.mxu3 %v4565_v33  ;;  %v5801_v32 = vld [vmem:[#allocation8 + $0x154] sm:$0xf0]  ;;  %v5800_v33 = vld [vmem:[#allocation8 + $0x154] sm:$0xf]  ;;  %v4585_v14 = vor.u32 %v5791_v10, %v4584_v7  ;;  %v4589_v15 = vor.u32 %v5790_v11, %v4586_v13  ;;  %v4744_v10 = vld [vmem:[#allocation7 + $0x1c0] sm:$0xf] }
 0x138   : > { %6191 = vpow2.f32 %v375_v29  ;;  %1592 = vmatpush.bf16.xpose.msra.mxu1 %v4645_v19  ;;  %v4633_v29 = vor.u32 %v5803_v25, %v4632_v24  ;;  %v5813_v25 = vld [vmem:[#allocation10 + $0x138] sm:$0xff]  ;;  %v5831_v11 = vld [vmem:[#allocation7 + $0x1c4] sm:$0xf0]  ;;  %v5830_v13 = vld [vmem:[#allocation7 + $0x1c4] sm:$0xf] }
 0x139   : > { %1318 = vmatpush.bf16.xpose.msrb.mxu0 %v5759_v61  ;;  %v4592_v61 = vld [vmem:[#allocation8 + $0x110] sm:$0xf]  ;;  %v5817_v7 = vld [vmem:[#allocation10 + $0x158] sm:$0xff] }
 0x13a   : > { %v4593_v1 = vor.u32 %v5793_v62, %v4592_v61  ;;  %v5818_v61 = vld [vmem:[#allocation10 + $0x160] sm:$0xff]  ;;  %v4752_v62 = vld [vmem:[#allocation7 + $0x1d0] sm:$0xf] }
 0x13b   : > { %v372_v34 = vpop.xlane.xlu0 %371 }
 0x13c   : > { %v374_v12 = vsub.f32 %v6697_v26, %v372_v34  ;;  %v4544_v26 = vld [vmem:[#allocation7 + $0x130] sm:$0xf]  ;;  %v4625_v34 = vor.u32 %v5801_v32, %v4624_v31 }
 0x13d   : > { %v4545_v51 = vor.u32 %v5781_v9, %v4544_v26  ;;  %v5797_v26 = vld [vmem:[#allocation8 + $0x134] sm:$0xf0]  ;;  %v5796_v9 = vld [vmem:[#allocation8 + $0x134] sm:$0xf] }
 0x13e   : > { %v6707_v39 = vpop.eup %6191  ;;  %v377_v40 = vmul.f32 1.442695, %v374_v12  ;;  %v4626_v12 = vld [vmem:[#allocation8 + $0x158] sm:$0xf0]  ;;  %v4613_v48 = vor.u32 %v5796_v9, %v4610_v46 }
 0x13f   : > { %v379_v45 = vsel %vm366_vm0, %v6707_v39, 0.0  ;;  %1456 = vmatpush.bf16.xpose.msrb.mxu2 %v4553_v8  ;;  %1470 = vmatpush.bf16.xpose.msrb.mxu3 %v4557_v22  ;;  %v4629_v35 = vor.u32 %v5800_v33, %v4626_v12  ;;  %v1038_v8 = vpop.f32.mrf.mxu1  ;;  %v4608_v22 = vld [vmem:[#allocation8 + $0x130] sm:$0xf] }
 0x140   : > { %6193 = vpow2.f32 %v377_v40  ;;  %380 = vadd.xlane.f32.xlu1 %v379_v45  ;;  %1593 = vmatpush.bf16.xpose.msra.mxu1 %v4637_v30  ;;  %v4617_v40 = vor.u32 %v5799_v37, %v4616_v36  ;;  %v1024_v45 = vpop.f32.mrf.mxu0  ;;  %v4609_v23 = vor.u32 %v5797_v26, %v4608_v22  ;;  %v5812_v12 = vld [vmem:[#allocation10 + $0x130] sm:$0xff]  ;;  %v4770_v26 = vld [vmem:[#allocation7 + $0x1f8] sm:$0xf0] }
 0x141   : > { %1319 = vmatpush.bf16.xpose.msrb.mxu0 %v5758_v16  ;;  %v1039_v54 = vadd.f32 %v1038_v8, %v1024_v45  ;;  %v5836_v22 = vld [vmem:[#allocation7 + $0x1f4] sm:$0xf] }
 0x146   : > { %v6711_v47 = vpop.eup %6193 }
 0x147   : > { %v382_v50 = vsel %vm366_vm0, %v6711_v47, 0.0  ;;  %1457 = vmatpush.bf16.xpose.msrb.mxu2 %v4545_v51  ;;  %1471 = vmatpush.bf16.xpose.msrb.mxu3 %v4549_v52  ;;  %v4600_v51 = vld [vmem:[#allocation8 + $0x120] sm:$0xf]  ;;  %v5795_v52 = vld [vmem:[#allocation8 + $0x124] sm:$0xf0] }
 0x148   : > { %383 = vadd.xlane.f32.xlu1 %v382_v50  ;;  %1594 = vmatpush.bf16.xpose.msra.mxu1 %v4629_v35  ;;  %v1026_v49 = vpop.f32.mrf.mxu0  ;;  %v1040_v50 = vpop.f32.mrf.mxu1  ;;  %v4601_v55 = vor.u32 %v5795_v52, %v4600_v51  ;;  %v5820_v35 = vld [vmem:[#allocation10 + $0x170] sm:$0xff] }
 0x149   : > { %1578 = vmatpush.bf16.xpose.msra.mxu0 %v4641_v18  ;;  %v1041_v57 = vadd.f32 %v1040_v50, %v1026_v49  ;;  %v4773_v50 = vor.u32 %v5836_v22, %v4770_v26  ;;  %v4720_v26 = vld [vmem:[#allocation7 + $0x190] sm:$0xf] }
 0x14f   : > { %1458 = vmatpush.bf16.xpose.msrb.mxu2 %v4537_v59  ;;  %1472 = vmatpush.bf16.xpose.msrb.mxu3 %v4541_v60  ;;  %v1168_v59 = vsub.f32 0.0, %v1039_v54  ;;  %v1169_v60 = vsub.f32 0.0, %v1041_v57 }
 0x150   : > { %1595 = vmatpush.bf16.xpose.msra.mxu1 %v4621_v44 }
 0x151   : > { %1579 = vmatpush.bf16.xpose.msra.mxu0 %v4633_v29  ;;  %v1170_v0 = vmul.f32 1.442695, %v1168_v59 }
 0x153   : > { %6195 = vpow2.f32 %v1170_v0  ;;  %v5832_v0 = vld [vmem:[#allocation7 + $0x1d4] sm:$0xf] }
 0x157   : > { %1459 = vmatpush.bf16.xpose.msrb.mxu2 %v4529_v3  ;;  %1473 = vmatpush.bf16.xpose.msrb.mxu3 %v4533_v4  ;;  %v1172_v3 = vmul.f32 1.442695, %v1169_v60  ;;  %v4597_v4 = vor.u32 %v5792_v63, %v4594_v2  ;;  %v5810_v60 = vld [vmem:[#allocation10 + $0x120] sm:$0xff]  ;;  %v5833_v63 = vld [vmem:[#allocation7 + $0x1d4] sm:$0xf0] }
 0x158   : > { %1596 = vmatpush.bf16.xpose.msra.mxu1 %v4613_v48  ;;  %v4753_v2 = vor.u32 %v5833_v63, %v4752_v62  ;;  %v4816_v62 = vld [vmem:[#allocation8 + $0x1d0] sm:$0xf]  ;;  %v5849_v63 = vld [vmem:[#allocation8 + $0x1d4] sm:$0xf0] }
 0x159   : > { %1580 = vmatpush.bf16.xpose.msra.mxu0 %v4625_v34  ;;  %6197 = vpow2.f32 %v1172_v3  ;;  %v6196_v16 = vpop.eup %6195 }
 0x15f   : > { %1460 = vmatpush.bf16.xpose.msrb.mxu2 %v4521_v20  ;;  %1474 = vmatpush.bf16.xpose.msrb.mxu3 %v4525_v21  ;;  %v6198_v19 = vpop.eup %6197  ;;  %v1174_v20 = vadd.f32 1.0, %v6196_v16 }
 0x160   : > { %1597 = vmatpush.bf16.xpose.msra.mxu1 %v4605_v58  ;;  %v1175_v24 = vadd.f32 1.0, %v6198_v19  ;;  %v5808_v19 = vld [vmem:[#allocation10 + $0x110] sm:$0xff] }
 0x161   : > { %1581 = vmatpush.bf16.xpose.msra.mxu0 %v4617_v40 }
 0x166   : > { %1461 = vmatmul.bf16.vlgmr.msrb.gmra.mxu2 %v6683_v42  ;;  %1475 = vmatmul.bf16.vlgmr.msrb.gmra.mxu3 %v6687_v43 }
 0x167   : > { %1750 = vmatpush.bf16.xpose.msra.mxu2 %v5813_v25  ;;  %1764 = vmatpush.bf16.xpose.msra.mxu3 %v5821_v27  ;;  %v5828_v25 = vld [vmem:[#allocation7 + $0x1b4] sm:$0xf]  ;;  %v4738_v27 = vld [vmem:[#allocation7 + $0x1b8] sm:$0xf0] }
 0x168   : > { %1598 = vmatpush.bf16.xpose.msra.mxu1 %v4597_v4  ;;  %v5809_v4 = vld [vmem:[#allocation10 + $0x118] sm:$0xff] }
 0x169   : > { %1582 = vmatpush.bf16.xpose.msra.mxu0 %v4609_v23 }
 0x16f   : > { %1751 = vmatpush.bf16.xpose.msra.mxu2 %v5812_v12  ;;  %1765 = vmatpush.bf16.xpose.msra.mxu3 %v5820_v35  ;;  %v5826_v12 = vld [vmem:[#allocation7 + $0x1a4] sm:$0xf]  ;;  %v4730_v35 = vld [vmem:[#allocation7 + $0x1a8] sm:$0xf0] }
 0x170   : > { %1599 = vmatpush.bf16.xpose.msra.mxu1 %v4589_v15  ;;  %v4745_v15 = vor.u32 %v5831_v11, %v4744_v10  ;;  %v5846_v10 = vld [vmem:[#allocation8 + $0x1c4] sm:$0xf] }
 0x171   : > { %1583 = vmatpush.bf16.xpose.msra.mxu0 %v4601_v55  ;;  %v4760_v55 = vld [vmem:[#allocation7 + $0x1e0] sm:$0xf] }
 0x172   : > { %v4761_v58 = vor.u32 %v5835_v56, %v4760_v55  ;;  %v4826_v55 = vld [vmem:[#allocation8 + $0x1e8] sm:$0xf0] }
 0x177   : > { %1752 = vmatpush.bf16.xpose.msra.mxu2 %v5811_v53  ;;  %v5850_v53 = vld [vmem:[#allocation8 + $0x1e4] sm:$0xf] }
 0x178   : > { %v4829_v56 = vor.u32 %v5850_v53, %v4826_v55  ;;  %v5840_v53 = vld [vmem:[#allocation8 + $0x194] sm:$0xf] }
 0x179   : > { %1584 = vmatpush.bf16.xpose.msra.mxu0 %v4593_v1  ;;  %v4754_v1 = vld [vmem:[#allocation7 + $0x1d8] sm:$0xf0] }
 0x17a   : > { %v4757_v3 = vor.u32 %v5832_v0, %v4754_v1  ;;  %v5848_v0 = vld [vmem:[#allocation8 + $0x1d4] sm:$0xf]  ;;  %v4817_v1 = vor.u32 %v5849_v63, %v4816_v62  ;;  %v5838_v62 = vld [vmem:[#allocation8 + $0x184] sm:$0xf]  ;;  %v4778_v63 = vld [vmem:[#allocation8 + $0x188] sm:$0xf0] }
 0x17f   : > { %1753 = vmatpush.bf16.xpose.msra.mxu2 %v5810_v60  ;;  %v4714_v60 = vld [vmem:[#allocation7 + $0x188] sm:$0xf0] }
 0x181   : > { %1585 = vmatpush.bf16.xpose.msra.mxu0 %v4585_v14  ;;  %v4746_v14 = vld [vmem:[#allocation7 + $0x1c8] sm:$0xf0] }
 0x182   : > { %v4749_v16 = vor.u32 %v5830_v13, %v4746_v14  ;;  %v4810_v13 = vld [vmem:[#allocation8 + $0x1c8] sm:$0xf0]  ;;  %v389_v14 = vlaneseq }
 0x187   : > { %1754 = vmatpush.bf16.xpose.msra.mxu2 %v5809_v4  ;;  %v4808_v4 = vld [vmem:[#allocation8 + $0x1c0] sm:$0xf] }
 0x18f   : > { %1755 = vmatpush.bf16.xpose.msra.mxu2 %v5808_v19 }
 0x1a9   : > { %v6717_v5 = vpop.f32.mrf.mxu2  ;;  %v6719_v6 = vpop.f32.mrf.mxu3 }
 0x1b1   : > { %v6721_v17 = vpop.f32.mrf.mxu2  ;;  %v6723_v18 = vpop.f32.mrf.mxu3 }
 0x1b3   : > { %v381_v21 = vpop.xlane.xlu1 %380 }
 0x1b4   : > { %6199 = vrcp.f32 %v381_v21  ;;  %v4736_v21 = vld [vmem:[#allocation7 + $0x1b0] sm:$0xf] }
 0x1b5   : > { %6201 = vrcp.f32 %v1174_v20  ;;  %v5816_v20 = vld [vmem:[#allocation10 + $0x150] sm:$0xff] }
 0x1b6   : > { %6203 = vrcp.f32 %v1175_v24  ;;  %v5829_v24 = vld [vmem:[#allocation7 + $0x1b4] sm:$0xf0] }
 0x1b9   : > { %v1149_v28 = vpop.f32.mrf.mxu2  ;;  %v1163_v29 = vpop.f32.mrf.mxu3 }
 0x1ba   : > { %v6200_v30 = vpop.eup %6199  ;;  %v1164_v37 = vadd.f32 %v1163_v29, %v1149_v28  ;;  %v4737_v28 = vor.u32 %v5829_v24, %v4736_v21  ;;  %v4741_v29 = vor.u32 %v5828_v25, %v4738_v27  ;;  %v4800_v24 = vld [vmem:[#allocation8 + $0x1b0] sm:$0xf]  ;;  %v5845_v25 = vld [vmem:[#allocation8 + $0x1b4] sm:$0xf0]  ;;  %v5844_v27 = vld [vmem:[#allocation8 + $0x1b4] sm:$0xf] }
 0x1bb   : > { %v6726_v31 = vmul.f32 %v6200_v30, %v6707_v39  ;;  %v384_v32 = vpop.xlane.xlu1 %383  ;;  %v6202_v33 = vpop.eup %6201  ;;  %v5837_v39 = vld [vmem:[#allocation7 + $0x1f4] sm:$0xf0]  ;;  %v5807_v30 = vld [vmem:[#allocation10 + $0x108] sm:$0xff] }
 0x1bc   : > { %6205 = vrcp.f32 %v384_v32  ;;  %v6204_v36 = vpop.eup %6203  ;;  %v1178_v44 = vmul.f32 %v6202_v33, %v1039_v54  ;;  %v4769_v49 = vor.u32 %v5837_v39, %v4768_v41  ;;  %v5819_v54 = vld [vmem:[#allocation10 + $0x168] sm:$0xff]  ;;  %v4728_v33 = vld [vmem:[#allocation7 + $0x1a0] sm:$0xf]  ;;  %1756 = vmatpush.bf16.xpose.msra.mxu2 %v5807_v30  ;;  %v4832_v41 = vld [vmem:[#allocation8 + $0x1f0] sm:$0xf] }
 0x1bd   : > { %v391_v34 = vsel %vm366_vm0, %v6726_v31, -inf  ;;  %v1179_v45 = vmul.f32 %v6204_v36, %v1041_v57  ;;  %1766 = vmatpush.bf16.xpose.msra.mxu3 %v5819_v54  ;;  %v4762_v57 = vld [vmem:[#allocation7 + $0x1e8] sm:$0xf0]  ;;  %v4834_v39 = vld [vmem:[#allocation8 + $0x1f8] sm:$0xf0] }
 0x1be   : > { %392 = vmax.xlane.f32.xlu2 %v391_v34  ;;  %v1180_v23 = vmul.f32 %v1178_v44, %v1164_v37  ;;  %v5815_v32 = vld [vmem:[#allocation10 + $0x148] sm:$0xff]  ;;  %v4733_v37 = vor.u32 %v5826_v12, %v4730_v35  ;;  %v5853_v44 = vld [vmem:[#allocation8 + $0x1f4] sm:$0xf0] }
 0x1bf   : > { %v5827_v34 = vld [vmem:[#allocation7 + $0x1a4] sm:$0xf0] }
 0x1c0   : > { %v4729_v36 = vor.u32 %v5827_v34, %v4728_v33 }
 0x1c1   : > { %v1151_v38 = vpop.f32.mrf.mxu2  ;;  %v1165_v40 = vpop.f32.mrf.mxu3 }
 0x1c2   : > { %v1166_v8 = vadd.f32 %v1165_v40, %v1151_v38  ;;  %v6206_v9 = vpop.eup %6205  ;;  %v5806_v38 = vld [vmem:[#allocation10 + $0x100] sm:$0xff] }
 0x1c3   : > { %v6731_v46 = vmul.f32 %v6206_v9, %v6711_v47  ;;  %v5834_v47 = vld [vmem:[#allocation7 + $0x1e4] sm:$0xf]  ;;  %v5825_v9 = vld [vmem:[#allocation7 + $0x194] sm:$0xf0] }
 0x1c4   : > { %v1181_v48 = vmul.f32 %v1179_v45, %v1166_v8  ;;  %v4765_v59 = vor.u32 %v5834_v47, %v4762_v57  ;;  %v5814_v40 = vld [vmem:[#allocation10 + $0x140] sm:$0xff]  ;;  %v5852_v45 = vld [vmem:[#allocation8 + $0x1f4] sm:$0xf]  ;;  %1757 = vmatpush.bf16.xpose.msra.mxu2 %v5806_v38  ;;  %v4833_v8 = vor.u32 %v5853_v44, %v4832_v41  ;;  %v5823_v57 = vld [vmem:[#allocation7 + $0x184] sm:$0xf0] }
 0x1c5   : > { %v394_v52 = vsel %vm366_vm0, %v6731_v46, -inf  ;;  %1767 = vmatpush.bf16.xpose.msra.mxu3 %v5818_v61  ;;  %v4837_v22 = vor.u32 %v5852_v45, %v4834_v39  ;;  %v4712_v47 = vld [vmem:[#allocation7 + $0x180] sm:$0xf]  ;;  %v5842_v41 = vld [vmem:[#allocation8 + $0x1a4] sm:$0xf] }
 0x1c6   : > { %v1182_v51 = vpack.c.bf16 %v1181_v48, %v1180_v23  ;;  %395 = vmax.xlane.f32.xlu2 %v394_v52  ;;  %v5824_v23 = vld [vmem:[#allocation7 + $0x194] sm:$0xf]  ;;  %v4721_v48 = vor.u32 %v5825_v9, %v4720_v26  ;;  %v5851_v52 = vld [vmem:[#allocation8 + $0x1e4] sm:$0xf0]  ;;  %v4792_v38 = vld [vmem:[#allocation8 + $0x1a0] sm:$0xf] }
 0x1c8   : > { %1320 = vmatmul.bf16.vlgmr.msrb.gmra.mxu0 %v1182_v51  ;;  %1334 = vmatmul.bf16.vlgmr.msrb.gmra.mxu1 %v1182_v51  ;;  %v4824_v51 = vld [vmem:[#allocation8 + $0x1e0] sm:$0xf] }
 0x1c9   : > { %1891 = vmatpush.bf16.xpose.msrb.mxu0 %v4769_v49  ;;  %1905 = vmatpush.bf16.xpose.msrb.mxu1 %v4773_v50  ;;  %v4722_v49 = vld [vmem:[#allocation7 + $0x198] sm:$0xf0]  ;;  %v4825_v54 = vor.u32 %v5851_v52, %v4824_v51  ;;  %v4784_v51 = vld [vmem:[#allocation8 + $0x190] sm:$0xf]  ;;  %v5841_v52 = vld [vmem:[#allocation8 + $0x194] sm:$0xf0] }
 0x1ca   : > { %v4725_v50 = vor.u32 %v5824_v23, %v4722_v49  ;;  %v4785_v55 = vor.u32 %v5841_v52, %v4784_v51  ;;  %v5859_v51 = vld [vmem:[#allocation10 + $0x1a8] sm:$0xff] }
 0x1cb   : > { %v5867_v52 = vld [vmem:[#allocation10 + $0x1e8] sm:$0xff] }
 0x1cc   : > { %2016 = vmatpush.bf16.xpose.msrb.mxu2 %v4833_v8  ;;  %v4794_v8 = vld [vmem:[#allocation8 + $0x1a8] sm:$0xf0] }
 0x1cd   : > { %1768 = vmatpush.bf16.xpose.msra.mxu3 %v5817_v7  ;;  %v5847_v7 = vld [vmem:[#allocation8 + $0x1c4] sm:$0xf0]  ;;  %v4797_v26 = vor.u32 %v5842_v41, %v4794_v8 }
 0x1ce   : > { %v4809_v11 = vor.u32 %v5847_v7, %v4808_v4 }
 0x1d1   : > { %1892 = vmatpush.bf16.xpose.msrb.mxu0 %v4761_v58  ;;  %1906 = vmatpush.bf16.xpose.msrb.mxu1 %v4765_v59  ;;  %v5822_v58 = vld [vmem:[#allocation7 + $0x184] sm:$0xf]  ;;  %v4713_v59 = vor.u32 %v5823_v57, %v4712_v47 }
 0x1d2   : > { %v4717_v61 = vor.u32 %v5822_v58, %v4714_v60  ;;  %v4776_v60 = vld [vmem:[#allocation8 + $0x180] sm:$0xf] }
 0x1d4   : > { %2017 = vmatpush.bf16.xpose.msrb.mxu2 %v4825_v54 }
 0x1d5   : > { %1769 = vmatpush.bf16.xpose.msra.mxu3 %v5816_v20  ;;  %v6739_v20 = vand.u32 127, %v389_v14  ;;  %v5869_v14 = vld [vmem:[#allocation10 + $0x1f8] sm:$0xff] }
 0x1d8   : > { %1586 = vmatmul.bf16.vlgmr.msra.gmra.mxu0 %v6683_v42  ;;  %1600 = vmatmul.bf16.vlgmr.msra.gmra.mxu1 %v6687_v43 }
 0x1d9   : > { %1893 = vmatpush.bf16.xpose.msrb.mxu0 %v4753_v2  ;;  %1907 = vmatpush.bf16.xpose.msrb.mxu1 %v4757_v3  ;;  %v4818_v2 = vld [vmem:[#allocation8 + $0x1d8] sm:$0xf0] }
 0x1da   : > { %v4821_v3 = vor.u32 %v5848_v0, %v4818_v2 }
 0x1dc   : > { %2018 = vmatpush.bf16.xpose.msrb.mxu2 %v4817_v1  ;;  %v4781_v1 = vor.u32 %v5838_v62, %v4778_v63  ;;  %v4936_v62 = vld [vmem:[#allocation7 + $0x240] sm:$0xf]  ;;  %v5879_v63 = vld [vmem:[#allocation7 + $0x244] sm:$0xf0] }
 0x1dd   : > { %1770 = vmatpush.bf16.xpose.msra.mxu3 %v5815_v32 }
 0x1e1   : > { %1894 = vmatpush.bf16.xpose.msrb.mxu0 %v4745_v15  ;;  %1908 = vmatpush.bf16.xpose.msrb.mxu1 %v4749_v16  ;;  %v4813_v15 = vor.u32 %v5846_v10, %v4810_v13  ;;  %v5861_v13 = vld [vmem:[#allocation10 + $0x1b8] sm:$0xff] }
 0x1e4   : > { %2019 = vmatpush.bf16.xpose.msrb.mxu2 %v4809_v11 }
 0x1e5   : > { %1771 = vmatpush.bf16.xpose.msra.mxu3 %v5814_v40  ;;  %v5843_v40 = vld [vmem:[#allocation8 + $0x1a4] sm:$0xf0] }
 0x1e6   : > { %v4793_v45 = vor.u32 %v5843_v40, %v4792_v38  ;;  %v4962_v38 = vld [vmem:[#allocation7 + $0x278] sm:$0xf0] }
 0x1e9   : > { %1895 = vmatpush.bf16.xpose.msrb.mxu0 %v4737_v28  ;;  %1909 = vmatpush.bf16.xpose.msrb.mxu1 %v4741_v29  ;;  %v1462_v16 = vpop.f32.mrf.mxu2  ;;  %v1476_v19 = vpop.f32.mrf.mxu3  ;;  %v4801_v28 = vor.u32 %v5845_v25, %v4800_v24  ;;  %v4802_v29 = vld [vmem:[#allocation8 + $0x1b8] sm:$0xf0]  ;;  %v5868_v24 = vld [vmem:[#allocation10 + $0x1f0] sm:$0xff] }
 0x1ea   : > { %v4805_v32 = vor.u32 %v5844_v27, %v4802_v29  ;;  %v1477_v44 = vadd.f32 %v1476_v19, %v1462_v16 }
 0x1ec   : > { %2020 = vmatpush.bf16.xpose.msrb.mxu2 %v4801_v28 }
 0x1ed   : > { %2030 = vmatpush.bf16.xpose.msrb.mxu3 %v4837_v22 }
 0x1f1   : > { %1896 = vmatpush.bf16.xpose.msrb.mxu0 %v4729_v36  ;;  %1910 = vmatpush.bf16.xpose.msrb.mxu1 %v4733_v37  ;;  %v1464_v35 = vpop.f32.mrf.mxu2  ;;  %v1478_v36 = vpop.f32.mrf.mxu3 }
 0x1f2   : > { %v1479_v39 = vadd.f32 %v1478_v36, %v1464_v35  ;;  %v5885_v36 = vld [vmem:[#allocation7 + $0x274] sm:$0xf0] }
 0x1f4   : > { %2021 = vmatpush.bf16.xpose.msrb.mxu2 %v4793_v45  ;;  %v1607_v49 = vsub.f32 0.0, %v1479_v39 }
 0x1f5   : > { %2031 = vmatpush.bf16.xpose.msrb.mxu3 %v4829_v56  ;;  %v4786_v56 = vld [vmem:[#allocation8 + $0x198] sm:$0xf0] }
 0x1f6   : > { %v1610_v47 = vmul.f32 1.442695, %v1607_v49  ;;  %v4789_v57 = vor.u32 %v5840_v53, %v4786_v56  ;;  %v4944_v53 = vld [vmem:[#allocation7 + $0x250] sm:$0xf]  ;;  %v4946_v56 = vld [vmem:[#allocation7 + $0x258] sm:$0xf0] }
 0x1f9   : > { %1897 = vmatpush.bf16.xpose.msrb.mxu0 %v4721_v48  ;;  %1911 = vmatpush.bf16.xpose.msrb.mxu1 %v4725_v50  ;;  %v1606_v48 = vsub.f32 0.0, %v1477_v44 }
 0x1fb   : > { %v1608_v54 = vmul.f32 1.442695, %v1606_v48  ;;  %v5882_v48 = vld [vmem:[#allocation7 + $0x264] sm:$0xf] }
 0x1fc   : > { %2022 = vmatpush.bf16.xpose.msrb.mxu2 %v4785_v55  ;;  %v5880_v55 = vld [vmem:[#allocation7 + $0x254] sm:$0xf] }
 0x1fd   : > { %2032 = vmatpush.bf16.xpose.msrb.mxu3 %v4821_v3  ;;  %6207 = vpow2.f32 %v1608_v54  ;;  %v5881_v54 = vld [vmem:[#allocation7 + $0x254] sm:$0xf0] }
 0x1fe   : > { %6209 = vpow2.f32 %v1610_v47  ;;  %v4945_v47 = vor.u32 %v5881_v54, %v4944_v53  ;;  %v4904_v53 = vld [vmem:[#allocation7 + $0x200] sm:$0xf]  ;;  %v5871_v54 = vld [vmem:[#allocation7 + $0x204] sm:$0xf0] }
 0x201   : > { %1898 = vmatpush.bf16.xpose.msrb.mxu0 %v4713_v59  ;;  %1912 = vmatpush.bf16.xpose.msrb.mxu1 %v4717_v61  ;;  %v5839_v61 = vld [vmem:[#allocation8 + $0x184] sm:$0xf0] }
 0x202   : > { %v4777_v0 = vor.u32 %v5839_v61, %v4776_v60  ;;  %v5858_v60 = vld [vmem:[#allocation10 + $0x1a0] sm:$0xff] }
 0x203   : > { %v6208_v2 = vpop.eup %6207  ;;  %v5866_v61 = vld [vmem:[#allocation10 + $0x1e0] sm:$0xff] }
 0x204   : > { %v6210_v7 = vpop.eup %6209  ;;  %2023 = vmatpush.bf16.xpose.msrb.mxu2 %v4777_v0  ;;  %v1612_v10 = vadd.f32 1.0, %v6208_v2  ;;  %v5878_v0 = vld [vmem:[#allocation7 + $0x244] sm:$0xf]  ;;  %v4937_v2 = vor.u32 %v5879_v63, %v4936_v62 }
 0x205   : > { %2033 = vmatpush.bf16.xpose.msrb.mxu3 %v4813_v15  ;;  %v1613_v11 = vadd.f32 1.0, %v6210_v7 }
 0x206   : > { %6211 = vrcp.f32 %v1612_v10  ;;  %v4928_v10 = vld [vmem:[#allocation7 + $0x230] sm:$0xf] }
 0x207   : > { %6213 = vrcp.f32 %v1613_v11  ;;  %v5877_v11 = vld [vmem:[#allocation7 + $0x234] sm:$0xf0] }
 0x208   : > { %1899 = vmatmul.bf16.vlgmr.msrb.gmra.mxu0 %v6683_v42  ;;  %1913 = vmatmul.bf16.vlgmr.msrb.gmra.mxu1 %v6687_v43 }
 0x209   : > { %2188 = vmatpush.bf16.xpose.msra.mxu0 %v5861_v13  ;;  %2202 = vmatpush.bf16.xpose.msra.mxu1 %v5869_v14  ;;  %v5876_v13 = vld [vmem:[#allocation7 + $0x234] sm:$0xf]  ;;  %v4930_v14 = vld [vmem:[#allocation7 + $0x238] sm:$0xf0] }
 0x20c   : > { %v6212_v19 = vpop.eup %6211 }
 0x20d   : > { %2034 = vmatpush.bf16.xpose.msrb.mxu3 %v4805_v32  ;;  %v6214_v25 = vpop.eup %6213  ;;  %v1616_v32 = vmul.f32 %v6212_v19, %v1477_v44  ;;  %v4954_v44 = vld [vmem:[#allocation7 + $0x268] sm:$0xf0]  ;;  %v4929_v19 = vor.u32 %v5877_v11, %v4928_v10 }
 0x20e   : > { %v4957_v49 = vor.u32 %v5882_v48, %v4954_v44  ;;  %v5024_v44 = vld [vmem:[#allocation8 + $0x270] sm:$0xf] }
 0x211   : > { %2203 = vmatpush.bf16.xpose.msra.mxu1 %v5868_v24  ;;  %v4920_v24 = vld [vmem:[#allocation7 + $0x220] sm:$0xf] }
 0x215   : > { %2035 = vmatpush.bf16.xpose.msrb.mxu3 %v4797_v26  ;;  %v4952_v26 = vld [vmem:[#allocation7 + $0x260] sm:$0xf] }
 0x219   : > { %2204 = vmatpush.bf16.xpose.msra.mxu1 %v5867_v52  ;;  %v5854_v52 = vld [vmem:[#allocation10 + $0x180] sm:$0xff] }
 0x21d   : > { %2036 = vmatpush.bf16.xpose.msrb.mxu3 %v4789_v57  ;;  %v4949_v57 = vor.u32 %v5880_v55, %v4946_v56  ;;  %v5862_v55 = vld [vmem:[#allocation10 + $0x1c0] sm:$0xff] }
 0x21e   : > { %v5870_v56 = vld [vmem:[#allocation7 + $0x204] sm:$0xf] }
 0x221   : > { %2205 = vmatpush.bf16.xpose.msra.mxu1 %v5866_v61 }
 0x225   : > { %2037 = vmatpush.bf16.xpose.msrb.mxu3 %v4781_v1  ;;  %v4938_v1 = vld [vmem:[#allocation7 + $0x248] sm:$0xf0] }
 0x226   : > { %v4941_v7 = vor.u32 %v5878_v0, %v4938_v1  ;;  %v5016_v0 = vld [vmem:[#allocation8 + $0x260] sm:$0xf]  ;;  %v5899_v1 = vld [vmem:[#allocation8 + $0x264] sm:$0xf0] }
 0x227   : > { %v5017_v10 = vor.u32 %v5899_v1, %v5016_v0  ;;  %v5887_v0 = vld [vmem:[#allocation8 + $0x204] sm:$0xf0]  ;;  %v5886_v1 = vld [vmem:[#allocation8 + $0x204] sm:$0xf] }
 0x231   : > { %v393_v21 = vpop.xlane.xlu2 %392 }
 0x232   : > { %vm397_vm1 = vcmp.eq.f32.partialorder %v6726_v31, %v393_v21  ;;  %v5860_v21 = vld [vmem:[#allocation10 + $0x1b0] sm:$0xff] }
 0x233   : > { %v399_v30 = vsel %vm397_vm1, %v6739_v20, 8  ;;  %2189 = vmatpush.bf16.xpose.msra.mxu0 %v5860_v21  ;;  %v4933_v21 = vor.u32 %v5876_v13, %v4930_v14  ;;  %v5897_v13 = vld [vmem:[#allocation8 + $0x254] sm:$0xf0]  ;;  %v5896_v14 = vld [vmem:[#allocation8 + $0x254] sm:$0xf] }
 0x234   : > { %v6744_v33 = vsel %vm366_vm0, %v399_v30, 2147483647  ;;  %v4960_v30 = vld [vmem:[#allocation7 + $0x270] sm:$0xf] }
 0x235   : > { %v403_v34 = vshra.s32 %v6744_v33, 16  ;;  %v4961_v45 = vor.u32 %v5885_v36, %v4960_v30  ;;  %v5864_v30 = vld [vmem:[#allocation10 + $0x1d0] sm:$0xff]  ;;  %v5855_v36 = vld [vmem:[#allocation10 + $0x188] sm:$0xff] }
 0x237   : > { %v6747_v12 = vcvt.s32.f32 %v403_v34  ;;  %v1617_v34 = vmul.f32 %v6214_v25, %v1479_v39  ;;  %v5875_v25 = vld [vmem:[#allocation7 + $0x224] sm:$0xf0] }
 0x239   : > { %406 = vmin.xlane.f32.xlu0 %v6747_v12  ;;  %v396_v37 = vpop.xlane.xlu2 %395 }
 0x23a   : > { %vm398_vm2 = vcmp.eq.f32.partialorder %v6731_v46, %v396_v37  ;;  %v5884_v37 = vld [vmem:[#allocation7 + $0x274] sm:$0xf] }
 0x23b   : > { %v400_v22 = vsel %vm398_vm2, %v6739_v20, 8  ;;  %v4965_v8 = vor.u32 %v5884_v37, %v4962_v38  ;;  %2190 = vmatpush.bf16.xpose.msra.mxu0 %v5859_v51  ;;  %v4912_v37 = vld [vmem:[#allocation7 + $0x210] sm:$0xf]  ;;  %v5873_v38 = vld [vmem:[#allocation7 + $0x214] sm:$0xf0] }
 0x23c   : > { %v6753_v9 = vsel %vm366_vm0, %v400_v22, 2147483647 }
 0x23d   : > { %v418_v23 = vshra.s32 %v6753_v9, 16  ;;  %v417_v51 = vand.u32 65535, %v6753_v9 }
 0x23f   : > { %v6756_v50 = vcvt.s32.f32 %v418_v23  ;;  %v5883_v23 = vld [vmem:[#allocation7 + $0x264] sm:$0xf0]  ;;  %v419_v62 = vcvt.s32.f32 %v417_v51 }
 0x240   : > { %v4953_v39 = vor.u32 %v5883_v23, %v4952_v26 }
 0x241   : > { %421 = vmin.xlane.f32.xlu1 %v6756_v50 }
 0x243   : > { %2191 = vmatpush.bf16.xpose.msra.mxu0 %v5858_v60  ;;  %v4905_v60 = vor.u32 %v5871_v54, %v4904_v53  ;;  %v4976_v53 = vld [vmem:[#allocation8 + $0x210] sm:$0xf]  ;;  %v5889_v54 = vld [vmem:[#allocation8 + $0x214] sm:$0xf0] }
 0x245   : > { %v6759_v58 = vpop.f32.mrf.mxu0  ;;  %v6761_v59 = vpop.f32.mrf.mxu1 }
 0x24d   : > { %v6763_v3 = vpop.f32.mrf.mxu0  ;;  %v6765_v4 = vpop.f32.mrf.mxu1 }
 0x255   : > { %v1587_v15 = vpop.f32.mrf.mxu0  ;;  %v1601_v16 = vpop.f32.mrf.mxu1 }
 0x256   : > { %v1602_v27 = vadd.f32 %v1601_v16, %v1587_v15  ;;  %v5857_v15 = vld [vmem:[#allocation10 + $0x198] sm:$0xff] }
 0x257   : > { %v5865_v16 = vld [vmem:[#allocation10 + $0x1d8] sm:$0xff]  ;;  %2192 = vmatpush.bf16.xpose.msra.mxu0 %v5857_v15 }
 0x258   : > { %v1618_v40 = vmul.f32 %v1616_v32, %v1602_v27  ;;  %2206 = vmatpush.bf16.xpose.msra.mxu1 %v5865_v16  ;;  %v5874_v27 = vld [vmem:[#allocation7 + $0x224] sm:$0xf]  ;;  %v4921_v32 = vor.u32 %v5875_v25, %v4920_v24  ;;  %v5010_v16 = vld [vmem:[#allocation8 + $0x258] sm:$0xf0]  ;;  %v5895_v24 = vld [vmem:[#allocation8 + $0x244] sm:$0xf0] }
 0x259   : > { %v5894_v25 = vld [vmem:[#allocation8 + $0x244] sm:$0xf] }
 0x25d   : > { %v1589_v28 = vpop.f32.mrf.mxu0  ;;  %v1603_v29 = vpop.f32.mrf.mxu1 }
 0x25e   : > { %v1604_v35 = vadd.f32 %v1603_v29, %v1589_v28  ;;  %v4922_v28 = vld [vmem:[#allocation7 + $0x228] sm:$0xf0]  ;;  %v5856_v29 = vld [vmem:[#allocation10 + $0x190] sm:$0xff] }
 0x25f   : > { %2193 = vmatpush.bf16.xpose.msra.mxu0 %v5856_v29 }
 0x260   : > { %v1619_v41 = vmul.f32 %v1617_v34, %v1604_v35  ;;  %v4925_v34 = vor.u32 %v5874_v27, %v4922_v28  ;;  %2207 = vmatpush.bf16.xpose.msra.mxu1 %v5864_v30  ;;  %v402_v35 = vand.u32 65535, %v6744_v33  ;;  %v5901_v33 = vld [vmem:[#allocation8 + $0x274] sm:$0xf0]  ;;  %v5002_v28 = vld [vmem:[#allocation8 + $0x248] sm:$0xf0] }
 0x261   : > { %v5005_v29 = vor.u32 %v5894_v25, %v5002_v28 }
 0x262   : > { %v1620_v22 = vpack.c.bf16 %v1619_v41, %v1618_v40  ;;  %v5863_v40 = vld [vmem:[#allocation10 + $0x1c8] sm:$0xff]  ;;  %v5872_v41 = vld [vmem:[#allocation7 + $0x214] sm:$0xf]  ;;  %v404_v26 = vcvt.s32.f32 %v402_v35  ;;  %v5893_v35 = vld [vmem:[#allocation8 + $0x234] sm:$0xf0] }
 0x264   : > { %1758 = vmatmul.bf16.vlgmr.msra.gmra.mxu2 %v1620_v22  ;;  %1772 = vmatmul.bf16.vlgmr.msra.gmra.mxu3 %v1620_v22 }
 0x265   : > { %2329 = vmatpush.bf16.xpose.msra.mxu2 %v4961_v45  ;;  %2343 = vmatpush.bf16.xpose.msra.mxu3 %v4965_v8  ;;  %v4914_v45 = vld [vmem:[#allocation7 + $0x218] sm:$0xf0]  ;;  %v4913_v8 = vor.u32 %v5873_v38, %v4912_v37 }
 0x266   : > { %v4917_v23 = vor.u32 %v5872_v41, %v4914_v45  ;;  %v4994_v38 = vld [vmem:[#allocation8 + $0x238] sm:$0xf0] }
 0x267   : > { %2194 = vmatpush.bf16.xpose.msra.mxu0 %v5855_v36  ;;  %v5892_v36 = vld [vmem:[#allocation8 + $0x234] sm:$0xf] }
 0x268   : > { %2208 = vmatpush.bf16.xpose.msra.mxu1 %v5863_v40  ;;  %v4997_v40 = vor.u32 %v5892_v36, %v4994_v38  ;;  %v5909_v38 = vld [vmem:[#allocation10 + $0x238] sm:$0xff] }
 0x26d   : > { %2330 = vmatpush.bf16.xpose.msra.mxu2 %v4953_v39  ;;  %2344 = vmatpush.bf16.xpose.msra.mxu3 %v4957_v49  ;;  %v5900_v39 = vld [vmem:[#allocation8 + $0x274] sm:$0xf]  ;;  %v5026_v49 = vld [vmem:[#allocation8 + $0x278] sm:$0xf0] }
 0x26f   : > { %2195 = vmatpush.bf16.xpose.msra.mxu0 %v5854_v52 }
 0x270   : > { %2209 = vmatpush.bf16.xpose.msra.mxu1 %v5862_v55  ;;  %v5888_v55 = vld [vmem:[#allocation8 + $0x214] sm:$0xf] }
 0x274   : > { %2024 = vmatmul.bf16.vlgmr.msrb.gmra.mxu2 %v6683_v42  ;;  %2038 = vmatmul.bf16.vlgmr.msrb.gmra.mxu3 %v6687_v43 }
 0x275   : > { %2331 = vmatpush.bf16.xpose.msra.mxu2 %v4945_v47  ;;  %2345 = vmatpush.bf16.xpose.msra.mxu3 %v4949_v57  ;;  %v4906_v47 = vld [vmem:[#allocation7 + $0x208] sm:$0xf0]  ;;  %v5025_v57 = vor.u32 %v5901_v33, %v5024_v44 }
 0x276   : > { %v4909_v63 = vor.u32 %v5870_v56, %v4906_v47  ;;  %v4986_v33 = vld [vmem:[#allocation8 + $0x228] sm:$0xf0]  ;;  %v4977_v47 = vor.u32 %v5889_v54, %v4976_v53 }
 0x277   : > { %2454 = vmatpush.bf16.xpose.msrb.mxu0 %v5025_v57  ;;  %v4978_v57 = vld [vmem:[#allocation8 + $0x218] sm:$0xf0] }
 0x27d   : > { %2332 = vmatpush.bf16.xpose.msra.mxu2 %v4937_v2  ;;  %2346 = vmatpush.bf16.xpose.msra.mxu3 %v4941_v7  ;;  %v5898_v2 = vld [vmem:[#allocation8 + $0x264] sm:$0xf]  ;;  %v5018_v7 = vld [vmem:[#allocation8 + $0x268] sm:$0xf0] }
 0x27e   : > { %v5021_v11 = vor.u32 %v5898_v2, %v5018_v7  ;;  %v4970_v2 = vld [vmem:[#allocation8 + $0x208] sm:$0xf0] }
 0x27f   : > { %2455 = vmatpush.bf16.xpose.msrb.mxu0 %v5017_v10  ;;  %v4973_v10 = vor.u32 %v5886_v1, %v4970_v2 }
 0x285   : > { %2333 = vmatpush.bf16.xpose.msra.mxu2 %v4929_v19  ;;  %2347 = vmatpush.bf16.xpose.msra.mxu3 %v4933_v21  ;;  %v5013_v19 = vor.u32 %v5896_v14, %v5010_v16  ;;  %v5000_v21 = vld [vmem:[#allocation8 + $0x240] sm:$0xf]  ;;  %v1900_v30 = vpop.f32.mrf.mxu0 }
 0x286   : > { %v5001_v27 = vor.u32 %v5895_v24, %v5000_v21 }
 0x28d   : > { %2334 = vmatpush.bf16.xpose.msra.mxu2 %v4921_v32  ;;  %2348 = vmatpush.bf16.xpose.msra.mxu3 %v4925_v34  ;;  %v1914_v32 = vpop.f32.mrf.mxu1  ;;  %v4992_v34 = vld [vmem:[#allocation8 + $0x230] sm:$0xf]  ;;  %v1902_v41 = vpop.f32.mrf.mxu0 }
 0x28e   : > { %v4993_v37 = vor.u32 %v5893_v35, %v4992_v34 }
 0x295   : > { %2335 = vmatpush.bf16.xpose.msra.mxu2 %v4913_v8  ;;  %2349 = vmatpush.bf16.xpose.msra.mxu3 %v4917_v23  ;;  %v1916_v45 = vpop.f32.mrf.mxu1  ;;  %v4984_v8 = vld [vmem:[#allocation8 + $0x220] sm:$0xf]  ;;  %v5890_v23 = vld [vmem:[#allocation8 + $0x224] sm:$0xf] }
 0x29d   : > { %2336 = vmatpush.bf16.xpose.msra.mxu2 %v4905_v60  ;;  %2350 = vmatpush.bf16.xpose.msra.mxu3 %v4909_v63  ;;  %v4981_v60 = vor.u32 %v5888_v55, %v4978_v57  ;;  %v5929_v57 = vld [vmem:[#allocation7 + $0x2d4] sm:$0xf0] }
 0x2a4   : > { %2337 = vmatmul.bf16.vlgmr.msra.gmra.mxu2 %v6683_v42  ;;  %2351 = vmatmul.bf16.vlgmr.msra.gmra.mxu3 %v6687_v43 }
 0x2a5   : > { %2626 = vmatpush.bf16.xpose.msrb.mxu2 %v5909_v38 }
 0x2ac   : > { %v6770_v22 = vpop.xlane.xlu0 %406 }
 0x2ad   : > { %vm408_vm3 = vcmp.eq.f32.partialorder %v6747_v12, %v6770_v22  ;;  %v5029_v12 = vor.u32 %v5900_v39, %v5026_v49  ;;  %v1917_v39 = vadd.f32 %v1916_v45, %v1902_v41  ;;  %v4989_v49 = vor.u32 %v5890_v23, %v4986_v33  ;;  %v5152_v41 = vld [vmem:[#allocation7 + $0x2f0] sm:$0xf]  ;;  %v5933_v45 = vld [vmem:[#allocation7 + $0x2f4] sm:$0xf0]  ;;  %v5154_v23 = vld [vmem:[#allocation7 + $0x2f8] sm:$0xf0] }
 0x2ae   : > { %v409_v48 = vsel %vm408_vm3, %v404_v26, inf  ;;  %v5891_v26 = vld [vmem:[#allocation8 + $0x224] sm:$0xf0]  ;;  %v5144_v33 = vld [vmem:[#allocation7 + $0x2e0] sm:$0xf]  ;;  %v413_v55 = vcvt.f32.s32 %v6770_v22 }
 0x2af   : > { %410 = vmin.xlane.f32.xlu2 %v409_v48  ;;  %2468 = vmatpush.bf16.xpose.msrb.mxu1 %v5029_v12  ;;  %v1915_v48 = vadd.f32 %v1914_v32, %v1900_v30  ;;  %v4985_v44 = vor.u32 %v5891_v26, %v4984_v8  ;;  %v2045_v52 = vsub.f32 0.0, %v1917_v39  ;;  %v5153_v8 = vor.u32 %v5933_v45, %v5152_v41  ;;  %v5932_v26 = vld [vmem:[#allocation7 + $0x2f4] sm:$0xf]  ;;  %v5906_v22 = vld [vmem:[#allocation10 + $0x220] sm:$0xff]  ;;  %v5120_v45 = vld [vmem:[#allocation7 + $0x2b0] sm:$0xf] }
 0x2b0   : > { %v414_v2 = vshll.u32 %v413_v55, 16  ;;  %v5912_v41 = vld [vmem:[#allocation10 + $0x250] sm:$0xff] }
 0x2b1   : > { %v2044_v51 = vsub.f32 0.0, %v1915_v48  ;;  %v2048_v12 = vmul.f32 1.442695, %v2045_v52  ;;  %v5146_v52 = vld [vmem:[#allocation7 + $0x2e8] sm:$0xf0] }
 0x2b3   : > { %v2046_v56 = vmul.f32 1.442695, %v2044_v51  ;;  %v5930_v51 = vld [vmem:[#allocation7 + $0x2e4] sm:$0xf] }
 0x2b4   : > { %v6775_v61 = vpop.xlane.xlu1 %421  ;;  %v5149_v54 = vor.u32 %v5930_v51, %v5146_v52  ;;  %v5923_v51 = vld [vmem:[#allocation7 + $0x2a4] sm:$0xf0]  ;;  %v5922_v52 = vld [vmem:[#allocation7 + $0x2a4] sm:$0xf] }
 0x2b5   : > { %vm423_vm4 = vcmp.eq.f32.partialorder %v6756_v50, %v6775_v61  ;;  %v5008_v50 = vld [vmem:[#allocation8 + $0x250] sm:$0xf]  ;;  %6215 = vpow2.f32 %v2046_v56  ;;  %v5907_v56 = vld [vmem:[#allocation10 + $0x228] sm:$0xff] }
 0x2b6   : > { %v424_v9 = vsel %vm423_vm4, %v419_v62, inf  ;;  %v5009_v15 = vor.u32 %v5897_v13, %v5008_v50  ;;  %6217 = vpow2.f32 %v2048_v12  ;;  %v5915_v12 = vld [vmem:[#allocation10 + $0x268] sm:$0xff] }
 0x2b7   : > { %425 = vmin.xlane.f32.xlu0 %v424_v9  ;;  %2469 = vmatpush.bf16.xpose.msrb.mxu1 %v5021_v11  ;;  %v4968_v9 = vld [vmem:[#allocation8 + $0x200] sm:$0xf] }
 0x2b8   : > { %2456 = vmatpush.bf16.xpose.msrb.mxu0 %v5009_v15  ;;  %v4969_v7 = vor.u32 %v5887_v0, %v4968_v9  ;;  %v5138_v9 = vld [vmem:[#allocation7 + $0x2d8] sm:$0xf0] }
 0x2bb   : > { %v6216_v11 = vpop.eup %6215 }
 0x2bc   : > { %v6218_v14 = vpop.eup %6217  ;;  %v2050_v15 = vadd.f32 1.0, %v6216_v11 }
 0x2bd   : > { %v2051_v16 = vadd.f32 1.0, %v6218_v14  ;;  %v428_v14 = vcvt.f32.s32 %v6775_v61 }
 0x2be   : > { %6219 = vrcp.f32 %v2050_v15  ;;  %v5128_v15 = vld [vmem:[#allocation7 + $0x2c0] sm:$0xf] }
 0x2bf   : > { %2470 = vmatpush.bf16.xpose.msrb.mxu1 %v5013_v19  ;;  %6221 = vrcp.f32 %v2051_v16  ;;  %v5927_v16 = vld [vmem:[#allocation7 + $0x2c4] sm:$0xf0] }
 0x2c0   : > { %2457 = vmatpush.bf16.xpose.msrb.mxu0 %v5001_v27 }
 0x2c4   : > { %v6220_v24 = vpop.eup %6219 }
 0x2c5   : > { %v6222_v25 = vpop.eup %6221  ;;  %v2054_v30 = vmul.f32 %v6220_v24, %v1915_v48  ;;  %v5157_v48 = vor.u32 %v5932_v26, %v5154_v23  ;;  %v5926_v24 = vld [vmem:[#allocation7 + $0x2c4] sm:$0xf]  ;;  %v5924_v26 = vld [vmem:[#allocation7 + $0x2b4] sm:$0xf]  ;;  %v5122_v23 = vld [vmem:[#allocation7 + $0x2b8] sm:$0xf0] }
 0x2c6   : > { %v2055_v32 = vmul.f32 %v6222_v25, %v1917_v39  ;;  %v5931_v39 = vld [vmem:[#allocation7 + $0x2e4] sm:$0xf0]  ;;  %v5130_v25 = vld [vmem:[#allocation7 + $0x2c8] sm:$0xf0] }
 0x2c7   : > { %2471 = vmatpush.bf16.xpose.msrb.mxu1 %v5005_v29  ;;  %v5145_v53 = vor.u32 %v5931_v39, %v5144_v33  ;;  %v5903_v33 = vld [vmem:[#allocation10 + $0x208] sm:$0xff] }
 0x2c8   : > { %2458 = vmatpush.bf16.xpose.msrb.mxu0 %v4993_v37  ;;  %v5911_v39 = vld [vmem:[#allocation10 + $0x248] sm:$0xff] }
 0x2cf   : > { %2472 = vmatpush.bf16.xpose.msrb.mxu1 %v4997_v40  ;;  %v5917_v40 = vld [vmem:[#allocation10 + $0x278] sm:$0xff] }
 0x2d0   : > { %2459 = vmatpush.bf16.xpose.msrb.mxu0 %v4985_v44  ;;  %2640 = vmatpush.bf16.xpose.msrb.mxu3 %v5917_v40  ;;  %v5908_v44 = vld [vmem:[#allocation10 + $0x230] sm:$0xff] }
 0x2d1   : > { %2627 = vmatpush.bf16.xpose.msrb.mxu2 %v5908_v44  ;;  %v5904_v40 = vld [vmem:[#allocation10 + $0x210] sm:$0xff]  ;;  %v5125_v44 = vor.u32 %v5924_v26, %v5122_v23  ;;  %v5192_v23 = vld [vmem:[#allocation8 + $0x2c0] sm:$0xf] }
 0x2d7   : > { %2473 = vmatpush.bf16.xpose.msrb.mxu1 %v4989_v49  ;;  %v5916_v49 = vld [vmem:[#allocation10 + $0x270] sm:$0xff] }
 0x2d8   : > { %2460 = vmatpush.bf16.xpose.msrb.mxu0 %v4977_v47  ;;  %2641 = vmatpush.bf16.xpose.msrb.mxu3 %v5916_v49  ;;  %v5136_v47 = vld [vmem:[#allocation7 + $0x2d0] sm:$0xf]  ;;  %v5112_v49 = vld [vmem:[#allocation7 + $0x2a0] sm:$0xf] }
 0x2d9   : > { %v5137_v1 = vor.u32 %v5929_v57, %v5136_v47  ;;  %2628 = vmatpush.bf16.xpose.msrb.mxu2 %v5907_v56  ;;  %v5216_v56 = vld [vmem:[#allocation8 + $0x2f0] sm:$0xf]  ;;  %v5949_v47 = vld [vmem:[#allocation8 + $0x2f4] sm:$0xf0]  ;;  %v5948_v57 = vld [vmem:[#allocation8 + $0x2f4] sm:$0xf] }
 0x2df   : > { %2474 = vmatpush.bf16.xpose.msrb.mxu1 %v4981_v60  ;;  %v5928_v60 = vld [vmem:[#allocation7 + $0x2d4] sm:$0xf] }
 0x2e0   : > { %2461 = vmatpush.bf16.xpose.msrb.mxu0 %v4969_v7  ;;  %2642 = vmatpush.bf16.xpose.msrb.mxu3 %v5915_v12  ;;  %v5218_v12 = vld [vmem:[#allocation8 + $0x2f8] sm:$0xf0] }
 0x2e1   : > { %2629 = vmatpush.bf16.xpose.msrb.mxu2 %v5906_v22 }
 0x2e7   : > { %v6781_v62 = vpop.f32.mrf.mxu2  ;;  %v6783_v63 = vpop.f32.mrf.mxu3  ;;  %2475 = vmatpush.bf16.xpose.msrb.mxu1 %v4973_v10  ;;  %v5141_v10 = vor.u32 %v5928_v60, %v5138_v9  ;;  %v5104_v60 = vld [vmem:[#allocation7 + $0x290] sm:$0xf]  ;;  %v5921_v9 = vld [vmem:[#allocation7 + $0x294] sm:$0xf0] }
 0x2e8   : > { %v5105_v22 = vor.u32 %v5921_v9, %v5104_v60  ;;  %v5176_v9 = vld [vmem:[#allocation8 + $0x2a0] sm:$0xf] }
 0x2ef   : > { %v6785_v50 = vpop.f32.mrf.mxu2  ;;  %v6787_v13 = vpop.f32.mrf.mxu3 }
 0x2f7   : > { %v2025_v19 = vpop.f32.mrf.mxu2  ;;  %v2039_v21 = vpop.f32.mrf.mxu3 }
 0x2f8   : > { %v2040_v27 = vadd.f32 %v2039_v21, %v2025_v19  ;;  %v5914_v21 = vld [vmem:[#allocation10 + $0x260] sm:$0xff] }
 0x2f9   : > { %2643 = vmatpush.bf16.xpose.msrb.mxu3 %v5914_v21  ;;  %v5947_v21 = vld [vmem:[#allocation8 + $0x2e4] sm:$0xf0] }
 0x2fa   : > { %v2056_v35 = vmul.f32 %v2054_v30, %v2040_v27 }
 0x2ff   : > { %v2027_v28 = vpop.f32.mrf.mxu2  ;;  %v2041_v29 = vpop.f32.mrf.mxu3 }
 0x300   : > { %v2042_v34 = vadd.f32 %v2041_v29, %v2027_v28  ;;  %v5129_v28 = vor.u32 %v5927_v16, %v5128_v15  ;;  %v429_v29 = vshll.u32 %v428_v14, 16  ;;  %v5221_v14 = vor.u32 %v5948_v57, %v5218_v12  ;;  %v5208_v16 = vld [vmem:[#allocation8 + $0x2e0] sm:$0xf] }
 0x302   : > { %v2057_v36 = vmul.f32 %v2055_v32, %v2042_v34  ;;  %v5133_v32 = vor.u32 %v5926_v24, %v5130_v25  ;;  %v5946_v24 = vld [vmem:[#allocation8 + $0x2e4] sm:$0xf]  ;;  %v5210_v25 = vld [vmem:[#allocation8 + $0x2e8] sm:$0xf0] }
 0x304   : > { %v2058_v37 = vpack.c.bf16 %v2057_v36, %v2056_v35  ;;  %v5905_v36 = vld [vmem:[#allocation10 + $0x218] sm:$0xff] }
 0x305   : > { %2630 = vmatpush.bf16.xpose.msrb.mxu2 %v5905_v36 }
 0x306   : > { %2196 = vmatmul.bf16.vlgmr.msra.gmra.mxu0 %v2058_v37  ;;  %2210 = vmatmul.bf16.vlgmr.msra.gmra.mxu1 %v2058_v37  ;;  %v5913_v37 = vld [vmem:[#allocation10 + $0x258] sm:$0xff] }
 0x307   : > { %2767 = vmatpush.bf16.xpose.msra.mxu0 %v5153_v8  ;;  %2781 = vmatpush.bf16.xpose.msra.mxu1 %v5157_v48  ;;  %v5925_v8 = vld [vmem:[#allocation7 + $0x2b4] sm:$0xf0] }
 0x308   : > { %2644 = vmatpush.bf16.xpose.msrb.mxu3 %v5913_v37  ;;  %v5121_v48 = vor.u32 %v5925_v8, %v5120_v45  ;;  %v5202_v8 = vld [vmem:[#allocation8 + $0x2d8] sm:$0xf0] }
 0x30d   : > { %2631 = vmatpush.bf16.xpose.msrb.mxu2 %v5904_v40  ;;  %v5945_v40 = vld [vmem:[#allocation8 + $0x2d4] sm:$0xf0] }
 0x30f   : > { %2768 = vmatpush.bf16.xpose.msra.mxu0 %v5145_v53  ;;  %2782 = vmatpush.bf16.xpose.msra.mxu1 %v5149_v54  ;;  %v5114_v53 = vld [vmem:[#allocation7 + $0x2a8] sm:$0xf0]  ;;  %v5113_v54 = vor.u32 %v5923_v51, %v5112_v49 }
 0x310   : > { %2645 = vmatpush.bf16.xpose.msrb.mxu3 %v5912_v41  ;;  %v5117_v55 = vor.u32 %v5922_v52, %v5114_v53  ;;  %v5944_v41 = vld [vmem:[#allocation8 + $0x2d4] sm:$0xf]  ;;  %v5184_v53 = vld [vmem:[#allocation8 + $0x2b0] sm:$0xf] }
 0x311   : > { %v5205_v26 = vor.u32 %v5944_v41, %v5202_v8 }
 0x315   : > { %2632 = vmatpush.bf16.xpose.msrb.mxu2 %v5903_v33 }
 0x316   : > { %2462 = vmatmul.bf16.vlgmr.msrb.gmra.mxu0 %v6683_v42  ;;  %2476 = vmatmul.bf16.vlgmr.msrb.gmra.mxu1 %v6687_v43 }
 0x317   : > { %2769 = vmatpush.bf16.xpose.msra.mxu0 %v5137_v1  ;;  %2783 = vmatpush.bf16.xpose.msra.mxu1 %v5141_v10  ;;  %v5106_v1 = vld [vmem:[#allocation7 + $0x298] sm:$0xf0]  ;;  %v5217_v10 = vor.u32 %v5949_v47, %v5216_v56 }
 0x318   : > { %2646 = vmatpush.bf16.xpose.msrb.mxu3 %v5911_v39  ;;  %v5194_v39 = vld [vmem:[#allocation8 + $0x2c8] sm:$0xf0]  ;;  %v5186_v47 = vld [vmem:[#allocation8 + $0x2b8] sm:$0xf0] }
 0x31f   : > { %2770 = vmatpush.bf16.xpose.msra.mxu0 %v5129_v28  ;;  %2784 = vmatpush.bf16.xpose.msra.mxu1 %v5133_v32  ;;  %v5918_v28 = vld [vmem:[#allocation7 + $0x284] sm:$0xf]  ;;  %v5213_v32 = vor.u32 %v5946_v24, %v5210_v25  ;;  %v5937_v24 = vld [vmem:[#allocation8 + $0x294] sm:$0xf0]  ;;  %v5936_v25 = vld [vmem:[#allocation8 + $0x294] sm:$0xf] }
 0x322   : > { %v411_v0 = vpop.xlane.xlu2 %410 }
 0x323   : > { %v412_v7 = vcvt.f32.s32 %v411_v0  ;;  %v5920_v0 = vld [vmem:[#allocation7 + $0x294] sm:$0xf] }
 0x324   : > { %v5109_v15 = vor.u32 %v5920_v0, %v5106_v1  ;;  %v5939_v0 = vld [vmem:[#allocation8 + $0x2a4] sm:$0xf0]  ;;  %v5938_v1 = vld [vmem:[#allocation8 + $0x2a4] sm:$0xf] }
 0x325   : > { %v6792_v11 = vadd.s32 %v414_v2, %v412_v7  ;;  %v5902_v2 = vld [vmem:[#allocation10 + $0x200] sm:$0xff] }
 0x326   : > { %v5910_v7 = vld [vmem:[#allocation10 + $0x240] sm:$0xff]  ;;  %2633 = vmatpush.bf16.xpose.msrb.mxu2 %v5902_v2 }
 0x327   : > { %vm431_vm5 = vcmp.eq.s32.totalorder %v6739_v20, %v6792_v11  ;;  %2771 = vmatpush.bf16.xpose.msra.mxu0 %v5121_v48  ;;  %2785 = vmatpush.bf16.xpose.msra.mxu1 %v5125_v44  ;;  %v5943_v48 = vld [vmem:[#allocation8 + $0x2c4] sm:$0xf0]  ;;  %v5942_v44 = vld [vmem:[#allocation8 + $0x2c4] sm:$0xf]  ;;  %v2338_v51 = vpop.f32.mrf.mxu2  ;;  %v2352_v52 = vpop.f32.mrf.mxu3 }
 0x328   : > { %v6801_v19 = vsel %vm431_vm5, -1.0, %v6726_v31  ;;  %2647 = vmatpush.bf16.xpose.msrb.mxu3 %v5910_v7  ;;  %v5193_v33 = vor.u32 %v5943_v48, %v5192_v23  ;;  %v5197_v49 = vor.u32 %v5942_v44, %v5194_v39  ;;  %v2353_v2 = vadd.f32 %v2352_v52, %v2338_v51  ;;  %v5965_v51 = vld [vmem:[#allocation10 + $0x2f8] sm:$0xff] }
 0x329   : > { %v437_v27 = vsel %vm366_vm0, %v6801_v19, -inf  ;;  %v5177_v7 = vor.u32 %v5939_v0, %v5176_v9  ;;  %v5344_v9 = vld [vmem:[#allocation7 + $0x370] sm:$0xf] }
 0x32a   : > { %438 = vmax.xlane.f32.xlu1 %v437_v27  ;;  %v426_v61 = vpop.xlane.xlu0 %425  ;;  %v5096_v27 = vld [vmem:[#allocation7 + $0x280] sm:$0xf] }
 0x32b   : > { %v427_v30 = vcvt.f32.s32 %v426_v61  ;;  %v5919_v61 = vld [vmem:[#allocation7 + $0x284] sm:$0xf0] }
 0x32c   : > { %v5097_v36 = vor.u32 %v5919_v61, %v5096_v27 }
 0x32d   : > { %v6805_v34 = vadd.s32 %v429_v29, %v427_v30  ;;  %v5098_v29 = vld [vmem:[#allocation7 + $0x288] sm:$0xf0]  ;;  %v5209_v30 = vor.u32 %v5947_v21, %v5208_v16  ;;  %v5168_v21 = vld [vmem:[#allocation8 + $0x290] sm:$0xf] }
 0x32e   : > { %2892 = vmatpush.bf16.xpose.msra.mxu2 %v5217_v10  ;;  %v5101_v37 = vor.u32 %v5918_v28, %v5098_v29  ;;  %v5178_v10 = vld [vmem:[#allocation8 + $0x2a8] sm:$0xf0]  ;;  %v5169_v61 = vor.u32 %v5937_v24, %v5168_v21  ;;  %v5170_v28 = vld [vmem:[#allocation8 + $0x298] sm:$0xf0] }
 0x32f   : > { %vm432_vm6 = vcmp.eq.s32.totalorder %v6739_v20, %v6805_v34  ;;  %2772 = vmatpush.bf16.xpose.msra.mxu0 %v5113_v54  ;;  %2786 = vmatpush.bf16.xpose.msra.mxu1 %v5117_v55  ;;  %v5941_v54 = vld [vmem:[#allocation8 + $0x2b4] sm:$0xf0]  ;;  %v5940_v55 = vld [vmem:[#allocation8 + $0x2b4] sm:$0xf]  ;;  %v2340_v12 = vpop.f32.mrf.mxu2  ;;  %v2354_v60 = vpop.f32.mrf.mxu3  ;;  %v6496_v34 = vmov 2  }
 0x330   : > { %v6813_v35 = vsel %vm432_vm6, -1.0, %v6731_v46  ;;  %2906 = vmatpush.bf16.xpose.msra.mxu3 %v5221_v14  ;;  %v5185_v56 = vor.u32 %v5941_v54, %v5184_v53  ;;  %v5189_v57 = vor.u32 %v5940_v55, %v5186_v47  ;;  %v2355_v14 = vadd.f32 %v2354_v60, %v2340_v12  ;;  %v5956_v55 = vld [vmem:[#allocation10 + $0x2b0] sm:$0xff] }
 0x331   : > { %v440_v38 = vsel %vm366_vm0, %v6813_v35, -inf }
 0x332   : > { %441 = vmax.xlane.f32.xlu2 %v440_v38  ;;  %v5200_v38 = vld [vmem:[#allocation8 + $0x2d0] sm:$0xf]  ;;  %v2483_v16 = vsub.f32 0.0, %v2355_v14 }
 0x333   : > { %v5201_v45 = vor.u32 %v5945_v40, %v5200_v38  ;;  %v5935_v38 = vld [vmem:[#allocation8 + $0x284] sm:$0xf0]  ;;  %v5934_v40 = vld [vmem:[#allocation8 + $0x284] sm:$0xf] }
 0x334   : > { %v2486_v29 = vmul.f32 1.442695, %v2483_v16 }
 0x336   : > { %2893 = vmatpush.bf16.xpose.msra.mxu2 %v5209_v30  ;;  %v5173_v30 = vor.u32 %v5936_v25, %v5170_v28 }
 0x337   : > { %2773 = vmatpush.bf16.xpose.msra.mxu0 %v5105_v22  ;;  %2787 = vmatpush.bf16.xpose.msra.mxu1 %v5109_v15  ;;  %v5181_v22 = vor.u32 %v5938_v1, %v5178_v10  ;;  %v2482_v15 = vsub.f32 0.0, %v2353_v2  ;;  %v5981_v10 = vld [vmem:[#allocation7 + $0x374] sm:$0xf0] }
 0x338   : > { %2907 = vmatpush.bf16.xpose.msra.mxu3 %v5213_v32  ;;  %v5345_v25 = vor.u32 %v5981_v10, %v5344_v9  ;;  %v5975_v9 = vld [vmem:[#allocation7 + $0x344] sm:$0xf0] }
 0x339   : > { %v2484_v27 = vmul.f32 1.442695, %v2482_v15  ;;  %v5346_v15 = vld [vmem:[#allocation7 + $0x378] sm:$0xf0] }
 0x33b   : > { %6223 = vpow2.f32 %v2484_v27 }
 0x33c   : > { %6225 = vpow2.f32 %v2486_v29  ;;  %v5955_v29 = vld [vmem:[#allocation10 + $0x2a8] sm:$0xff] }
 0x33e   : > { %2894 = vmatpush.bf16.xpose.msra.mxu2 %v5201_v45  ;;  %v5162_v45 = vld [vmem:[#allocation8 + $0x288] sm:$0xf0] }
 0x33f   : > { %2774 = vmatpush.bf16.xpose.msra.mxu0 %v5097_v36  ;;  %2788 = vmatpush.bf16.xpose.msra.mxu1 %v5101_v37  ;;  %v5160_v37 = vld [vmem:[#allocation8 + $0x280] sm:$0xf]  ;;  %v5165_v8 = vor.u32 %v5934_v40, %v5162_v45  ;;  %v5978_v40 = vld [vmem:[#allocation7 + $0x364] sm:$0xf] }
 0x340   : > { %2908 = vmatpush.bf16.xpose.msra.mxu3 %v5205_v26  ;;  %v5161_v41 = vor.u32 %v5935_v38, %v5160_v37  ;;  %v5336_v37 = vld [vmem:[#allocation7 + $0x360] sm:$0xf] }
 0x341   : > { %v6224_v26 = vpop.eup %6223 }
 0x342   : > { %v6226_v44 = vpop.eup %6225 }
 0x343   : > { %v2489_v39 = vadd.f32 1.0, %v6226_v44 }
 0x346   : > { %2775 = vmatmul.bf16.vlgmr.msra.gmra.mxu0 %v6683_v42  ;;  %2789 = vmatmul.bf16.vlgmr.msra.gmra.mxu1 %v6687_v43 }
 0x347   : > { %2895 = vmatpush.bf16.xpose.msra.mxu2 %v5193_v33  ;;  %v2488_v33 = vadd.f32 1.0, %v6224_v26  ;;  %3078 = vmatpush.bf16.xpose.msrb.mxu1 %v5965_v51 }
 0x348   : > { %2909 = vmatpush.bf16.xpose.msra.mxu3 %v5197_v49  ;;  %v5957_v49 = vld [vmem:[#allocation10 + $0x2b8] sm:$0xff] }
 0x349   : > { %6227 = vrcp.f32 %v2488_v33  ;;  %3064 = vmatpush.bf16.xpose.msrb.mxu0 %v5957_v49  ;;  %v5954_v33 = vld [vmem:[#allocation10 + $0x2a0] sm:$0xff] }
 0x34a   : > { %6229 = vrcp.f32 %v2489_v39  ;;  %v5962_v39 = vld [vmem:[#allocation10 + $0x2e0] sm:$0xff] }
 0x34f   : > { %2896 = vmatpush.bf16.xpose.msra.mxu2 %v5185_v56  ;;  %v6228_v54 = vpop.eup %6227  ;;  %v5964_v56 = vld [vmem:[#allocation10 + $0x2f0] sm:$0xff] }
 0x350   : > { %2910 = vmatpush.bf16.xpose.msra.mxu3 %v5189_v57  ;;  %v6230_v47 = vpop.eup %6229  ;;  %v2492_v0 = vmul.f32 %v6228_v54, %v2353_v2  ;;  %3079 = vmatpush.bf16.xpose.msrb.mxu1 %v5964_v56  ;;  %v5977_v54 = vld [vmem:[#allocation7 + $0x354] sm:$0xf0]  ;;  %v5330_v56 = vld [vmem:[#allocation7 + $0x358] sm:$0xf0] }
 0x351   : > { %v2493_v1 = vmul.f32 %v6230_v47, %v2355_v14  ;;  %3065 = vmatpush.bf16.xpose.msrb.mxu0 %v5956_v55  ;;  %v5976_v55 = vld [vmem:[#allocation7 + $0x354] sm:$0xf] }
 0x352   : > { %v5333_v47 = vor.u32 %v5976_v55, %v5330_v56  ;;  %v5408_v55 = vld [vmem:[#allocation8 + $0x370] sm:$0xf]  ;;  %v5997_v56 = vld [vmem:[#allocation8 + $0x374] sm:$0xf0] }
 0x357   : > { %2897 = vmatpush.bf16.xpose.msra.mxu2 %v5177_v7 }
 0x358   : > { %2911 = vmatpush.bf16.xpose.msra.mxu3 %v5181_v22  ;;  %v5980_v22 = vld [vmem:[#allocation7 + $0x374] sm:$0xf] }
 0x359   : > { %v5349_v27 = vor.u32 %v5980_v22, %v5346_v15  ;;  %3066 = vmatpush.bf16.xpose.msrb.mxu0 %v5955_v29  ;;  %v5312_v22 = vld [vmem:[#allocation7 + $0x330] sm:$0xf]  ;;  %v5973_v15 = vld [vmem:[#allocation7 + $0x334] sm:$0xf0]  ;;  %v5971_v29 = vld [vmem:[#allocation7 + $0x324] sm:$0xf0] }
 0x35f   : > { %2898 = vmatpush.bf16.xpose.msra.mxu2 %v5169_v61 }
 0x360   : > { %2912 = vmatpush.bf16.xpose.msra.mxu3 %v5173_v30  ;;  %v5963_v30 = vld [vmem:[#allocation10 + $0x2e8] sm:$0xff] }
 0x361   : > { %3080 = vmatpush.bf16.xpose.msrb.mxu1 %v5963_v30  ;;  %3067 = vmatpush.bf16.xpose.msrb.mxu0 %v5954_v33  ;;  %v5970_v30 = vld [vmem:[#allocation7 + $0x324] sm:$0xf] }
 0x367   : > { %2899 = vmatpush.bf16.xpose.msra.mxu2 %v5161_v41  ;;  %v5338_v41 = vld [vmem:[#allocation7 + $0x368] sm:$0xf0] }
 0x368   : > { %2913 = vmatpush.bf16.xpose.msra.mxu3 %v5165_v8  ;;  %v5341_v26 = vor.u32 %v5978_v40, %v5338_v41  ;;  %v5951_v40 = vld [vmem:[#allocation10 + $0x288] sm:$0xff] }
 0x369   : > { %3081 = vmatpush.bf16.xpose.msrb.mxu1 %v5962_v39  ;;  %v5959_v41 = vld [vmem:[#allocation10 + $0x2c8] sm:$0xff] }
 0x383   : > { %v6819_v32 = vpop.f32.mrf.mxu0  ;;  %v6821_v36 = vpop.f32.mrf.mxu1 }
 0x38b   : > { %v6823_v23 = vpop.f32.mrf.mxu0  ;;  %v6825_v48 = vpop.f32.mrf.mxu1 }
 0x393   : > { %v2463_v52 = vpop.f32.mrf.mxu0  ;;  %v2477_v53 = vpop.f32.mrf.mxu1 }
 0x394   : > { %v2478_v57 = vadd.f32 %v2477_v53, %v2463_v52  ;;  %v5328_v52 = vld [vmem:[#allocation7 + $0x350] sm:$0xf] }
 0x396   : > { %v2494_v16 = vmul.f32 %v2492_v0, %v2478_v57  ;;  %v5953_v57 = vld [vmem:[#allocation10 + $0x298] sm:$0xff]  ;;  %v5974_v0 = vld [vmem:[#allocation7 + $0x344] sm:$0xf] }
 0x397   : > { %3068 = vmatpush.bf16.xpose.msrb.mxu0 %v5953_v57  ;;  %v5410_v57 = vld [vmem:[#allocation8 + $0x378] sm:$0xf0] }
 0x39b   : > { %v2465_v12 = vpop.f32.mrf.mxu0  ;;  %v2479_v60 = vpop.f32.mrf.mxu1 }
 0x39c   : > { %v2480_v7 = vadd.f32 %v2479_v60, %v2465_v12  ;;  %v5961_v12 = vld [vmem:[#allocation10 + $0x2d8] sm:$0xff]  ;;  %v5320_v60 = vld [vmem:[#allocation7 + $0x340] sm:$0xf] }
 0x39d   : > { %v439_v24 = vpop.xlane.xlu1 %438  ;;  %3082 = vmatpush.bf16.xpose.msrb.mxu1 %v5961_v12  ;;  %v5950_v12 = vld [vmem:[#allocation10 + $0x280] sm:$0xff] }
 0x39e   : > { %v2495_v21 = vmul.f32 %v2493_v1, %v2480_v7  ;;  %vm443_vm7 = vcmp.eq.f32.partialorder %v6801_v19, %v439_v24  ;;  %v5979_v19 = vld [vmem:[#allocation7 + $0x364] sm:$0xf0]  ;;  %v5322_v1 = vld [vmem:[#allocation7 + $0x348] sm:$0xf0]  ;;  %v5321_v7 = vor.u32 %v5975_v9, %v5320_v60  ;;  %v5313_v24 = vor.u32 %v5973_v15, %v5312_v22  ;;  %v5958_v60 = vld [vmem:[#allocation10 + $0x2c0] sm:$0xff] }
 0x39f   : > { %v445_v28 = vsel %vm443_vm7, %v6739_v20, 8  ;;  %v5337_v8 = vor.u32 %v5979_v19, %v5336_v37  ;;  %v5325_v10 = vor.u32 %v5974_v0, %v5322_v1  ;;  %v5409_v9 = vor.u32 %v5997_v56, %v5408_v55  ;;  %v5995_v22 = vld [vmem:[#allocation8 + $0x364] sm:$0xf0]  ;;  %v5994_v15 = vld [vmem:[#allocation8 + $0x364] sm:$0xf] }
 0x3a0   : > { %v2496_v61 = vpack.c.bf16 %v2495_v21, %v2494_v16  ;;  %v6830_v2 = vsel %vm366_vm0, %v445_v28, 2147483647  ;;  %v5972_v16 = vld [vmem:[#allocation7 + $0x334] sm:$0xf]  ;;  %v5314_v21 = vld [vmem:[#allocation7 + $0x338] sm:$0xf0] }
 0x3a1   : > { %v449_v14 = vshra.s32 %v6830_v2, 16  ;;  %v5304_v28 = vld [vmem:[#allocation7 + $0x320] sm:$0xf]  ;;  %v448_v55 = vand.u32 65535, %v6830_v2 }
 0x3a2   : > { %2634 = vmatmul.bf16.vlgmr.msrb.gmra.mxu2 %v2496_v61  ;;  %2648 = vmatmul.bf16.vlgmr.msrb.gmra.mxu3 %v2496_v61  ;;  %v5960_v61 = vld [vmem:[#allocation10 + $0x2d0] sm:$0xff]  ;;  %v5305_v37 = vor.u32 %v5971_v29, %v5304_v28  ;;  %v5394_v29 = vld [vmem:[#allocation8 + $0x358] sm:$0xf0] }
 0x3a3   : > { %3205 = vmatpush.bf16.xpose.msrb.mxu2 %v5345_v25  ;;  %3219 = vmatpush.bf16.xpose.msrb.mxu3 %v5349_v27  ;;  %v6833_v38 = vcvt.s32.f32 %v449_v14  ;;  %v5317_v25 = vor.u32 %v5972_v16, %v5314_v21  ;;  %v5952_v27 = vld [vmem:[#allocation10 + $0x290] sm:$0xff]  ;;  %v5306_v14 = vld [vmem:[#allocation7 + $0x328] sm:$0xf0] }
 0x3a4   : > { %3069 = vmatpush.bf16.xpose.msrb.mxu0 %v5952_v27  ;;  %v5309_v19 = vor.u32 %v5970_v30, %v5306_v14  ;;  %v5402_v21 = vld [vmem:[#allocation8 + $0x368] sm:$0xf0]  ;;  %v5993_v27 = vld [vmem:[#allocation8 + $0x354] sm:$0xf0]  ;;  %v5384_v14 = vld [vmem:[#allocation8 + $0x340] sm:$0xf] }
 0x3a5   : > { %452 = vmin.xlane.f32.xlu0 %v6833_v38  ;;  %v442_v45 = vpop.xlane.xlu2 %441  ;;  %3083 = vmatpush.bf16.xpose.msrb.mxu1 %v5960_v61  ;;  %v5992_v61 = vld [vmem:[#allocation8 + $0x354] sm:$0xf] }
 0x3a6   : > { %vm444_vm8 = vcmp.eq.f32.partialorder %v6813_v35, %v442_v45  ;;  %v5329_v35 = vor.u32 %v5977_v54, %v5328_v52  ;;  %v5296_v45 = vld [vmem:[#allocation7 + $0x310] sm:$0xf]  ;;  %v5967_v52 = vld [vmem:[#allocation7 + $0x304] sm:$0xf0]  ;;  %v5966_v54 = vld [vmem:[#allocation7 + $0x304] sm:$0xf]  ;;  %v5397_v30 = vor.u32 %v5992_v61, %v5394_v29 }
 0x3a7   : > { %v446_v44 = vsel %vm444_vm8, %v6739_v20, 8  ;;  %v5984_v61 = vld [vmem:[#allocation8 + $0x314] sm:$0xf] }
 0x3a8   : > { %v6839_v49 = vsel %vm366_vm0, %v446_v44, 2147483647  ;;  %v5298_v44 = vld [vmem:[#allocation7 + $0x318] sm:$0xf0] }
 0x3a9   : > { %v464_v51 = vshra.s32 %v6839_v49, 16 }
 0x3ab   : > { %3206 = vmatpush.bf16.xpose.msrb.mxu2 %v5337_v8  ;;  %3220 = vmatpush.bf16.xpose.msrb.mxu3 %v5341_v26  ;;  %v6842_v53 = vcvt.s32.f32 %v464_v51  ;;  %v5969_v8 = vld [vmem:[#allocation7 + $0x314] sm:$0xf0]  ;;  %v5968_v26 = vld [vmem:[#allocation7 + $0x314] sm:$0xf]  ;;  %v5288_v51 = vld [vmem:[#allocation7 + $0x300] sm:$0xf] }
 0x3ac   : > { %3070 = vmatpush.bf16.xpose.msrb.mxu0 %v5951_v40  ;;  %v5297_v33 = vor.u32 %v5969_v8, %v5296_v45  ;;  %v5301_v39 = vor.u32 %v5968_v26, %v5298_v44  ;;  %v5289_v1 = vor.u32 %v5967_v52, %v5288_v51  ;;  %v5376_v44 = vld [vmem:[#allocation8 + $0x330] sm:$0xf]  ;;  %v5378_v52 = vld [vmem:[#allocation8 + $0x338] sm:$0xf0] }
 0x3ad   : > { %467 = vmin.xlane.f32.xlu1 %v6842_v53  ;;  %3084 = vmatpush.bf16.xpose.msrb.mxu1 %v5959_v41  ;;  %v5386_v41 = vld [vmem:[#allocation8 + $0x348] sm:$0xf0] }
 0x3b2   : > { %2900 = vmatmul.bf16.vlgmr.msra.gmra.mxu2 %v6683_v42  ;;  %2914 = vmatmul.bf16.vlgmr.msra.gmra.mxu3 %v6687_v43 }
 0x3b3   : > { %3207 = vmatpush.bf16.xpose.msrb.mxu2 %v5329_v35  ;;  %3221 = vmatpush.bf16.xpose.msrb.mxu3 %v5333_v47  ;;  %v5290_v35 = vld [vmem:[#allocation7 + $0x308] sm:$0xf0]  ;;  %v5996_v47 = vld [vmem:[#allocation8 + $0x374] sm:$0xf] }
 0x3b4   : > { %v5413_v0 = vor.u32 %v5996_v47, %v5410_v57  ;;  %3071 = vmatpush.bf16.xpose.msrb.mxu0 %v5950_v12  ;;  %v450_v57 = vcvt.s32.f32 %v448_v55  ;;  %v5368_v12 = vld [vmem:[#allocation8 + $0x320] sm:$0xf] }
 0x3b5   : > { %3085 = vmatpush.bf16.xpose.msrb.mxu1 %v5958_v60  ;;  %v5987_v60 = vld [vmem:[#allocation8 + $0x324] sm:$0xf0] }
 0x3bb   : > { %3208 = vmatpush.bf16.xpose.msrb.mxu2 %v5321_v7  ;;  %3222 = vmatpush.bf16.xpose.msrb.mxu3 %v5325_v10  ;;  %v5293_v7 = vor.u32 %v5966_v54, %v5290_v35  ;;  %v5400_v10 = vld [vmem:[#allocation8 + $0x360] sm:$0xf] }
 0x3bc   : > { %3330 = vmatpush.bf16.xpose.msra.mxu0 %v5409_v9  ;;  %v5401_v16 = vor.u32 %v5995_v22, %v5400_v10  ;;  %v5986_v9 = vld [vmem:[#allocation8 + $0x324] sm:$0xf]  ;;  %v5370_v10 = vld [vmem:[#allocation8 + $0x328] sm:$0xf0] }
 0x3bd   : > { %3344 = vmatpush.bf16.xpose.msra.mxu1 %v5413_v0  ;;  %v5373_v2 = vor.u32 %v5986_v9, %v5370_v10  ;;  %v6004_v9 = vld [vmem:[#allocation10 + $0x330] sm:$0xff] }
 0x3c3   : > { %3209 = vmatpush.bf16.xpose.msrb.mxu2 %v5313_v24  ;;  %3223 = vmatpush.bf16.xpose.msrb.mxu3 %v5317_v25  ;;  %v5405_v24 = vor.u32 %v5994_v15, %v5402_v21  ;;  %v5392_v25 = vld [vmem:[#allocation8 + $0x350] sm:$0xf]  ;;  %v2776_v8 = vpop.f32.mrf.mxu0  ;;  %v2790_v26 = vpop.f32.mrf.mxu1  ;;  %v463_v15 = vand.u32 65535, %v6839_v49 }
 0x3c4   : > { %3331 = vmatpush.bf16.xpose.msra.mxu0 %v5401_v16  ;;  %v5393_v28 = vor.u32 %v5993_v27, %v5392_v25  ;;  %v2791_v0 = vadd.f32 %v2790_v26, %v2776_v8  ;;  %v5985_v27 = vld [vmem:[#allocation8 + $0x314] sm:$0xf0]  ;;  %v5354_v8 = vld [vmem:[#allocation8 + $0x308] sm:$0xf0] }
 0x3c5   : > { %3345 = vmatpush.bf16.xpose.msra.mxu1 %v5405_v24  ;;  %v465_v25 = vcvt.s32.f32 %v463_v15 }
 0x3c6   : > { %v2920_v16 = vsub.f32 0.0, %v2791_v0 }
 0x3cb   : > { %3210 = vmatpush.bf16.xpose.msrb.mxu2 %v5305_v37  ;;  %3224 = vmatpush.bf16.xpose.msrb.mxu3 %v5309_v19  ;;  %v5991_v37 = vld [vmem:[#allocation8 + $0x344] sm:$0xf0]  ;;  %v5990_v19 = vld [vmem:[#allocation8 + $0x344] sm:$0xf]  ;;  %v2778_v56 = vpop.f32.mrf.mxu0  ;;  %v2792_v35 = vpop.f32.mrf.mxu1 }
 0x3cc   : > { %3332 = vmatpush.bf16.xpose.msra.mxu0 %v5393_v28  ;;  %v5385_v40 = vor.u32 %v5991_v37, %v5384_v14  ;;  %v5389_v45 = vor.u32 %v5990_v19, %v5386_v41  ;;  %v2793_v22 = vadd.f32 %v2792_v35, %v2778_v56  ;;  %v2922_v28 = vmul.f32 1.442695, %v2920_v16  ;;  %v5362_v14 = vld [vmem:[#allocation8 + $0x318] sm:$0xf0]  ;;  %v5352_v41 = vld [vmem:[#allocation8 + $0x300] sm:$0xf] }
 0x3cd   : > { %3346 = vmatpush.bf16.xpose.msra.mxu1 %v5397_v30  ;;  %v5365_v49 = vor.u32 %v5984_v61, %v5362_v14  ;;  %v6005_v56 = vld [vmem:[#allocation10 + $0x338] sm:$0xff]  ;;  %v5536_v16 = vld [vmem:[#allocation7 + $0x3f0] sm:$0xf]  ;;  %v6028_v61 = vld [vmem:[#allocation7 + $0x3f4] sm:$0xf] }
 0x3ce   : > { %v2921_v21 = vsub.f32 0.0, %v2793_v22  ;;  %6231 = vpow2.f32 %v2922_v28  ;;  %v6013_v35 = vld [vmem:[#allocation10 + $0x378] sm:$0xff] }
 0x3cf   : > { %v5538_v28 = vld [vmem:[#allocation7 + $0x3f8] sm:$0xf0] }
 0x3d0   : > { %v2924_v37 = vmul.f32 1.442695, %v2921_v21 }
 0x3d2   : > { %6233 = vpow2.f32 %v2924_v37  ;;  %v5541_v37 = vor.u32 %v6028_v61, %v5538_v28  ;;  %v6008_v61 = vld [vmem:[#allocation10 + $0x350] sm:$0xff] }
 0x3d3   : > { %3211 = vmatpush.bf16.xpose.msrb.mxu2 %v5297_v33  ;;  %3225 = vmatpush.bf16.xpose.msrb.mxu3 %v5301_v39  ;;  %v5989_v33 = vld [vmem:[#allocation8 + $0x334] sm:$0xf0]  ;;  %v5988_v39 = vld [vmem:[#allocation8 + $0x334] sm:$0xf]  ;;  %v5504_v28 = vld [vmem:[#allocation7 + $0x3b0] sm:$0xf] }
 0x3d4   : > { %3333 = vmatpush.bf16.xpose.msra.mxu0 %v5385_v40  ;;  %v5377_v51 = vor.u32 %v5989_v33, %v5376_v44  ;;  %v5381_v54 = vor.u32 %v5988_v39, %v5378_v52  ;;  %v6232_v33 = vpop.eup %6231 }
 0x3d5   : > { %3347 = vmatpush.bf16.xpose.msra.mxu1 %v5389_v45  ;;  %v5983_v45 = vld [vmem:[#allocation8 + $0x304] sm:$0xf0] }
 0x3d6   : > { %v5353_v26 = vor.u32 %v5983_v45, %v5352_v41  ;;  %v6003_v41 = vld [vmem:[#allocation10 + $0x328] sm:$0xff] }
 0x3d7   : > { %v6011_v45 = vld [vmem:[#allocation10 + $0x368] sm:$0xff] }
 0x3d8   : > { %v6234_v52 = vpop.eup %6233 }
 0x3d9   : > { %v2927_v55 = vadd.f32 1.0, %v6234_v52  ;;  %v6010_v52 = vld [vmem:[#allocation10 + $0x360] sm:$0xff] }
 0x3db   : > { %3212 = vmatpush.bf16.xpose.msrb.mxu2 %v5289_v1  ;;  %3226 = vmatpush.bf16.xpose.msrb.mxu3 %v5293_v7  ;;  %v5369_v7 = vor.u32 %v5987_v60, %v5368_v12 }
 0x3dc   : > { %3334 = vmatpush.bf16.xpose.msra.mxu0 %v5377_v51 }
 0x3dd   : > { %3348 = vmatpush.bf16.xpose.msra.mxu1 %v5381_v54  ;;  %v2926_v54 = vadd.f32 1.0, %v6232_v33  ;;  %v6002_v33 = vld [vmem:[#allocation10 + $0x320] sm:$0xff] }
 0x3df   : > { %6235 = vrcp.f32 %v2926_v54  ;;  %v5520_v54 = vld [vmem:[#allocation7 + $0x3d0] sm:$0xf] }
 0x3e0   : > { %6237 = vrcp.f32 %v2927_v55  ;;  %v6025_v55 = vld [vmem:[#allocation7 + $0x3d4] sm:$0xf0] }
 0x3e2   : > { %3213 = vmatmul.bf16.vlgmr.msrb.gmra.mxu2 %v6683_v42  ;;  %3227 = vmatmul.bf16.vlgmr.msrb.gmra.mxu3 %v6687_v43 }
 0x3e3   : > { %3502 = vmatpush.bf16.xpose.msra.mxu2 %v6005_v56  ;;  %3516 = vmatpush.bf16.xpose.msra.mxu3 %v6013_v35  ;;  %v6024_v56 = vld [vmem:[#allocation7 + $0x3d4] sm:$0xf]  ;;  %v5521_v35 = vor.u32 %v6025_v55, %v5520_v54 }
 0x3e4   : > { %3335 = vmatpush.bf16.xpose.msra.mxu0 %v5369_v7 }
 0x3e5   : > { %3349 = vmatpush.bf16.xpose.msra.mxu1 %v5373_v2  ;;  %v6236_v60 = vpop.eup %6235 }
 0x3e6   : > { %v6238_v7 = vpop.eup %6237  ;;  %v2930_v21 = vmul.f32 %v6236_v60, %v2791_v0  ;;  %v6027_v0 = vld [vmem:[#allocation7 + $0x3e4] sm:$0xf0]  ;;  %v6491_v60 = vmov 5  }
 0x3e7   : > { %6172 = vset.pattern.permute.xlu2 %v6491_v60 }
 0x3eb   : > { %3503 = vmatpush.bf16.xpose.msra.mxu2 %v6004_v9  ;;  %v6492_v9 = vmov 1  }
 0x3ec   : > { %6168 = vset.pattern.permute.xlu0 %v6492_v9 }
 0x3ed   : > { %3350 = vmatpush.bf16.xpose.msra.mxu1 %v5365_v49 }
 0x3f3   : > { %3504 = vmatpush.bf16.xpose.msra.mxu2 %v6003_v41  ;;  %v5999_v41 = vld [vmem:[#allocation10 + $0x308] sm:$0xff] }
 0x3fb   : > { %3505 = vmatpush.bf16.xpose.msra.mxu2 %v6002_v33 }
 0x418   : > { %v6850_v47 = vpop.xlane.xlu0 %452 }
 0x419   : > { %vm454_vm9 = vcmp.eq.f32.partialorder %v6833_v38, %v6850_v47  ;;  %v5360_v38 = vld [vmem:[#allocation8 + $0x310] sm:$0xf] }
 0x41a   : > { %v455_v1 = vsel %vm454_vm9, %v450_v57, inf  ;;  %v5361_v30 = vor.u32 %v5985_v27, %v5360_v38  ;;  %v6029_v27 = vld [vmem:[#allocation7 + $0x3f4] sm:$0xf0] }
 0x41b   : > { %456 = vmin.xlane.f32.xlu2 %v455_v1  ;;  %v6012_v1 = vld [vmem:[#allocation10 + $0x370] sm:$0xff]  ;;  %v5537_v14 = vor.u32 %v6029_v27, %v5536_v16  ;;  %v6022_v16 = vld [vmem:[#allocation7 + $0x3c4] sm:$0xf] }
 0x41c   : > { %3336 = vmatpush.bf16.xpose.msra.mxu0 %v5361_v30  ;;  %3517 = vmatpush.bf16.xpose.msra.mxu3 %v6012_v1  ;;  %v6493_v1 = vmov 0   ;;  %v6000_v27 = vld [vmem:[#allocation10 + $0x310] sm:$0xff] }
 0x41d   : > { %6167 = vset.pattern.permute.xlu1 %v6493_v1 }
 0x420   : > { %v6855_v24 = vpop.xlane.xlu1 %467 }
 0x421   : > { %vm469_vm10 = vcmp.eq.f32.partialorder %v6842_v53, %v6855_v24  ;;  %v5982_v53 = vld [vmem:[#allocation8 + $0x304] sm:$0xf] }
 0x422   : > { %v470_v29 = vsel %vm469_vm10, %v465_v25, inf  ;;  %v5357_v44 = vor.u32 %v5982_v53, %v5354_v8  ;;  %v2931_v25 = vmul.f32 %v6238_v7, %v2793_v22  ;;  %v5528_v53 = vld [vmem:[#allocation7 + $0x3e0] sm:$0xf]  ;;  %v6026_v22 = vld [vmem:[#allocation7 + $0x3e4] sm:$0xf]  ;;  %v6001_v7 = vld [vmem:[#allocation10 + $0x318] sm:$0xff] }
 0x423   : > { %471 = vmin.xlane.f32.xlu0 %v470_v29  ;;  %v5530_v8 = vld [vmem:[#allocation7 + $0x3e8] sm:$0xf0]  ;;  %3506 = vmatpush.bf16.xpose.msra.mxu2 %v6001_v7  ;;  %v6044_v7 = vld [vmem:[#allocation8 + $0x3f4] sm:$0xf] }
 0x424   : > { %3337 = vmatpush.bf16.xpose.msra.mxu0 %v5353_v26  ;;  %3351 = vmatpush.bf16.xpose.msra.mxu1 %v5357_v44  ;;  %v5529_v26 = vor.u32 %v6027_v0, %v5528_v53  ;;  %v5533_v44 = vor.u32 %v6026_v22, %v5530_v8  ;;  %v5496_v53 = vld [vmem:[#allocation7 + $0x3a0] sm:$0xf]  ;;  %v6019_v0 = vld [vmem:[#allocation7 + $0x3a4] sm:$0xf0]  ;;  %v6018_v22 = vld [vmem:[#allocation7 + $0x3a4] sm:$0xf] }
 0x425   : > { %v6859_v19 = vpop.f32.mrf.mxu2  ;;  %v6861_v40 = vpop.f32.mrf.mxu3  ;;  %3518 = vmatpush.bf16.xpose.msra.mxu3 %v6011_v45  ;;  %v6007_v45 = vld [vmem:[#allocation10 + $0x348] sm:$0xff]  ;;  %v5497_v8 = vor.u32 %v6019_v0, %v5496_v53 }
 0x426   : > { %v5594_v53 = vld [vmem:[#allocation8 + $0x3e8] sm:$0xf0] }
 0x42b   : > { %3507 = vmatpush.bf16.xpose.msra.mxu2 %v6000_v27  ;;  %v433_v27 = vsel %vm431_vm5, %v6726_v31, 0.0 }
 0x42d   : > { %v6863_v39 = vpop.f32.mrf.mxu2  ;;  %v6865_v51 = vpop.f32.mrf.mxu3  ;;  %3519 = vmatpush.bf16.xpose.msra.mxu3 %v6010_v52 }
 0x433   : > { %3508 = vmatpush.bf16.xpose.msra.mxu2 %v5999_v41  ;;  %v6042_v41 = vld [vmem:[#allocation8 + $0x3e4] sm:$0xf] }
 0x435   : > { %v2901_v57 = vpop.f32.mrf.mxu2  ;;  %v2915_v12 = vpop.f32.mrf.mxu3 }
 0x436   : > { %v2916_v10 = vadd.f32 %v2915_v12, %v2901_v57  ;;  %v5522_v57 = vld [vmem:[#allocation7 + $0x3d8] sm:$0xf0] }
 0x437   : > { %v5525_v12 = vor.u32 %v6024_v56, %v5522_v57  ;;  %v5998_v56 = vld [vmem:[#allocation10 + $0x300] sm:$0xff]  ;;  %v5600_v57 = vld [vmem:[#allocation8 + $0x3f0] sm:$0xf] }
 0x438   : > { %v2932_v29 = vmul.f32 %v2930_v21, %v2916_v10  ;;  %v6009_v10 = vld [vmem:[#allocation10 + $0x358] sm:$0xff] }
 0x439   : > { %3520 = vmatpush.bf16.xpose.msra.mxu3 %v6009_v10  ;;  %v5602_v10 = vld [vmem:[#allocation8 + $0x3f8] sm:$0xf0] }
 0x43b   : > { %3509 = vmatpush.bf16.xpose.msra.mxu2 %v5998_v56  ;;  %v6495_v56 = vmov 4  }
 0x43d   : > { %v2903_v2 = vpop.f32.mrf.mxu2  ;;  %v2917_v15 = vpop.f32.mrf.mxu3 }
 0x43e   : > { %v2918_v38 = vadd.f32 %v2917_v15, %v2903_v2  ;;  %v5512_v2 = vld [vmem:[#allocation7 + $0x3c0] sm:$0xf]  ;;  %v6023_v15 = vld [vmem:[#allocation7 + $0x3c4] sm:$0xf0] }
 0x43f   : > { %v5513_v21 = vor.u32 %v6023_v15, %v5512_v2 }
 0x440   : > { %v2933_v30 = vmul.f32 %v2931_v25, %v2918_v38  ;;  %v5514_v25 = vld [vmem:[#allocation7 + $0x3c8] sm:$0xf0] }
 0x441   : > { %v5517_v38 = vor.u32 %v6022_v16, %v5514_v25  ;;  %3521 = vmatpush.bf16.xpose.msra.mxu3 %v6008_v61  ;;  %v5605_v16 = vor.u32 %v6044_v7, %v5602_v10  ;;  %v6017_v25 = vld [vmem:[#allocation7 + $0x394] sm:$0xf0]  ;;  %v5586_v7 = vld [vmem:[#allocation8 + $0x3d8] sm:$0xf0] }
 0x442   : > { %v2934_v49 = vpack.c.bf16 %v2933_v30, %v2932_v29  ;;  %v6021_v29 = vld [vmem:[#allocation7 + $0x3b4] sm:$0xf0]  ;;  %v6020_v30 = vld [vmem:[#allocation7 + $0x3b4] sm:$0xf] }
 0x444   : > { %3072 = vmatmul.bf16.vlgmr.msrb.gmra.mxu0 %v2934_v49  ;;  %3086 = vmatmul.bf16.vlgmr.msrb.gmra.mxu1 %v2934_v49 }
 0x445   : > { %3643 = vmatpush.bf16.xpose.msrb.mxu0 %v5537_v14  ;;  %3657 = vmatpush.bf16.xpose.msrb.mxu1 %v5541_v37  ;;  %v5506_v14 = vld [vmem:[#allocation7 + $0x3b8] sm:$0xf0]  ;;  %v5505_v37 = vor.u32 %v6021_v29, %v5504_v28 }
 0x446   : > { %v5509_v49 = vor.u32 %v6020_v30, %v5506_v14  ;;  %v5490_v28 = vld [vmem:[#allocation7 + $0x398] sm:$0xf0] }
 0x449   : > { %3522 = vmatpush.bf16.xpose.msra.mxu3 %v6007_v45 }
 0x44d   : > { %3644 = vmatpush.bf16.xpose.msrb.mxu0 %v5529_v26  ;;  %3658 = vmatpush.bf16.xpose.msrb.mxu1 %v5533_v44  ;;  %v5498_v26 = vld [vmem:[#allocation7 + $0x3a8] sm:$0xf0]  ;;  %v459_v44 = vcvt.f32.s32 %v6850_v47  ;;  %v5488_v47 = vld [vmem:[#allocation7 + $0x390] sm:$0xf] }
 0x44e   : > { %v5501_v33 = vor.u32 %v6018_v22, %v5498_v26  ;;  %v5489_v61 = vor.u32 %v6017_v25, %v5488_v47  ;;  %v434_v22 = vsel %vm432_vm6, %v6731_v46, 0.0  ;;  %v6015_v26 = vld [vmem:[#allocation7 + $0x384] sm:$0xf0]  ;;  %v6038_v47 = vld [vmem:[#allocation8 + $0x3c4] sm:$0xf] }
 0x44f   : > { %v460_v54 = vshll.u32 %v459_v44, 16  ;;  %v6014_v44 = vld [vmem:[#allocation7 + $0x384] sm:$0xf] }
 0x454   : > { %3338 = vmatmul.bf16.vlgmr.msra.gmra.mxu0 %v6683_v42  ;;  %3352 = vmatmul.bf16.vlgmr.msra.gmra.mxu1 %v6687_v43 }
 0x455   : > { %3645 = vmatpush.bf16.xpose.msrb.mxu0 %v5521_v35  ;;  %3659 = vmatpush.bf16.xpose.msrb.mxu1 %v5525_v12  ;;  %v6006_v35 = vld [vmem:[#allocation10 + $0x340] sm:$0xff]  ;;  %v6045_v12 = vld [vmem:[#allocation8 + $0x3f4] sm:$0xf0] }
 0x456   : > { %3523 = vmatpush.bf16.xpose.msra.mxu3 %v6006_v35  ;;  %v5601_v15 = vor.u32 %v6045_v12, %v5600_v57  ;;  %v6041_v57 = vld [vmem:[#allocation8 + $0x3d4] sm:$0xf0] }
 0x458   : > { %3768 = vmatpush.bf16.xpose.msrb.mxu2 %v5601_v15  ;;  %v6498_v15 = vmov 7  }
 0x45d   : > { %3646 = vmatpush.bf16.xpose.msrb.mxu0 %v5513_v21  ;;  %3660 = vmatpush.bf16.xpose.msrb.mxu1 %v5517_v38  ;;  %v474_v21 = vcvt.f32.s32 %v6855_v24  ;;  %v6016_v38 = vld [vmem:[#allocation7 + $0x394] sm:$0xf] }
 0x45e   : > { %3782 = vmatpush.bf16.xpose.msrb.mxu3 %v5605_v16  ;;  %v5493_v30 = vor.u32 %v6016_v38, %v5490_v28  ;;  %v5576_v16 = vld [vmem:[#allocation8 + $0x3c0] sm:$0xf]  ;;  %v5578_v38 = vld [vmem:[#allocation8 + $0x3c8] sm:$0xf0]  ;;  %v5568_v28 = vld [vmem:[#allocation8 + $0x3b0] sm:$0xf] }
 0x45f   : > { %v475_v24 = vshll.u32 %v474_v21, 16  ;;  %v6039_v21 = vld [vmem:[#allocation8 + $0x3c4] sm:$0xf0] }
 0x460   : > { %v5577_v25 = vor.u32 %v6039_v21, %v5576_v16  ;;  %v6030_v16 = vld [vmem:[#allocation8 + $0x384] sm:$0xf]  ;;  %v5546_v21 = vld [vmem:[#allocation8 + $0x388] sm:$0xf0] }
 0x465   : > { %3647 = vmatpush.bf16.xpose.msrb.mxu0 %v5505_v37  ;;  %3661 = vmatpush.bf16.xpose.msrb.mxu1 %v5509_v49  ;;  %v5592_v37 = vld [vmem:[#allocation8 + $0x3e0] sm:$0xf]  ;;  %v6043_v49 = vld [vmem:[#allocation8 + $0x3e4] sm:$0xf0] }
 0x466   : > { %v5593_v45 = vor.u32 %v6043_v49, %v5592_v37 }
 0x468   : > { %3769 = vmatpush.bf16.xpose.msrb.mxu2 %v5593_v45 }
 0x46d   : > { %3648 = vmatpush.bf16.xpose.msrb.mxu0 %v5497_v8  ;;  %3662 = vmatpush.bf16.xpose.msrb.mxu1 %v5501_v33  ;;  %v5480_v8 = vld [vmem:[#allocation7 + $0x380] sm:$0xf] }
 0x475   : > { %3649 = vmatpush.bf16.xpose.msrb.mxu0 %v5489_v61  ;;  %3663 = vmatpush.bf16.xpose.msrb.mxu1 %v5493_v30  ;;  %v3228_v61 = vpop.f32.mrf.mxu3  ;;  %v6037_v30 = vld [vmem:[#allocation8 + $0x3b4] sm:$0xf0] }
 0x48e   : > { %v457_v52 = vpop.xlane.xlu2 %456 }
 0x48f   : > { %v458_v55 = vcvt.f32.s32 %v457_v52  ;;  %v5481_v52 = vor.u32 %v6015_v26, %v5480_v8  ;;  %v5562_v26 = vld [vmem:[#allocation8 + $0x3a8] sm:$0xf0] }
 0x491   : > { %v461_v2 = vadd.s32 %v460_v54, %v458_v55  ;;  %v5482_v54 = vld [vmem:[#allocation7 + $0x388] sm:$0xf0]  ;;  %v6494_v55 = vmov 6   ;;  %3650 = vmatpush.bf16.xpose.msrb.mxu0 %v5481_v52 }
 0x492   : > { %v5485_v35 = vor.u32 %v6014_v44, %v5482_v54 }
 0x493   : > { %vm477_vm11 = vcmp.eq.s32.totalorder %v6739_v20, %v461_v2  ;;  %v6497_v2 = vmov 3  }
 0x494   : > { %v6880_v29 = vsel %vm477_vm11, %v6726_v31, %v433_v27  ;;  %v5597_v31 = vor.u32 %v6042_v41, %v5594_v53  ;;  %3664 = vmatpush.bf16.xpose.msrb.mxu1 %v5485_v35  ;;  %v3214_v27 = vpop.f32.mrf.mxu2  ;;  %v3230_v41 = vpop.f32.mrf.mxu3  ;;  %v6033_v35 = vld [vmem:[#allocation8 + $0x394] sm:$0xf0] }
 0x495   : > { %3093 = vperm.xlu2 %6172, %v6880_v29   ;;  %1341 = vperm.xlu0 %6168, %v6880_v29   ;;  %v3229_v45 = vadd.f32 %v3228_v61, %v3214_v27 }
 0x496   : > { %902 = vperm.xlu1 %6167, %v6880_v29   ;;  %v472_v14 = vpop.xlane.xlu0 %471  ;;  %3783 = vmatpush.bf16.xpose.msrb.mxu3 %v5597_v31  ;;  %v6035_v31 = vld [vmem:[#allocation8 + $0x3a4] sm:$0xf0] }
 0x497   : > { %v473_v11 = vcvt.f32.s32 %v472_v14  ;;  %v5569_v14 = vor.u32 %v6037_v30, %v5568_v28 }
 0x498   : > { %3651 = vmatmul.bf16.vlgmr.msrb.gmra.mxu0 %v6683_v42 }
 0x499   : > { %v476_v0 = vadd.s32 %v475_v24, %v473_v11  ;;  %v6036_v24 = vld [vmem:[#allocation8 + $0x3b4] sm:$0xf]  ;;  %v5570_v11 = vld [vmem:[#allocation8 + $0x3b8] sm:$0xf0] }
 0x49a   : > { %v5573_v37 = vor.u32 %v6036_v24, %v5570_v11 }
 0x49b   : > { %vm478_vm12 = vcmp.eq.s32.totalorder %v6739_v20, %v476_v0  ;;  %v5584_v20 = vld [vmem:[#allocation8 + $0x3d0] sm:$0xf]  ;;  %3665 = vmatmul.bf16.vlgmr.msrb.gmra.mxu1 %v6687_v43  ;;  %v5560_v0 = vld [vmem:[#allocation8 + $0x3a0] sm:$0xf] }
 0x49c   : > { %v6891_v33 = vsel %vm478_vm12, %v6731_v46, %v434_v22  ;;  %v6040_v46 = vld [vmem:[#allocation8 + $0x3d4] sm:$0xf]  ;;  %v5585_v12 = vor.u32 %v6041_v57, %v5584_v20  ;;  %v3216_v49 = vpop.f32.mrf.mxu2  ;;  %v6034_v22 = vld [vmem:[#allocation8 + $0x3a4] sm:$0xf]  ;;  %v5561_v8 = vor.u32 %v6035_v31, %v5560_v0 }
 0x49d   : > { %6173 = vset.pattern.permute.xlu2 %v6494_v55  ;;  %6178 = vset.pattern.permute.xlu0 %v6495_v56  ;;  %v5589_v10 = vor.u32 %v6040_v46, %v5586_v7  ;;  %v3231_v53 = vadd.f32 %v3230_v41, %v3216_v49  ;;  %v5565_v44 = vor.u32 %v6034_v22, %v5562_v26  ;;  %v6032_v20 = vld [vmem:[#allocation8 + $0x394] sm:$0xf] }
 0x49e   : > { %6169 = vset.pattern.permute.xlu1 %v6496_v34  ;;  %3531 = vperm.xlu2 %6173, %v6880_v29  }
 0x49f   : > { %1779 = vperm.xlu1 %6169, %v6880_v29   ;;  %2659 = vperm.xlu0 %6178, %v6891_v33   ;;  %v3359_v52 = vsub.f32 0.0, %v3231_v53 }
 0x4a0   : > { %3770 = vmatpush.bf16.xpose.msrb.mxu2 %v5585_v12  ;;  %3784 = vmatpush.bf16.xpose.msrb.mxu3 %v5589_v10  ;;  %v5554_v12 = vld [vmem:[#allocation8 + $0x398] sm:$0xf0]  ;;  %v6031_v10 = vld [vmem:[#allocation8 + $0x384] sm:$0xf0] }
 0x4a1   : > { %v3362_v54 = vmul.f32 1.442695, %v3359_v52  ;;  %v5557_v7 = vor.u32 %v6032_v20, %v5554_v12  ;;  %v6050_v52 = vld [vmem:[#allocation10 + $0x3a0] sm:$0xff]  ;;  %v6056_v20 = vld [vmem:[#allocation10 + $0x3d0] sm:$0xff] }
 0x4a6   : > { %6174 = vset.pattern.permute.xlu2 %v6493_v1  ;;  %v5581_v1 = vor.u32 %v6038_v47, %v5578_v38 }
 0x4a7   : > { %6170 = vset.pattern.permute.xlu1 %v6497_v2  ;;  %6181 = vset.pattern.permute.xlu0 %v6498_v15 }
 0x4a8   : > { %2217 = vperm.xlu1 %6170, %v6880_v29   ;;  %3969 = vperm.xlu0 %6181, %v6880_v29  }
 0x4a9   : > { %907 = vperm.xlu2 %6174, %v6891_v33   ;;  %3771 = vmatpush.bf16.xpose.msrb.mxu2 %v5577_v25 }
 0x4aa   : > { %3785 = vmatpush.bf16.xpose.msrb.mxu3 %v5581_v1 }
 0x4b0   : > { %6171 = vset.pattern.permute.xlu1 %v6495_v56  ;;  %v5552_v56 = vld [vmem:[#allocation8 + $0x390] sm:$0xf] }
 0x4b1   : > { %6175 = vset.pattern.permute.xlu2 %v6492_v9  ;;  %2655 = vperm.xlu1 %6171, %v6880_v29   ;;  %v3358_v9 = vsub.f32 0.0, %v3229_v45 }
 0x4b2   : > { %1345 = vperm.xlu2 %6175, %v6891_v33   ;;  %3772 = vmatpush.bf16.xpose.msrb.mxu2 %v5569_v14 }
 0x4b3   : > { %3786 = vmatpush.bf16.xpose.msrb.mxu3 %v5573_v37  ;;  %v3360_v29 = vmul.f32 1.442695, %v3358_v9  ;;  %v6060_v9 = vld [vmem:[#allocation10 + $0x3f0] sm:$0xff] }
 0x4b5   : > { %6239 = vpow2.f32 %v3360_v29  ;;  %v6058_v29 = vld [vmem:[#allocation10 + $0x3e0] sm:$0xff] }
 0x4b6   : > { %6241 = vpow2.f32 %v3362_v54 }
 0x4b9   : > { %6179 = vset.pattern.permute.xlu1 %v6491_v60  ;;  %v5553_v60 = vor.u32 %v6033_v35, %v5552_v56  ;;  %v6057_v56 = vld [vmem:[#allocation10 + $0x3d8] sm:$0xff]  ;;  %v6048_v35 = vld [vmem:[#allocation10 + $0x390] sm:$0xff] }
 0x4ba   : > { %6176 = vset.pattern.permute.xlu2 %v6496_v34  ;;  %3097 = vperm.xlu1 %6179, %v6891_v33   ;;  %v5544_v34 = vld [vmem:[#allocation8 + $0x380] sm:$0xf] }
 0x4bb   : > { %1783 = vperm.xlu2 %6176, %v6891_v33   ;;  %3773 = vmatpush.bf16.xpose.msrb.mxu2 %v5561_v8  ;;  %v6240_v47 = vpop.eup %6239  ;;  %v5545_v27 = vor.u32 %v6031_v10, %v5544_v34  ;;  %v6047_v10 = vld [vmem:[#allocation10 + $0x388] sm:$0xff] }
 0x4bc   : > { %3787 = vmatpush.bf16.xpose.msrb.mxu3 %v5565_v44  ;;  %v6242_v61 = vpop.eup %6241  ;;  %v3364_v1 = vadd.f32 1.0, %v6240_v47  ;;  %v6052_v44 = vld [vmem:[#allocation10 + $0x3b0] sm:$0xff] }
 0x4be   : > { %6243 = vrcp.f32 %v3364_v1 }
 0x4c1   : > { %v6910_v57 = vpop.f32.mrf.mxu0  ;;  %v6912_v46 = vpop.f32.mrf.mxu1 }
 0x4c2   : > { %6180 = vset.pattern.permute.xlu1 %v6494_v55  ;;  %v5549_v55 = vor.u32 %v6030_v16, %v5546_v21  ;;  %v6055_v16 = vld [vmem:[#allocation10 + $0x3c8] sm:$0xff] }
 0x4c3   : > { %6177 = vset.pattern.permute.xlu2 %v6497_v2  ;;  %3535 = vperm.xlu1 %6180, %v6891_v33   ;;  %v3365_v2 = vadd.f32 1.0, %v6242_v61 }
 0x4c4   : > { %2221 = vperm.xlu2 %6177, %v6891_v33   ;;  %3774 = vmatpush.bf16.xpose.msrb.mxu2 %v5553_v60  ;;  %v6244_v24 = vpop.eup %6243 }
 0x4c5   : > { %3788 = vmatpush.bf16.xpose.msrb.mxu3 %v5557_v7  ;;  %6245 = vrcp.f32 %v3365_v2  ;;  %v3368_v41 = vmul.f32 %v6244_v24, %v3229_v45  ;;  %v6051_v45 = vld [vmem:[#allocation10 + $0x3a8] sm:$0xff] }
 0x4c9   : > { %v6917_v25 = vpop.f32.mrf.mxu0  ;;  %v6919_v38 = vpop.f32.mrf.mxu1 }
 0x4cb   : > { %v6246_v14 = vpop.eup %6245 }
 0x4cc   : > { %6182 = vset.pattern.permute.xlu2 %v6498_v15  ;;  %3775 = vmatpush.bf16.xpose.msrb.mxu2 %v5545_v27  ;;  %v3369_v0 = vmul.f32 %v6246_v14, %v3231_v53  ;;  %v6061_v15 = vld [vmem:[#allocation10 + $0x3f8] sm:$0xff]  ;;  %v6059_v53 = vld [vmem:[#allocation10 + $0x3e8] sm:$0xff] }
 0x4cd   : > { %3973 = vperm.xlu2 %6182, %v6891_v33   ;;  %3789 = vmatpush.bf16.xpose.msrb.mxu3 %v5549_v55  ;;  %v6053_v33 = vld [vmem:[#allocation10 + $0x3b8] sm:$0xff] }
 0x4ce   : > { %3940 = vmatpush.bf16.xpose.msra.mxu0 %v6053_v33  ;;  %3954 = vmatpush.bf16.xpose.msra.mxu1 %v6061_v15 }
 0x4d1   : > { %v3339_v28 = vpop.f32.mrf.mxu0  ;;  %v3353_v30 = vpop.f32.mrf.mxu1 }
 0x4d2   : > { %v3354_v11 = vadd.f32 %v3353_v30, %v3339_v28 }
 0x4d4   : > { %v3370_v22 = vmul.f32 %v3368_v41, %v3354_v11  ;;  %v6046_v41 = vld [vmem:[#allocation10 + $0x380] sm:$0xff] }
 0x4d6   : > { %3941 = vmatpush.bf16.xpose.msra.mxu0 %v6052_v44  ;;  %3955 = vmatpush.bf16.xpose.msra.mxu1 %v6060_v9 }
 0x4d9   : > { %v3341_v37 = vpop.f32.mrf.mxu0  ;;  %v3355_v49 = vpop.f32.mrf.mxu1 }
 0x4da   : > { %v3356_v31 = vadd.f32 %v3355_v49, %v3341_v37 }
 0x4dc   : > { %v3371_v8 = vmul.f32 %v3369_v0, %v3356_v31 }
 0x4de   : > { %v3372_v26 = vpack.c.bf16 %v3371_v8, %v3370_v22  ;;  %3942 = vmatpush.bf16.xpose.msra.mxu0 %v6051_v45  ;;  %3956 = vmatpush.bf16.xpose.msra.mxu1 %v6059_v53 }
 0x4e0   : > { %3510 = vmatmul.bf16.vlgmr.msra.gmra.mxu2 %v3372_v26  ;;  %3524 = vmatmul.bf16.vlgmr.msra.gmra.mxu3 %v3372_v26 }
 0x4e6   : > { %3943 = vmatpush.bf16.xpose.msra.mxu0 %v6050_v52  ;;  %3957 = vmatpush.bf16.xpose.msra.mxu1 %v6058_v29 }
 0x4ee   : > { %3958 = vmatpush.bf16.xpose.msra.mxu1 %v6057_v56 }
 0x4ef   : > { %v3094_v2 = vpop.permute.xlu2 %3093 }
 0x4f0   : > { %3776 = vmatmul.bf16.vlgmr.msrb.gmra.mxu2 %v6683_v42  ;;  %3790 = vmatmul.bf16.vlgmr.msrb.gmra.mxu3 %v6687_v43  ;;  %v6049_v42 = vld [vmem:[#allocation10 + $0x398] sm:$0xff]  ;;  %v3101_v44 = vmul.f32 %v3094_v2, %v6912_v46 }
 0x4f1   : > { %3944 = vmatpush.bf16.xpose.msra.mxu0 %v6049_v42 }
 0x4f6   : > { %3959 = vmatpush.bf16.xpose.msra.mxu1 %v6056_v20 }
 0x4f8   : > { %v3532_v9 = vpop.permute.xlu2 %3531 }
 0x4f9   : > { %3945 = vmatpush.bf16.xpose.msra.mxu0 %v6048_v35 }
 0x4fe   : > { %3960 = vmatpush.bf16.xpose.msra.mxu1 %v6055_v16 }
 0x501   : > { %3946 = vmatpush.bf16.xpose.msra.mxu0 %v6047_v10 }
 0x507   : > { %v1342_v34 = vpop.permute.xlu0 %1341 }
 0x508   : > { %v903_v54 = vpop.permute.xlu1 %902  ;;  %v1348_v47 = vmul.f32 %v1342_v34, %v6759_v58  ;;  %v1349_v61 = vmul.f32 %v1342_v34, %v6761_v59 }
 0x509   : > { %v910_v21 = vmul.f32 %v903_v54, %v6717_v5  ;;  %v911_v27 = vmul.f32 %v903_v54, %v6719_v6  ;;  %v6054_v6 = vld [vmem:[#allocation10 + $0x3c0] sm:$0xff]  ;;  %3947 = vmatpush.bf16.xpose.msra.mxu0 %v6046_v41 }
 0x50a   : > { %3961 = vmatpush.bf16.xpose.msra.mxu1 %v6054_v6 }
 0x50b   : > { %v1352_v24 = vadd.f32 %v1348_v47, %v910_v21  ;;  %v1353_v37 = vadd.f32 %v1349_v61, %v911_v27 }
 0x511   : > { %v1780_v43 = vpop.permute.xlu1 %1779 }
 0x512   : > { %v1786_v28 = vmul.f32 %v1780_v43, %v6781_v62  ;;  %v1787_v30 = vmul.f32 %v1780_v43, %v6783_v63 }
 0x514   : > { %v1790_v0 = vadd.f32 %v1786_v28, %v1352_v24  ;;  %v1791_v59 = vadd.f32 %v1787_v30, %v1353_v37  ;;  %v908_v30 = vpop.permute.xlu2 %907  ;;  %v2660_v37 = vpop.permute.xlu0 %2659 }
 0x515   : > { %v3652_v60 = vpop.f32.mrf.mxu0 }
 0x518   : > { %v3666_v12 = vpop.f32.mrf.mxu1 }
 0x519   : > { %v3667_v11 = vadd.f32 %v3666_v12, %v3652_v60 }
 0x51a   : > { %v2218_v7 = vpop.permute.xlu1 %2217 }
 0x51b   : > { %v2224_v5 = vmul.f32 %v2218_v7, %v6819_v32  ;;  %v2225_v58 = vmul.f32 %v2218_v7, %v6821_v36  ;;  %v3796_v62 = vsub.f32 0.0, %v3667_v11  ;;  %v3100_v36 = vmul.f32 %v3094_v2, %v6910_v57 }
 0x51c   : > { %v1346_v24 = vpop.permute.xlu2 %1345 }
 0x51d   : > { %v3654_v55 = vpop.f32.mrf.mxu0  ;;  %v2228_v63 = vadd.f32 %v2224_v5, %v1790_v0  ;;  %v2229_v8 = vadd.f32 %v2225_v58, %v1791_v59  ;;  %v3798_v32 = vmul.f32 1.442695, %v3796_v62  ;;  %v1350_v5 = vmul.f32 %v1346_v24, %v6763_v3 }
 0x51e   : > { %v1351_v58 = vmul.f32 %v1346_v24, %v6765_v4  ;;  %v912_v0 = vmul.f32 %v908_v30, %v6721_v17  ;;  %v3970_v4 = vpop.permute.xlu0 %3969 }
 0x51f   : > { %6247 = vpow2.f32 %v3798_v32 }
 0x520   : > { %v3668_v1 = vpop.f32.mrf.mxu1 }
 0x521   : > { %v3669_v49 = vadd.f32 %v3668_v1, %v3654_v55 }
 0x523   : > { %v2656_v14 = vpop.permute.xlu1 %2655  ;;  %v3797_v26 = vsub.f32 0.0, %v3669_v49 }
 0x524   : > { %v2662_v31 = vmul.f32 %v2656_v14, %v6859_v19  ;;  %v2663_v22 = vmul.f32 %v2656_v14, %v6861_v40  ;;  %v1784_v14 = vpop.permute.xlu2 %1783 }
 0x525   : > { %v3800_v45 = vmul.f32 1.442695, %v3797_v26  ;;  %v6248_v43 = vpop.eup %6247  ;;  %v1789_v59 = vmul.f32 %v1784_v14, %v6787_v13  ;;  %v2665_v13 = vmul.f32 %v2660_v37, %v6865_v51 }
 0x526   : > { %v2666_v33 = vadd.f32 %v2662_v31, %v2228_v63  ;;  %v2667_v15 = vadd.f32 %v2663_v22, %v2229_v8  ;;  %v3802_v12 = vadd.f32 1.0, %v6248_v43  ;;  %v1354_v31 = vadd.f32 %v1350_v5, %v912_v0 }
 0x527   : > { %6249 = vpow2.f32 %v3800_v45 }
 0x528   : > { %v3104_v19 = vadd.f32 %v3100_v36, %v2666_v33  ;;  %v3105_v40 = vadd.f32 %v3101_v44, %v2667_v15  ;;  %6251 = vrcp.f32 %v3802_v12 }
 0x52c   : > { %v2222_v41 = vpop.permute.xlu2 %2221  ;;  %v3098_v6 = vpop.permute.xlu1 %3097 }
 0x52d   : > { %v6250_v60 = vpop.eup %6249  ;;  %v2226_v62 = vmul.f32 %v2222_v41, %v6823_v23  ;;  %v2227_v63 = vmul.f32 %v2222_v41, %v6825_v48  ;;  %v3102_v36 = vmul.f32 %v3098_v6, %v6917_v25  ;;  %v3103_v23 = vmul.f32 %v3098_v6, %v6919_v38 }
 0x52e   : > { %v3803_v57 = vadd.f32 1.0, %v6250_v60  ;;  %v6252_v34 = vpop.eup %6251 }
 0x52f   : > { %v3806_v27 = vmul.f32 %v6252_v34, %v3667_v11  ;;  %v913_v11 = vmul.f32 %v908_v30, %v6723_v18 }
 0x530   : > { %6253 = vrcp.f32 %v3803_v57 }
 0x531   : > { %v1355_v22 = vadd.f32 %v1351_v58, %v913_v11 }
 0x533   : > { %v1793_v8 = vadd.f32 %v1789_v59, %v1355_v22 }
 0x535   : > { %v2231_v17 = vadd.f32 %v2227_v63, %v1793_v8 }
 0x536   : > { %v6254_v10 = vpop.eup %6253 }
 0x537   : > { %v3807_v61 = vmul.f32 %v6254_v10, %v3669_v49  ;;  %v1788_v49 = vmul.f32 %v1784_v14, %v6785_v50  ;;  %v2664_v50 = vmul.f32 %v2660_v37, %v6863_v39  ;;  %v3974_v39 = vpop.permute.xlu2 %3973 }
 0x539   : > { %v1792_v3 = vadd.f32 %v1788_v49, %v1354_v31 }
 0x53b   : > { %v2230_v15 = vadd.f32 %v2226_v62, %v1792_v3 }
 0x53d   : > { %v2668_v45 = vadd.f32 %v2664_v50, %v2230_v15 }
 0x53f   : > { %v3106_v51 = vadd.f32 %v3102_v36, %v2668_v45 }
 0x563   : > { %v3511_v53 = vpop.f32.mrf.mxu2  ;;  %v3525_v52 = vpop.f32.mrf.mxu3 }
 0x564   : > { %v3538_v29 = vmul.f32 %v3532_v9, %v3511_v53  ;;  %v3539_v54 = vmul.f32 %v3532_v9, %v3525_v52  ;;  %v3536_v9 = vpop.permute.xlu1 %3535  ;;  %v2669_v53 = vadd.f32 %v2665_v13, %v2231_v17 }
 0x566   : > { %v3542_v42 = vadd.f32 %v3538_v29, %v3104_v19  ;;  %v3543_v56 = vadd.f32 %v3539_v54, %v3105_v40  ;;  %v3107_v25 = vadd.f32 %v3103_v23, %v2669_v53 }
 0x56b   : > { %v3513_v35 = vpop.f32.mrf.mxu2  ;;  %v3527_v20 = vpop.f32.mrf.mxu3 }
 0x56c   : > { %v3540_v52 = vmul.f32 %v3536_v9, %v3513_v35  ;;  %v3541_v19 = vmul.f32 %v3536_v9, %v3527_v20 }
 0x56e   : > { %v3544_v40 = vadd.f32 %v3540_v52, %v3106_v51  ;;  %v3545_v54 = vadd.f32 %v3541_v19, %v3107_v25 }
 0x573   : > { %v3777_v46 = vpop.f32.mrf.mxu2  ;;  %v3791_v7 = vpop.f32.mrf.mxu3 }
 0x574   : > { %v3792_v16 = vadd.f32 %v3791_v7, %v3777_v46 }
 0x576   : > { %v3808_v1 = vmul.f32 %v3806_v27, %v3792_v16 }
 0x57b   : > { %v3779_v21 = vpop.f32.mrf.mxu2  ;;  %v3793_v47 = vpop.f32.mrf.mxu3 }
 0x57c   : > { %v3794_v55 = vadd.f32 %v3793_v47, %v3779_v21 }
 0x57e   : > { %v3809_v2 = vmul.f32 %v3807_v61, %v3794_v55 }
 0x580   : > { %v3810_v28 = vpack.c.bf16 %v3809_v2, %v3808_v1 }
 0x582   : > { %3948 = vmatmul.bf16.vlgmr.msra.gmra.mxu0 %v3810_v28  ;;  %3962 = vmatmul.bf16.vlgmr.msra.gmra.mxu1 %v3810_v28 }
 0x5ff   : > { %v3949_v26 = vpop.f32.mrf.mxu0  ;;  %v3963_v33 = vpop.f32.mrf.mxu1 }
 0x600   : > { %v3976_v18 = vmul.f32 %v3970_v4, %v3949_v26  ;;  %v3977_v32 = vmul.f32 %v3970_v4, %v3963_v33 }
 0x602   : > { %v3980_v48 = vadd.f32 %v3976_v18, %v3542_v42  ;;  %v3981_v44 = vadd.f32 %v3977_v32, %v3543_v56 }
 0x604   : > { %3984 = vst [vmem:[%s309_s29] sm:$0xff] %v3980_v48 }
 0x605   : > { %3985 = vst [vmem:[%s309_s29 + $0x8] sm:$0xff] %v3981_v44 }
 0x607   : > { %v3951_v38 = vpop.f32.mrf.mxu0  ;;  %v3965_v29 = vpop.f32.mrf.mxu1 }
 0x608   : > { %v3978_v42 = vmul.f32 %v3974_v39, %v3951_v38  ;;  %v3979_v56 = vmul.f32 %v3974_v39, %v3965_v29 }
 0x60a   : > { %v3982_v43 = vadd.f32 %v3978_v42, %v3544_v40  ;;  %v3983_v35 = vadd.f32 %v3979_v56, %v3545_v54 }
 0x60c   : > { %3986 = vst [vmem:[%s309_s29 + $0x10] sm:$0xff] %v3982_v43 }
 0x60d   : > { %3987 = vst [vmem:[%s309_s29 + $0x18] sm:$0xff] %v3983_v35 }
 0x60e   : > { %6432 = shalt.err (!%p6429_p11)
}
 0x60f   : > { %s6499_s28 = smov 256   ;;  %s6500_s13 = smov 16  }
 0x610   : > { %6082 = dma.vmem_to_hbm [thread:$0]  (%p6618_p5), %s4003_s22, 512, %s4005_s9, %s3989_s7, %s6499_s28, %s6499_s28, %s6500_s13  }
 0x611 PF: > { %s4019_s24 = sand.u32 1, %s6467_s18   ;;  %p6996_p12 = scmp.ge.s32.totalorder %s6479_s21, 2 }
 0x612   : > { %s4020_s29 = scalar_lea.sflag [#allocation4], %s4019_s24 }
 0x613   : > { %p6102_p13 = pnand %p6996_p12, %p6566_p6 }
 0x615   : > { %p6103_p0 = pneg %p6102_p13 }
 0x617   : > { %6462 = dma.done.wait (%p6103_p0), %s4020_s29, 512  }
 0x618   : > { %6464 = vsyncadd (%p6103_p0), %s4020_s29, 4294966784  ;;  %p20_p3 = scmp.ge.s32.totalorder %s6605_s11, 4   ;;  %s6997_s18 = smov %s6471_s19 }
 0x619   : > { %s6998_s19 = smov %s6475_s20  ;;  %s6999_s20 = smov %s6614_s14 }
 0x61a   : > { %s7000_s21 = smov %s6605_s11  ;;  %22 = sbr.rel (!%p20_p3) target bundleno = 7 (0x7), region = 122 }
 0x61f   :  { %4026 = vsyncpa [#allocation3], 1 }
 0x620   :  { %4028 = vsyncpa [#allocation3 + $0x1], 1 }
 0x621   :  { %4029 = vsyncpa [#allocation6], 1 }
 0x622   :  { %4030 = vsyncpa [#allocation9], 1 }
 0x623   :  { %4031 = vsyncpa [#allocation4], 1 }
 0x624   :  { %4033 = vsyncpa [#allocation4 + $0x1], 1 }

</bundles_post_ra>
